<compile_context>
chip_gen: v7x
topology: tpu7x:2x2x1
jax: 0.10.0
libtpu: 0.0.40
codegen_flags: <defaults>
</compile_context>

<pallas_src>
import functools
import math

import jax
import jax.numpy as jnp
from jax.experimental import pallas as pl
from jax.experimental.pallas import tpu as pltpu


def _layer_norm(x, g, b, eps=1e-5):
    mu = jnp.mean(x, axis=-1, keepdims=True)
    xc = x - mu
    var = jnp.mean(xc * xc, axis=-1, keepdims=True)
    return xc * jax.lax.rsqrt(var + eps) * g + b


def _layer_kernel(xq_ref, xkv_ref,
                  wq_ref, bq_ref, wkv_ref, bkv_ref,
                  wo_ref, bo_ref,
                  ln1_g_ref, ln1_b_ref,
                  w1_ref, b1_ref, w2_ref, b2_ref,
                  ln2_g_ref, ln2_b_ref,
                  *rest, num_heads, kv_tile, ffn_tile, has_layer_result):
    """One (batch b, query-tile t) step of the full encoder layer."""
    if has_layer_result:
        out_ref, lr_ref, k_scr, v_scr = rest
    else:
        out_ref, k_scr, v_scr = rest
        lr_ref = None

    f32 = jnp.float32
    bf16 = jnp.bfloat16

    H = num_heads
    Tfull = k_scr.shape[1]
    dh = k_scr.shape[2]

    xq = xq_ref[0].astype(f32)                     # (tq, C) query rows / residual
    tq, C = xq.shape

    # ---- K/V projection: ONCE per batch (query-tile axis is sequential) ----
    # Stored head-major in bf16 scratch so the per-tile hot loop never reshapes
    # or transposes K/V again (scale 1/sqrt(dh) is folded into Wq/bq).
    @pl.when(pl.program_id(1) == 0)
    def _project_kv():
        xkv = xkv_ref[0]                           # (T, C) bf16 full sequence
        kv = jnp.dot(xkv, wkv_ref[...],
                     preferred_element_type=f32) + bkv_ref[...]   # (T, 2C) f32
        k_scr[...] = jnp.swapaxes(kv[:, :C].reshape(Tfull, H, dh), 0, 1).astype(bf16)
        v_scr[...] = jnp.swapaxes(kv[:, C:].reshape(Tfull, H, dh), 0, 1).astype(bf16)

    # ---- Q projection (bf16 MXU operands, f32 accumulation) ----
    q = jnp.dot(xq.astype(bf16), wq_ref[...],
                preferred_element_type=f32) + bq_ref[...]          # (tq, C)
    qh = jnp.swapaxes(q.reshape(tq, H, dh), 0, 1).astype(bf16)     # (H, tq, dh)

    # ---- chunked online-softmax attention over the resident KV scratch ----
    n_kv = Tfull // kv_tile
    m = None
    l = None
    acc = None
    for ci in range(n_kv):                         # static loop; slices are views
        lo = ci * kv_tile
        hi = lo + kv_tile
        k_c = k_scr[:, lo:hi, :]                   # (H, tkv, dh) bf16
        v_c = v_scr[:, lo:hi, :]
        s = jnp.einsum("hqd,hkd->hqk", qh, k_c,
                       preferred_element_type=f32)                 # (H, tq, tkv)
        s_max = jnp.max(s, axis=-1, keepdims=True)
        if m is None:
            m = s_max
            p = jnp.exp(s - m)
            l = jnp.sum(p, axis=-1, keepdims=True)
            acc = jnp.einsum("hqk,hkd->hqd", p.astype(bf16), v_c,
                             preferred_element_type=f32)           # (H, tq, dh)
        else:
            m_new = jnp.maximum(m, s_max)
            alpha = jnp.exp(m - m_new)
            p = jnp.exp(s - m_new)
            l = alpha * l + jnp.sum(p, axis=-1, keepdims=True)
            acc = alpha * acc + jnp.einsum("hqk,hkd->hqd", p.astype(bf16), v_c,
                                           preferred_element_type=f32)
            m = m_new

    ctx = acc * pl.reciprocal(l, approx=True)      # (H, tq, dh) f32

    # ---- output projection: head-concat fused into ONE K=C matmul ----
    ctx_qc = jnp.swapaxes(ctx, 0, 1).reshape(tq, C)                # (tq, C)
    attn = jnp.dot(ctx_qc.astype(bf16), wo_ref[...],
                   preferred_element_type=f32) + bo_ref[...]

    # ---- residual + self_attn_layer_norm (post-LN) ----
    x1 = _layer_norm(xq + attn, ln1_g_ref[...], ln1_b_ref[...])

    # ---- FFN: fc1 -> relu -> fc2, chunked over the hidden (F) axis ----
    x1b = x1.astype(bf16)
    Ff = w1_ref.shape[1]
    n_f = Ff // ffn_tile
    h2 = jnp.zeros((tq, C), f32)
    for fi in range(n_f):                          # static loop; slices are views
        lo = fi * ffn_tile
        hi = lo + ffn_tile
        h1 = jnp.dot(x1b, w1_ref[:, lo:hi],
                     preferred_element_type=f32) + b1_ref[:, lo:hi]
        h1 = jnp.maximum(h1, 0.0)
        h2 = h2 + jnp.dot(h1.astype(bf16), w2_ref[lo:hi, :],
                          preferred_element_type=f32)
    h2 = h2 + b2_ref[...]

    if lr_ref is not None:     # layer_result = fc2 output (pre-dropout/residual)
        lr_ref[0] = h2.astype(lr_ref.dtype)

    # ---- residual + final_layer_norm ----
    x2 = _layer_norm(x1 + h2, ln2_g_ref[...], ln2_b_ref[...])
    out_ref[0] = x2.astype(out_ref.dtype)


def _pick_tile(n, prefs):
    for cand in prefs:
        if cand <= n and n % cand == 0:
            return cand
    return n   # full-extent block (valid: block dim == array dim)


def _default_vmem_limit_bytes():
    """Per-generation scoped-VMEM limit (v7x: 64 MiB physical; v5e/v6e: 128)."""
    try:
        kind = jax.devices()[0].device_kind.lower()
    except Exception:
        kind = ""
    if "v7" in kind:
        return 48 * 1024 * 1024
    return 100 * 1024 * 1024


def prepare_params(params, num_heads):
    """One-time param prep: fold 1/sqrt(dh) into Wq/bq, fuse Wk|Wv, cast MXU
    weight operands to bf16 (LN params & biases stay f32)."""
    C = params["wq"].shape[0]
    dh = C // num_heads
    scale = 1.0 / math.sqrt(dh)
    f32, bf16 = jnp.float32, jnp.bfloat16
    return {
        "wq": (params["wq"] * scale).astype(bf16),
        "bq": (params["bq"] * scale).astype(f32),
        "wkv": jnp.concatenate([params["wk"], params["wv"]], axis=1).astype(bf16),
        "bkv": jnp.concatenate([params["bk"], params["bv"]], axis=1).astype(f32),
        "wo": params["wo"].astype(bf16),
        "bo": params["bo"].astype(f32),
        "ln1_g": params["ln1_g"].astype(f32),
        "ln1_b": params["ln1_b"].astype(f32),
        "w1": params["w1"].astype(bf16),
        "b1": params["b1"].astype(f32),
        "w2": params["w2"].astype(bf16),
        "b2": params["b2"].astype(f32),
        "ln2_g": params["ln2_g"].astype(f32),
        "ln2_b": params["ln2_b"].astype(f32),
    }


def stransformer_layer_forward_btc(x_btc, prep, num_heads,
                                   return_layer_result=True,
                                   q_tile=None, kv_tile=None, ffn_tile=None,
                                   single_buffer_consts=True,
                                   vmem_limit_bytes=None):
    """Core entry point in (B, T, C) layout (use this for stacked layers so the
    (T,B,C) transpose is amortized once at the model boundary)."""
    B, T, C = x_btc.shape
    F = prep["w1"].shape[1]
    assert C % num_heads == 0, (C, num_heads)
    dh = C // num_heads

    tq = _pick_tile(T, (128, 64, 32, 16, 8)) if q_tile is None else q_tile
    assert T % tq == 0, (T, tq)
    tkv = _pick_tile(T, (512, 256, 128, 64, 32, 16, 8)) if kv_tile is None else kv_tile
    assert T % tkv == 0, (T, tkv)
    tf = _pick_tile(F, (1024, 512, 256, 128)) if ffn_tile is None else ffn_tile
    assert F % tf == 0, (F, tf)
    n_qt = T // tq

    if vmem_limit_bytes is None:
        vmem_limit_bytes = _default_vmem_limit_bytes()

    # K/V activation only feeds the MXU -> pass it as bf16 (halves its VMEM/DMA).
    x_kv = x_btc.astype(jnp.bfloat16)

    def build_and_call(single_buffer):
        cmode = {"pipeline_mode": pl.Buffered(1)} if single_buffer else {}

        def const(shape):   # constant-index blocks: single-buffered if possible
            return pl.BlockSpec(shape, lambda b, t: (0, 0), **cmode)

        in_specs = [
            pl.BlockSpec((1, tq, C), lambda b, t: (b, t, 0)),   # query tile / residual
            pl.BlockSpec((1, T, C), lambda b, t: (b, 0, 0)),    # full seq (bf16) for K/V
            const((C, C)), const((1, C)),                       # Wq*scale, bq*scale
            const((C, 2 * C)), const((1, 2 * C)),               # [Wk|Wv], [bk|bv]
            const((C, C)), const((1, C)),                       # Wo, bo
            const((1, C)), const((1, C)),                       # LN1 gamma, beta
            const((C, F)), const((1, F)),                       # fc1 W, b
            const((F, C)), const((1, C)),                       # fc2 W, b
            const((1, C)), const((1, C)),                       # LN2 gamma, beta
        ]

        out_shapes = [jax.ShapeDtypeStruct((B, T, C), x_btc.dtype)]
        out_specs = [pl.BlockSpec((1, tq, C), lambda b, t: (b, t, 0))]
        if return_layer_result:
            out_shapes.append(jax.ShapeDtypeStruct((B, T, C), x_btc.dtype))
            out_specs.append(pl.BlockSpec((1, tq, C), lambda b, t: (b, t, 0)))

        kernel = functools.partial(
            _layer_kernel, num_heads=num_heads, kv_tile=tkv, ffn_tile=tf,
            has_layer_result=return_layer_result)

        return pl.pallas_call(
            kernel,
            out_shape=tuple(out_shapes),
            grid_spec=pltpu.PrefetchScalarGridSpec(
                num_scalar_prefetch=0,
                grid=(B, n_qt),
                in_specs=in_specs,
                out_specs=out_specs,
                scratch_shapes=[
                    pltpu.VMEM((num_heads, T, dh), jnp.bfloat16),   # K scratch
                    pltpu.VMEM((num_heads, T, dh), jnp.bfloat16),   # V scratch
                ]),
            compiler_params=pltpu.CompilerParams(
                # K/V are projected into scratch at t == 0 and reused across
                # the query tiles of a batch -> the query-tile axis MUST be
                # sequential ("arbitrary"); the batch axis is megacore-parallel.
                dimension_semantics=("parallel", "arbitrary"),
                vmem_limit_bytes=vmem_limit_bytes,
            ),
        )(x_btc, x_kv,
          prep["wq"], prep["bq"], prep["wkv"], prep["bkv"],
          prep["wo"], prep["bo"],
          prep["ln1_g"], prep["ln1_b"],
          prep["w1"], prep["b1"], prep["w2"], prep["b2"],
          prep["ln2_g"], prep["ln2_b"])

    if single_buffer_consts:
        try:
            outs = build_and_call(True)
        except Exception:
            # pl.Buffered(1) not supported by this jax version; fall back to the
            # default double-buffered weight blocks (identical numerics).
            outs = build_and_call(False)
    else:
        outs = build_and_call(False)

    y = outs[0]
    lr = outs[1] if return_layer_result else None
    return y, lr


def stransformer_layer_forward(x_tbc, prep, num_heads,
                               return_layer_result=True, **kwargs):
    """Module-equivalent entry point in fairseq (T, B, C) layout.
    Returns (x, (attn=None, layer_result)) like the PyTorch module."""
    x_btc = jnp.transpose(x_tbc, (1, 0, 2))
    y_btc, lr_btc = stransformer_layer_forward_btc(
        x_btc, prep, num_heads, return_layer_result=return_layer_result, **kwargs)
    y = jnp.transpose(y_btc, (1, 0, 2))
    lr = jnp.transpose(lr_btc, (1, 0, 2)) if lr_btc is not None else None
    return y, (None, lr)


def init_params(key, embed_dim, ffn_dim):
    """Deterministic synthetic parameters.  Weights are stored (in, out),
    i.e. already transposed relative to torch nn.Linear's (out, in)."""
    ks = jax.random.split(key, 8)
    s = 0.02
    return {
        "wq": jax.random.normal(ks[0], (embed_dim, embed_dim), jnp.float32) * s,
        "wk": jax.random.normal(ks[1], (embed_dim, embed_dim), jnp.float32) * s,
        "wv": jax.random.normal(ks[2], (embed_dim, embed_dim), jnp.float32) * s,
        "wo": jax.random.normal(ks[3], (embed_dim, embed_dim), jnp.float32) * s,
        "bq": jnp.zeros((1, embed_dim), jnp.float32),
        "bk": jnp.zeros((1, embed_dim), jnp.float32),
        "bv": jnp.zeros((1, embed_dim), jnp.float32),
        "bo": jnp.zeros((1, embed_dim), jnp.float32),
        "w1": jax.random.normal(ks[4], (embed_dim, ffn_dim), jnp.float32) * s,
        "b1": jax.random.normal(ks[5], (1, ffn_dim), jnp.float32) * s,
        "w2": jax.random.normal(ks[6], (ffn_dim, embed_dim), jnp.float32) * s,
        "b2": jax.random.normal(ks[7], (1, embed_dim), jnp.float32) * s,
        "ln1_g": jnp.ones((1, embed_dim), jnp.float32),
        "ln1_b": jnp.zeros((1, embed_dim), jnp.float32),
        "ln2_g": jnp.ones((1, embed_dim), jnp.float32),
        "ln2_b": jnp.zeros((1, embed_dim), jnp.float32),
    }


def reference_forward(x_tbc, params, num_heads):
    """Pure-JAX (XLA) reference of the post-LN branch, f32 end to end."""
    T, B, C = x_tbc.shape
    H = num_heads
    dh = C // H
    x = jnp.transpose(x_tbc, (1, 0, 2))                      # (B, T, C)
    scale = 1.0 / math.sqrt(dh)
    q = (x @ params["wq"] + params["bq"]) * scale
    k = x @ params["wk"] + params["bk"]
    v = x @ params["wv"] + params["bv"]
    qh = q.reshape(B, T, H, dh).transpose(0, 2, 1, 3)
    kh = k.reshape(B, T, H, dh).transpose(0, 2, 1, 3)
    vh = v.reshape(B, T, H, dh).transpose(0, 2, 1, 3)
    s = jnp.einsum("bhqd,bhkd->bhqk", qh, kh)
    p = jax.nn.softmax(s, axis=-1)
    ctx = jnp.einsum("bhqk,bhkd->bhqd", p, vh)
    attn = ctx.transpose(0, 2, 1, 3).reshape(B, T, C) @ params["wo"] + params["bo"]
    x1 = _layer_norm(x + attn, params["ln1_g"], params["ln1_b"])
    h = jnp.maximum(x1 @ params["w1"] + params["b1"], 0.0)
    h2 = h @ params["w2"] + params["b2"]
    x2 = _layer_norm(x1 + h2, params["ln2_g"], params["ln2_b"])
    return jnp.transpose(x2, (1, 0, 2)), jnp.transpose(h2, (1, 0, 2))


if __name__ == "__main__":
    # Small config consistent with the module: embed=32, ffn=4*embed=128, heads=4
    T, B, C, F, H = 8, 2, 32, 128, 4
    key = jax.random.PRNGKey(0)
    kx, kp = jax.random.split(key)
    x = jax.random.normal(kx, (T, B, C), jnp.float32)        # (seq, batch, embed)

    params = init_params(kp, C, F)
    prep = prepare_params(params, num_heads=H)               # one-time param prep

    x_out, (attn, layer_result) = stransformer_layer_forward(x, prep, num_heads=H)
    jax.block_until_ready(x_out)
    jax.block_until_ready(layer_result)

    assert x_out.shape == (T, B, C)
    assert layer_result.shape == (T, B, C)
    assert attn is None
    assert bool(jnp.all(jnp.isfinite(x_out)))
    assert bool(jnp.all(jnp.isfinite(layer_result)))

    # Tolerance check vs an f32 XLA reference (bf16 MXU operands + approx
    # reciprocal in the softmax make bit-exactness impossible by design).
    y_ref, lr_ref = reference_forward(x, params, num_heads=H)
    assert bool(jnp.allclose(x_out, y_ref, atol=5e-2, rtol=5e-2)), (
        float(jnp.max(jnp.abs(x_out - y_ref))))
    assert bool(jnp.allclose(layer_result, lr_ref, atol=5e-2, rtol=5e-2)), (
        float(jnp.max(jnp.abs(layer_result - lr_ref))))

    print("KERNEL_OK")
</pallas_src>

<mosaic_0001>
module attributes {stable_mosaic.version = 11 : i64} {
  func.func @_layer_kernel(%arg0: i32, %arg1: i32, %arg2: memref<1x8x32xf32, #tpu.memory_space<vmem>>, %arg3: memref<1x8x32xbf16, #tpu.memory_space<vmem>>, %arg4: memref<32x32xbf16, #tpu.memory_space<vmem>>, %arg5: memref<1x32xf32, #tpu.memory_space<vmem>>, %arg6: memref<32x64xbf16, #tpu.memory_space<vmem>>, %arg7: memref<1x64xf32, #tpu.memory_space<vmem>>, %arg8: memref<32x32xbf16, #tpu.memory_space<vmem>>, %arg9: memref<1x32xf32, #tpu.memory_space<vmem>>, %arg10: memref<1x32xf32, #tpu.memory_space<vmem>>, %arg11: memref<1x32xf32, #tpu.memory_space<vmem>>, %arg12: memref<32x128xbf16, #tpu.memory_space<vmem>>, %arg13: memref<1x128xf32, #tpu.memory_space<vmem>>, %arg14: memref<128x32xbf16, #tpu.memory_space<vmem>>, %arg15: memref<1x32xf32, #tpu.memory_space<vmem>>, %arg16: memref<1x32xf32, #tpu.memory_space<vmem>>, %arg17: memref<1x32xf32, #tpu.memory_space<vmem>>, %arg18: memref<1x8x32xf32, #tpu.memory_space<vmem>>, %arg19: memref<1x8x32xf32, #tpu.memory_space<vmem>>, %arg20: memref<4x8x8xbf16, #tpu.memory_space<vmem>>, %arg21: memref<4x8x8xbf16, #tpu.memory_space<vmem>>) attributes {dimension_semantics = [#tpu.dimension_semantics<parallel>, #tpu.dimension_semantics<arbitrary>], iteration_bounds = array<i64: 2, 1>, scalar_prefetch = 0 : i64, scratch_operands = 2 : i64, tpu.core_type = #tpu.core_type<tc>, window_params = [{transform_indices = @transform_0, window_bounds = array<i64: 1, 8, 32>}, {transform_indices = @transform_1, window_bounds = array<i64: 1, 8, 32>}, {pipeline_mode = #tpu.pipeline_mode<synchronous>, transform_indices = @transform_2, window_bounds = array<i64: 32, 32>}, {pipeline_mode = #tpu.pipeline_mode<synchronous>, transform_indices = @transform_3, window_bounds = array<i64: 1, 32>}, {pipeline_mode = #tpu.pipeline_mode<synchronous>, transform_indices = @transform_4, window_bounds = array<i64: 32, 64>}, {pipeline_mode = #tpu.pipeline_mode<synchronous>, transform_indices = @transform_5, window_bounds = array<i64: 1, 64>}, {pipeline_mode = #tpu.pipeline_mode<synchronous>, transform_indices = @transform_6, window_bounds = array<i64: 32, 32>}, {pipeline_mode = #tpu.pipeline_mode<synchronous>, transform_indices = @transform_7, window_bounds = array<i64: 1, 32>}, {pipeline_mode = #tpu.pipeline_mode<synchronous>, transform_indices = @transform_8, window_bounds = array<i64: 1, 32>}, {pipeline_mode = #tpu.pipeline_mode<synchronous>, transform_indices = @transform_9, window_bounds = array<i64: 1, 32>}, {pipeline_mode = #tpu.pipeline_mode<synchronous>, transform_indices = @transform_10, window_bounds = array<i64: 32, 128>}, {pipeline_mode = #tpu.pipeline_mode<synchronous>, transform_indices = @transform_11, window_bounds = array<i64: 1, 128>}, {pipeline_mode = #tpu.pipeline_mode<synchronous>, transform_indices = @transform_12, window_bounds = array<i64: 128, 32>}, {pipeline_mode = #tpu.pipeline_mode<synchronous>, transform_indices = @transform_13, window_bounds = array<i64: 1, 32>}, {pipeline_mode = #tpu.pipeline_mode<synchronous>, transform_indices = @transform_14, window_bounds = array<i64: 1, 32>}, {pipeline_mode = #tpu.pipeline_mode<synchronous>, transform_indices = @transform_15, window_bounds = array<i64: 1, 32>}, {transform_indices = @transform_16, window_bounds = array<i64: 1, 8, 32>}, {transform_indices = @transform_17, window_bounds = array<i64: 1, 8, 32>}]} {
    %c0 = arith.constant 0 : index
    %c0_0 = arith.constant 0 : index
    %c0_1 = arith.constant 0 : index
    %0 = vector.load %arg2[%c0, %c0_0, %c0_1] : memref<1x8x32xf32, #tpu.memory_space<vmem>>, vector<1x8x32xf32>
    %1 = vector.shape_cast %0 : vector<1x8x32xf32> to vector<8x32xf32>
    %c0_i32 = arith.constant 0 : i32
    %2 = arith.cmpi eq, %arg1, %c0_i32 : i32
    %3 = arith.extui %2 : i1 to i32
    %c0_i32_2 = arith.constant 0 : i32
    %4 = arith.cmpi ne, %3, %c0_i32_2 : i32
    scf.if %4 {
      %c0_58 = arith.constant 0 : index
      %c0_59 = arith.constant 0 : index
      %c0_60 = arith.constant 0 : index
      %105 = vector.load %arg3[%c0_58, %c0_59, %c0_60] : memref<1x8x32xbf16, #tpu.memory_space<vmem>>, vector<1x8x32xbf16>
      %106 = vector.shape_cast %105 : vector<1x8x32xbf16> to vector<8x32xbf16>
      %c0_61 = arith.constant 0 : index
      %c0_62 = arith.constant 0 : index
      %107 = vector.load %arg6[%c0_61, %c0_62] : memref<32x64xbf16, #tpu.memory_space<vmem>>, vector<32x64xbf16>
      %cst_63 = arith.constant dense<0.000000e+00> : vector<8x64xf32>
      %108 = tpu.matmul %106, %107, %cst_63 {dimension_numbers = #tpu.dot_dimension_numbers<[1], [0], [0], [1], [0, 0, 1, 1], [], []>} : vector<8x32xbf16>, vector<32x64xbf16>, vector<8x64xf32> -> vector<8x64xf32>
      %c0_64 = arith.constant 0 : index
      %c0_65 = arith.constant 0 : index
      %109 = vector.load %arg7[%c0_64, %c0_65] : memref<1x64xf32, #tpu.memory_space<vmem>>, vector<1x64xf32>
      %110 = vector.broadcast %109 : vector<1x64xf32> to vector<8x64xf32>
      %111 = arith.addf %108, %110 : vector<8x64xf32>
      %112 = vector.extract_strided_slice %111 {offsets = [0, 0], sizes = [8, 32], strides = [1, 1]} : vector<8x64xf32> to vector<8x32xf32>
      %113 = vector.shape_cast %112 : vector<8x32xf32> to vector<8x4x8xf32>
      %114 = tpu.transpose %113, [1, 0, 2] : vector<8x4x8xf32> -> vector<4x8x8xf32>
      %115 = arith.truncf %114 : vector<4x8x8xf32> to vector<4x8x8xbf16>
      %c0_66 = arith.constant 0 : index
      %c0_67 = arith.constant 0 : index
      %c0_68 = arith.constant 0 : index
      %116 = vector.load %arg20[%c0_66, %c0_67, %c0_68] : memref<4x8x8xbf16, #tpu.memory_space<vmem>>, vector<4x8x8xbf16>
      tpu.vector_store %arg20[%c0_66, %c0_67, %c0_68], %115 {strides = array<i32>} : memref<4x8x8xbf16, #tpu.memory_space<vmem>>, vector<4x8x8xbf16>,
      %117 = vector.extract_strided_slice %111 {offsets = [0, 32], sizes = [8, 32], strides = [1, 1]} : vector<8x64xf32> to vector<8x32xf32>
      %118 = vector.shape_cast %117 : vector<8x32xf32> to vector<8x4x8xf32>
      %119 = tpu.transpose %118, [1, 0, 2] : vector<8x4x8xf32> -> vector<4x8x8xf32>
      %120 = arith.truncf %119 : vector<4x8x8xf32> to vector<4x8x8xbf16>
      %c0_69 = arith.constant 0 : index
      %c0_70 = arith.constant 0 : index
      %c0_71 = arith.constant 0 : index
      %121 = vector.load %arg21[%c0_69, %c0_70, %c0_71] : memref<4x8x8xbf16, #tpu.memory_space<vmem>>, vector<4x8x8xbf16>
      tpu.vector_store %arg21[%c0_69, %c0_70, %c0_71], %120 {strides = array<i32>} : memref<4x8x8xbf16, #tpu.memory_space<vmem>>, vector<4x8x8xbf16>,
    } else {
    }
    %5 = arith.truncf %1 : vector<8x32xf32> to vector<8x32xbf16>
    %c0_3 = arith.constant 0 : index
    %c0_4 = arith.constant 0 : index
    %6 = vector.load %arg4[%c0_3, %c0_4] : memref<32x32xbf16, #tpu.memory_space<vmem>>, vector<32x32xbf16>
    %cst = arith.constant dense<0.000000e+00> : vector<8x32xf32>
    %7 = tpu.matmul %5, %6, %cst {dimension_numbers = #tpu.dot_dimension_numbers<[1], [0], [0], [1], [0, 0, 1, 1], [], []>} : vector<8x32xbf16>, vector<32x32xbf16>, vector<8x32xf32> -> vector<8x32xf32>
    %c0_5 = arith.constant 0 : index
    %c0_6 = arith.constant 0 : index
    %8 = vector.load %arg5[%c0_5, %c0_6] : memref<1x32xf32, #tpu.memory_space<vmem>>, vector<1x32xf32>
    %9 = vector.broadcast %8 : vector<1x32xf32> to vector<8x32xf32>
    %10 = arith.addf %7, %9 : vector<8x32xf32>
    %11 = vector.shape_cast %10 : vector<8x32xf32> to vector<8x4x8xf32>
    %12 = tpu.transpose %11, [1, 0, 2] : vector<8x4x8xf32> -> vector<4x8x8xf32>
    %13 = arith.truncf %12 : vector<4x8x8xf32> to vector<4x8x8xbf16>
    %c0_7 = arith.constant 0 : index
    %c0_8 = arith.constant 0 : index
    %c0_9 = arith.constant 0 : index
    %14 = vector.load %arg20[%c0_7, %c0_8, %c0_9] : memref<4x8x8xbf16, #tpu.memory_space<vmem>>, vector<4x8x8xbf16>
    %c0_10 = arith.constant 0 : index
    %c0_11 = arith.constant 0 : index
    %c0_12 = arith.constant 0 : index
    %15 = vector.load %arg21[%c0_10, %c0_11, %c0_12] : memref<4x8x8xbf16, #tpu.memory_space<vmem>>, vector<4x8x8xbf16>
    "tpu.trace_start"() <{level = 10 : i32, message = "hqd,hkd->hqk"}> : () -> ()
    %cst_13 = arith.constant dense<0.000000e+00> : vector<4x8x8xf32>
    %16 = tpu.matmul %13, %14, %cst_13 {dimension_numbers = #tpu.dot_dimension_numbers<[2], [2], [1], [1], [0, 0, 0, 1, 1, 1], [0], [0]>} : vector<4x8x8xbf16>, vector<4x8x8xbf16>, vector<4x8x8xf32> -> vector<4x8x8xf32>
    "tpu.trace_stop"() : () -> ()
    %cst_14 = arith.constant dense<0xFF800000> : vector<4x8xf32>
    %17 = vector.multi_reduction <maximumf>, %16, %cst_14 [2] : vector<4x8x8xf32> to vector<4x8xf32>
    %18 = vector.shape_cast %17 : vector<4x8xf32> to vector<4x8x1xf32>
    %19 = vector.broadcast %18 : vector<4x8x1xf32> to vector<4x8x8xf32>
    %20 = arith.subf %16, %19 : vector<4x8x8xf32>
    %21 = math.exp %20 : vector<4x8x8xf32>
    %cst_15 = arith.constant dense<0.000000e+00> : vector<4x8xf32>
    %22 = vector.multi_reduction <add>, %21, %cst_15 [2] : vector<4x8x8xf32> to vector<4x8xf32>
    %23 = vector.shape_cast %22 : vector<4x8xf32> to vector<4x8x1xf32>
    %24 = arith.truncf %21 : vector<4x8x8xf32> to vector<4x8x8xbf16>
    "tpu.trace_start"() <{level = 10 : i32, message = "hqk,hkd->hqd"}> : () -> ()
    %cst_16 = arith.constant dense<0.000000e+00> : vector<4x8x8xf32>
    %25 = tpu.matmul %24, %15, %cst_16 {dimension_numbers = #tpu.dot_dimension_numbers<[2], [1], [1], [2], [0, 0, 0, 1, 1, 2], [0], [0]>} : vector<4x8x8xbf16>, vector<4x8x8xbf16>, vector<4x8x8xf32> -> vector<4x8x8xf32>
    "tpu.trace_stop"() : () -> ()
    %26 = tpu.reciprocal %23 {approx = true} : vector<4x8x1xf32> -> vector<4x8x1xf32>
    %27 = vector.broadcast %26 : vector<4x8x1xf32> to vector<4x8x8xf32>
    %28 = arith.mulf %25, %27 : vector<4x8x8xf32>
    %29 = tpu.transpose %28, [1, 0, 2] : vector<4x8x8xf32> -> vector<8x4x8xf32>
    %30 = vector.shape_cast %29 : vector<8x4x8xf32> to vector<8x32xf32>
    %31 = arith.truncf %30 : vector<8x32xf32> to vector<8x32xbf16>
    %c0_17 = arith.constant 0 : index
    %c0_18 = arith.constant 0 : index
    %32 = vector.load %arg8[%c0_17, %c0_18] : memref<32x32xbf16, #tpu.memory_space<vmem>>, vector<32x32xbf16>
    %cst_19 = arith.constant dense<0.000000e+00> : vector<8x32xf32>
    %33 = tpu.matmul %31, %32, %cst_19 {dimension_numbers = #tpu.dot_dimension_numbers<[1], [0], [0], [1], [0, 0, 1, 1], [], []>} : vector<8x32xbf16>, vector<32x32xbf16>, vector<8x32xf32> -> vector<8x32xf32>
    %c0_20 = arith.constant 0 : index
    %c0_21 = arith.constant 0 : index
    %34 = vector.load %arg9[%c0_20, %c0_21] : memref<1x32xf32, #tpu.memory_space<vmem>>, vector<1x32xf32>
    %35 = vector.broadcast %34 : vector<1x32xf32> to vector<8x32xf32>
    %36 = arith.addf %33, %35 : vector<8x32xf32>
    %37 = arith.addf %1, %36 : vector<8x32xf32>
    %c0_22 = arith.constant 0 : index
    %c0_23 = arith.constant 0 : index
    %38 = vector.load %arg10[%c0_22, %c0_23] : memref<1x32xf32, #tpu.memory_space<vmem>>, vector<1x32xf32>
    %c0_24 = arith.constant 0 : index
    %c0_25 = arith.constant 0 : index
    %39 = vector.load %arg11[%c0_24, %c0_25] : memref<1x32xf32, #tpu.memory_space<vmem>>, vector<1x32xf32>
    %cst_26 = arith.constant dense<0.000000e+00> : vector<8xf32>
    %40 = vector.multi_reduction <add>, %37, %cst_26 [1] : vector<8x32xf32> to vector<8xf32>
    %41 = vector.shape_cast %40 : vector<8xf32> to vector<8x1xf32>
    %cst_27 = arith.constant 3.200000e+01 : f32
    %42 = vector.broadcast %cst_27 : f32 to vector<8x1xf32>
    %43 = arith.divf %41, %42 : vector<8x1xf32>
    %44 = vector.broadcast %43 : vector<8x1xf32> to vector<8x32xf32>
    %45 = arith.subf %37, %44 : vector<8x32xf32>
    %46 = arith.mulf %45, %45 : vector<8x32xf32>
    %cst_28 = arith.constant dense<0.000000e+00> : vector<8xf32>
    %47 = vector.multi_reduction <add>, %46, %cst_28 [1] : vector<8x32xf32> to vector<8xf32>
    %48 = vector.shape_cast %47 : vector<8xf32> to vector<8x1xf32>
    %cst_29 = arith.constant 3.200000e+01 : f32
    %49 = vector.broadcast %cst_29 : f32 to vector<8x1xf32>
    %50 = arith.divf %48, %49 : vector<8x1xf32>
    %cst_30 = arith.constant 9.99999974E-6 : f32
    %51 = vector.broadcast %cst_30 : f32 to vector<8x1xf32>
    %52 = arith.addf %50, %51 : vector<8x1xf32>
    %53 = math.rsqrt %52 : vector<8x1xf32>
    %54 = vector.broadcast %53 : vector<8x1xf32> to vector<8x32xf32>
    %55 = arith.mulf %45, %54 : vector<8x32xf32>
    %56 = vector.broadcast %38 : vector<1x32xf32> to vector<8x32xf32>
    %57 = arith.mulf %55, %56 : vector<8x32xf32>
    %58 = vector.broadcast %39 : vector<1x32xf32> to vector<8x32xf32>
    %59 = arith.addf %57, %58 : vector<8x32xf32>
    %60 = arith.truncf %59 : vector<8x32xf32> to vector<8x32xbf16>
    %cst_31 = arith.constant 0.000000e+00 : f32
    %61 = vector.broadcast %cst_31 : f32 to vector<8x32xf32>
    %c0_32 = arith.constant 0 : index
    %c0_33 = arith.constant 0 : index
    %62 = vector.load %arg12[%c0_32, %c0_33] : memref<32x128xbf16, #tpu.memory_space<vmem>>, vector<32x128xbf16>
    %cst_34 = arith.constant dense<0.000000e+00> : vector<8x128xf32>
    %63 = tpu.matmul %60, %62, %cst_34 {dimension_numbers = #tpu.dot_dimension_numbers<[1], [0], [0], [1], [0, 0, 1, 1], [], []>} : vector<8x32xbf16>, vector<32x128xbf16>, vector<8x128xf32> -> vector<8x128xf32>
    %c0_35 = arith.constant 0 : index
    %c0_36 = arith.constant 0 : index
    %64 = vector.load %arg13[%c0_35, %c0_36] : memref<1x128xf32, #tpu.memory_space<vmem>>, vector<1x128xf32>
    %65 = vector.broadcast %64 : vector<1x128xf32> to vector<8x128xf32>
    %66 = arith.addf %63, %65 : vector<8x128xf32>
    %cst_37 = arith.constant 0.000000e+00 : f32
    %67 = vector.broadcast %cst_37 : f32 to vector<8x128xf32>
    %68 = arith.maximumf %66, %67 : vector<8x128xf32>
    %69 = arith.truncf %68 : vector<8x128xf32> to vector<8x128xbf16>
    %c0_38 = arith.constant 0 : index
    %c0_39 = arith.constant 0 : index
    %70 = vector.load %arg14[%c0_38, %c0_39] : memref<128x32xbf16, #tpu.memory_space<vmem>>, vector<128x32xbf16>
    %cst_40 = arith.constant dense<0.000000e+00> : vector<8x32xf32>
    %71 = tpu.matmul %69, %70, %cst_40 {dimension_numbers = #tpu.dot_dimension_numbers<[1], [0], [0], [1], [0, 0, 1, 1], [], []>} : vector<8x128xbf16>, vector<128x32xbf16>, vector<8x32xf32> -> vector<8x32xf32>
    %72 = arith.addf %61, %71 : vector<8x32xf32>
    %c0_41 = arith.constant 0 : index
    %c0_42 = arith.constant 0 : index
    %73 = vector.load %arg15[%c0_41, %c0_42] : memref<1x32xf32, #tpu.memory_space<vmem>>, vector<1x32xf32>
    %74 = vector.broadcast %73 : vector<1x32xf32> to vector<8x32xf32>
    %75 = arith.addf %72, %74 : vector<8x32xf32>
    %c0_43 = arith.constant 0 : index
    %c0_44 = arith.constant 0 : index
    %c0_45 = arith.constant 0 : index
    %76 = vector.load %arg19[%c0_43, %c0_44, %c0_45] : memref<1x8x32xf32, #tpu.memory_space<vmem>>, vector<1x8x32xf32>
    %77 = vector.shape_cast %76 : vector<1x8x32xf32> to vector<8x32xf32>
    %78 = vector.shape_cast %75 : vector<8x32xf32> to vector<1x8x32xf32>
    tpu.vector_store %arg19[%c0_43, %c0_44, %c0_45], %78 {strides = array<i32>} : memref<1x8x32xf32, #tpu.memory_space<vmem>>, vector<1x8x32xf32>,
    %79 = arith.addf %59, %75 : vector<8x32xf32>
    %c0_46 = arith.constant 0 : index
    %c0_47 = arith.constant 0 : index
    %80 = vector.load %arg16[%c0_46, %c0_47] : memref<1x32xf32, #tpu.memory_space<vmem>>, vector<1x32xf32>
    %c0_48 = arith.constant 0 : index
    %c0_49 = arith.constant 0 : index
    %81 = vector.load %arg17[%c0_48, %c0_49] : memref<1x32xf32, #tpu.memory_space<vmem>>, vector<1x32xf32>
    %cst_50 = arith.constant dense<0.000000e+00> : vector<8xf32>
    %82 = vector.multi_reduction <add>, %79, %cst_50 [1] : vector<8x32xf32> to vector<8xf32>
    %83 = vector.shape_cast %82 : vector<8xf32> to vector<8x1xf32>
    %cst_51 = arith.constant 3.200000e+01 : f32
    %84 = vector.broadcast %cst_51 : f32 to vector<8x1xf32>
    %85 = arith.divf %83, %84 : vector<8x1xf32>
    %86 = vector.broadcast %85 : vector<8x1xf32> to vector<8x32xf32>
    %87 = arith.subf %79, %86 : vector<8x32xf32>
    %88 = arith.mulf %87, %87 : vector<8x32xf32>
    %cst_52 = arith.constant dense<0.000000e+00> : vector<8xf32>
    %89 = vector.multi_reduction <add>, %88, %cst_52 [1] : vector<8x32xf32> to vector<8xf32>
    %90 = vector.shape_cast %89 : vector<8xf32> to vector<8x1xf32>
    %cst_53 = arith.constant 3.200000e+01 : f32
    %91 = vector.broadcast %cst_53 : f32 to vector<8x1xf32>
    %92 = arith.divf %90, %91 : vector<8x1xf32>
    %cst_54 = arith.constant 9.99999974E-6 : f32
    %93 = vector.broadcast %cst_54 : f32 to vector<8x1xf32>
    %94 = arith.addf %92, %93 : vector<8x1xf32>
    %95 = math.rsqrt %94 : vector<8x1xf32>
    %96 = vector.broadcast %95 : vector<8x1xf32> to vector<8x32xf32>
    %97 = arith.mulf %87, %96 : vector<8x32xf32>
    %98 = vector.broadcast %80 : vector<1x32xf32> to vector<8x32xf32>
    %99 = arith.mulf %97, %98 : vector<8x32xf32>
    %100 = vector.broadcast %81 : vector<1x32xf32> to vector<8x32xf32>
    %101 = arith.addf %99, %100 : vector<8x32xf32>
    %c0_55 = arith.constant 0 : index
    %c0_56 = arith.constant 0 : index
    %c0_57 = arith.constant 0 : index
    %102 = vector.load %arg18[%c0_55, %c0_56, %c0_57] : memref<1x8x32xf32, #tpu.memory_space<vmem>>, vector<1x8x32xf32>
    %103 = vector.shape_cast %102 : vector<1x8x32xf32> to vector<8x32xf32>
    %104 = vector.shape_cast %101 : vector<8x32xf32> to vector<1x8x32xf32>
    tpu.vector_store %arg18[%c0_55, %c0_56, %c0_57], %104 {strides = array<i32>} : memref<1x8x32xf32, #tpu.memory_space<vmem>>, vector<1x8x32xf32>,
    return
  }
  func.func @transform_0(%arg0: i32, %arg1: i32) -> (i32, i32, i32) {
    %c0_i32 = arith.constant 0 : i32
    %c0_i32_0 = arith.constant 0 : i32
    return %arg0, %arg1, %c0_i32 : i32, i32, i32
  }
  func.func @transform_1(%arg0: i32, %arg1: i32) -> (i32, i32, i32) {
    %c0_i32 = arith.constant 0 : i32
    %c0_i32_0 = arith.constant 0 : i32
    %c0_i32_1 = arith.constant 0 : i32
    return %arg0, %c0_i32, %c0_i32_0 : i32, i32, i32
  }
  func.func @transform_2(%arg0: i32, %arg1: i32) -> (i32, i32) {
    %c0_i32 = arith.constant 0 : i32
    %c0_i32_0 = arith.constant 0 : i32
    %c0_i32_1 = arith.constant 0 : i32
    return %c0_i32, %c0_i32_0 : i32, i32
  }
  func.func @transform_3(%arg0: i32, %arg1: i32) -> (i32, i32) {
    %c0_i32 = arith.constant 0 : i32
    %c0_i32_0 = arith.constant 0 : i32
    %c0_i32_1 = arith.constant 0 : i32
    return %c0_i32, %c0_i32_0 : i32, i32
  }
  func.func @transform_4(%arg0: i32, %arg1: i32) -> (i32, i32) {
    %c0_i32 = arith.constant 0 : i32
    %c0_i32_0 = arith.constant 0 : i32
    %c0_i32_1 = arith.constant 0 : i32
    return %c0_i32, %c0_i32_0 : i32, i32
  }
  func.func @transform_5(%arg0: i32, %arg1: i32) -> (i32, i32) {
    %c0_i32 = arith.constant 0 : i32
    %c0_i32_0 = arith.constant 0 : i32
    %c0_i32_1 = arith.constant 0 : i32
    return %c0_i32, %c0_i32_0 : i32, i32
  }
  func.func @transform_6(%arg0: i32, %arg1: i32) -> (i32, i32) {
    %c0_i32 = arith.constant 0 : i32
    %c0_i32_0 = arith.constant 0 : i32
    %c0_i32_1 = arith.constant 0 : i32
    return %c0_i32, %c0_i32_0 : i32, i32
  }
  func.func @transform_7(%arg0: i32, %arg1: i32) -> (i32, i32) {
    %c0_i32 = arith.constant 0 : i32
    %c0_i32_0 = arith.constant 0 : i32
    %c0_i32_1 = arith.constant 0 : i32
    return %c0_i32, %c0_i32_0 : i32, i32
  }
  func.func @transform_8(%arg0: i32, %arg1: i32) -> (i32, i32) {
    %c0_i32 = arith.constant 0 : i32
    %c0_i32_0 = arith.constant 0 : i32
    %c0_i32_1 = arith.constant 0 : i32
    return %c0_i32, %c0_i32_0 : i32, i32
  }
  func.func @transform_9(%arg0: i32, %arg1: i32) -> (i32, i32) {
    %c0_i32 = arith.constant 0 : i32
    %c0_i32_0 = arith.constant 0 : i32
    %c0_i32_1 = arith.constant 0 : i32
    return %c0_i32, %c0_i32_0 : i32, i32
  }
  func.func @transform_10(%arg0: i32, %arg1: i32) -> (i32, i32) {
    %c0_i32 = arith.constant 0 : i32
    %c0_i32_0 = arith.constant 0 : i32
    %c0_i32_1 = arith.constant 0 : i32
    return %c0_i32, %c0_i32_0 : i32, i32
  }
  func.func @transform_11(%arg0: i32, %arg1: i32) -> (i32, i32) {
    %c0_i32 = arith.constant 0 : i32
    %c0_i32_0 = arith.constant 0 : i32
    %c0_i32_1 = arith.constant 0 : i32
    return %c0_i32, %c0_i32_0 : i32, i32
  }
  func.func @transform_12(%arg0: i32, %arg1: i32) -> (i32, i32) {
    %c0_i32 = arith.constant 0 : i32
    %c0_i32_0 = arith.constant 0 : i32
    %c0_i32_1 = arith.constant 0 : i32
    return %c0_i32, %c0_i32_0 : i32, i32
  }
  func.func @transform_13(%arg0: i32, %arg1: i32) -> (i32, i32) {
    %c0_i32 = arith.constant 0 : i32
    %c0_i32_0 = arith.constant 0 : i32
    %c0_i32_1 = arith.constant 0 : i32
    return %c0_i32, %c0_i32_0 : i32, i32
  }
  func.func @transform_14(%arg0: i32, %arg1: i32) -> (i32, i32) {
    %c0_i32 = arith.constant 0 : i32
    %c0_i32_0 = arith.constant 0 : i32
    %c0_i32_1 = arith.constant 0 : i32
    return %c0_i32, %c0_i32_0 : i32, i32
  }
  func.func @transform_15(%arg0: i32, %arg1: i32) -> (i32, i32) {
    %c0_i32 = arith.constant 0 : i32
    %c0_i32_0 = arith.constant 0 : i32
    %c0_i32_1 = arith.constant 0 : i32
    return %c0_i32, %c0_i32_0 : i32, i32
  }
  func.func @transform_16(%arg0: i32, %arg1: i32) -> (i32, i32, i32) {
    %c0_i32 = arith.constant 0 : i32
    %c0_i32_0 = arith.constant 0 : i32
    return %arg0, %arg1, %c0_i32 : i32, i32, i32
  }
  func.func @transform_17(%arg0: i32, %arg1: i32) -> (i32, i32, i32) {
    %c0_i32 = arith.constant 0 : i32
    %c0_i32_0 = arith.constant 0 : i32
    return %arg0, %arg1, %c0_i32 : i32, i32, i32
  }
}

module attributes {stable_mosaic.version = 11 : i64} {
  func.func @_layer_kernel(%arg0: i32, %arg1: i32, %arg2: memref<1x8x32xf32, #tpu.memory_space<vmem>>, %arg3: memref<1x8x32xbf16, #tpu.memory_space<vmem>>, %arg4: memref<32x32xbf16, #tpu.memory_space<vmem>>, %arg5: memref<1x32xf32, #tpu.memory_space<vmem>>, %arg6: memref<32x64xbf16, #tpu.memory_space<vmem>>, %arg7: memref<1x64xf32, #tpu.memory_space<vmem>>, %arg8: memref<32x32xbf16, #tpu.memory_space<vmem>>, %arg9: memref<1x32xf32, #tpu.memory_space<vmem>>, %arg10: memref<1x32xf32, #tpu.memory_space<vmem>>, %arg11: memref<1x32xf32, #tpu.memory_space<vmem>>, %arg12: memref<32x128xbf16, #tpu.memory_space<vmem>>, %arg13: memref<1x128xf32, #tpu.memory_space<vmem>>, %arg14: memref<128x32xbf16, #tpu.memory_space<vmem>>, %arg15: memref<1x32xf32, #tpu.memory_space<vmem>>, %arg16: memref<1x32xf32, #tpu.memory_space<vmem>>, %arg17: memref<1x32xf32, #tpu.memory_space<vmem>>, %arg18: memref<1x8x32xf32, #tpu.memory_space<vmem>>, %arg19: memref<1x8x32xf32, #tpu.memory_space<vmem>>, %arg20: memref<4x8x8xbf16, #tpu.memory_space<vmem>>, %arg21: memref<4x8x8xbf16, #tpu.memory_space<vmem>>) attributes {dimension_semantics = [#tpu.dimension_semantics<parallel>, #tpu.dimension_semantics<arbitrary>], iteration_bounds = array<i64: 2, 1>, scalar_prefetch = 0 : i64, scratch_operands = 2 : i64, tpu.core_type = #tpu.core_type<tc>, window_params = [{transform_indices = @transform_0, window_bounds = array<i64: 1, 8, 32>}, {transform_indices = @transform_1, window_bounds = array<i64: 1, 8, 32>}, {pipeline_mode = #tpu.pipeline_mode<synchronous>, transform_indices = @transform_2, window_bounds = array<i64: 32, 32>}, {pipeline_mode = #tpu.pipeline_mode<synchronous>, transform_indices = @transform_3, window_bounds = array<i64: 1, 32>}, {pipeline_mode = #tpu.pipeline_mode<synchronous>, transform_indices = @transform_4, window_bounds = array<i64: 32, 64>}, {pipeline_mode = #tpu.pipeline_mode<synchronous>, transform_indices = @transform_5, window_bounds = array<i64: 1, 64>}, {pipeline_mode = #tpu.pipeline_mode<synchronous>, transform_indices = @transform_6, window_bounds = array<i64: 32, 32>}, {pipeline_mode = #tpu.pipeline_mode<synchronous>, transform_indices = @transform_7, window_bounds = array<i64: 1, 32>}, {pipeline_mode = #tpu.pipeline_mode<synchronous>, transform_indices = @transform_8, window_bounds = array<i64: 1, 32>}, {pipeline_mode = #tpu.pipeline_mode<synchronous>, transform_indices = @transform_9, window_bounds = array<i64: 1, 32>}, {pipeline_mode = #tpu.pipeline_mode<synchronous>, transform_indices = @transform_10, window_bounds = array<i64: 32, 128>}, {pipeline_mode = #tpu.pipeline_mode<synchronous>, transform_indices = @transform_11, window_bounds = array<i64: 1, 128>}, {pipeline_mode = #tpu.pipeline_mode<synchronous>, transform_indices = @transform_12, window_bounds = array<i64: 128, 32>}, {pipeline_mode = #tpu.pipeline_mode<synchronous>, transform_indices = @transform_13, window_bounds = array<i64: 1, 32>}, {pipeline_mode = #tpu.pipeline_mode<synchronous>, transform_indices = @transform_14, window_bounds = array<i64: 1, 32>}, {pipeline_mode = #tpu.pipeline_mode<synchronous>, transform_indices = @transform_15, window_bounds = array<i64: 1, 32>}, {transform_indices = @transform_16, window_bounds = array<i64: 1, 8, 32>}, {transform_indices = @transform_17, window_bounds = array<i64: 1, 8, 32>}]} {
    %c0 = arith.constant 0 : index
    %c0_0 = arith.constant 0 : index
    %c0_1 = arith.constant 0 : index
    %0 = vector.load %arg2[%c0, %c0_0, %c0_1] : memref<1x8x32xf32, #tpu.memory_space<vmem>>, vector<1x8x32xf32>
    %1 = vector.shape_cast %0 : vector<1x8x32xf32> to vector<8x32xf32>
    %c0_i32 = arith.constant 0 : i32
    %2 = arith.cmpi eq, %arg1, %c0_i32 : i32
    %3 = arith.extui %2 : i1 to i32
    %c0_i32_2 = arith.constant 0 : i32
    %4 = arith.cmpi ne, %3, %c0_i32_2 : i32
    scf.if %4 {
      %c0_58 = arith.constant 0 : index
      %c0_59 = arith.constant 0 : index
      %c0_60 = arith.constant 0 : index
      %105 = vector.load %arg3[%c0_58, %c0_59, %c0_60] : memref<1x8x32xbf16, #tpu.memory_space<vmem>>, vector<1x8x32xbf16>
      %106 = vector.shape_cast %105 : vector<1x8x32xbf16> to vector<8x32xbf16>
      %c0_61 = arith.constant 0 : index
      %c0_62 = arith.constant 0 : index
      %107 = vector.load %arg6[%c0_61, %c0_62] : memref<32x64xbf16, #tpu.memory_space<vmem>>, vector<32x64xbf16>
      %cst_63 = arith.constant dense<0.000000e+00> : vector<8x64xf32>
      %108 = tpu.matmul %106, %107, %cst_63 {dimension_numbers = #tpu.dot_dimension_numbers<[1], [0], [0], [1], [0, 0, 1, 1], [], []>} : vector<8x32xbf16>, vector<32x64xbf16>, vector<8x64xf32> -> vector<8x64xf32>
      %c0_64 = arith.constant 0 : index
      %c0_65 = arith.constant 0 : index
      %109 = vector.load %arg7[%c0_64, %c0_65] : memref<1x64xf32, #tpu.memory_space<vmem>>, vector<1x64xf32>
      %110 = vector.broadcast %109 : vector<1x64xf32> to vector<8x64xf32>
      %111 = arith.addf %108, %110 : vector<8x64xf32>
      %112 = vector.extract_strided_slice %111 {offsets = [0, 0], sizes = [8, 32], strides = [1, 1]} : vector<8x64xf32> to vector<8x32xf32>
      %113 = vector.shape_cast %112 : vector<8x32xf32> to vector<8x4x8xf32>
      %114 = tpu.transpose %113, [1, 0, 2] : vector<8x4x8xf32> -> vector<4x8x8xf32>
      %115 = arith.truncf %114 : vector<4x8x8xf32> to vector<4x8x8xbf16>
      %c0_66 = arith.constant 0 : index
      %c0_67 = arith.constant 0 : index
      %c0_68 = arith.constant 0 : index
      %116 = vector.load %arg20[%c0_66, %c0_67, %c0_68] : memref<4x8x8xbf16, #tpu.memory_space<vmem>>, vector<4x8x8xbf16>
      tpu.vector_store %arg20[%c0_66, %c0_67, %c0_68], %115 {strides = array<i32>} : memref<4x8x8xbf16, #tpu.memory_space<vmem>>, vector<4x8x8xbf16>,
      %117 = vector.extract_strided_slice %111 {offsets = [0, 32], sizes = [8, 32], strides = [1, 1]} : vector<8x64xf32> to vector<8x32xf32>
      %118 = vector.shape_cast %117 : vector<8x32xf32> to vector<8x4x8xf32>
      %119 = tpu.transpose %118, [1, 0, 2] : vector<8x4x8xf32> -> vector<4x8x8xf32>
      %120 = arith.truncf %119 : vector<4x8x8xf32> to vector<4x8x8xbf16>
      %c0_69 = arith.constant 0 : index
      %c0_70 = arith.constant 0 : index
      %c0_71 = arith.constant 0 : index
      %121 = vector.load %arg21[%c0_69, %c0_70, %c0_71] : memref<4x8x8xbf16, #tpu.memory_space<vmem>>, vector<4x8x8xbf16>
      tpu.vector_store %arg21[%c0_69, %c0_70, %c0_71], %120 {strides = array<i32>} : memref<4x8x8xbf16, #tpu.memory_space<vmem>>, vector<4x8x8xbf16>,
    } else {
    }
    %5 = arith.truncf %1 : vector<8x32xf32> to vector<8x32xbf16>
    %c0_3 = arith.constant 0 : index
    %c0_4 = arith.constant 0 : index
    %6 = vector.load %arg4[%c0_3, %c0_4] : memref<32x32xbf16, #tpu.memory_space<vmem>>, vector<32x32xbf16>
    %cst = arith.constant dense<0.000000e+00> : vector<8x32xf32>
    %7 = tpu.matmul %5, %6, %cst {dimension_numbers = #tpu.dot_dimension_numbers<[1], [0], [0], [1], [0, 0, 1, 1], [], []>} : vector<8x32xbf16>, vector<32x32xbf16>, vector<8x32xf32> -> vector<8x32xf32>
    %c0_5 = arith.constant 0 : index
    %c0_6 = arith.constant 0 : index
    %8 = vector.load %arg5[%c0_5, %c0_6] : memref<1x32xf32, #tpu.memory_space<vmem>>, vector<1x32xf32>
    %9 = vector.broadcast %8 : vector<1x32xf32> to vector<8x32xf32>
    %10 = arith.addf %7, %9 : vector<8x32xf32>
    %11 = vector.shape_cast %10 : vector<8x32xf32> to vector<8x4x8xf32>
    %12 = tpu.transpose %11, [1, 0, 2] : vector<8x4x8xf32> -> vector<4x8x8xf32>
    %13 = arith.truncf %12 : vector<4x8x8xf32> to vector<4x8x8xbf16>
    %c0_7 = arith.constant 0 : index
    %c0_8 = arith.constant 0 : index
    %c0_9 = arith.constant 0 : index
    %14 = vector.load %arg20[%c0_7, %c0_8, %c0_9] : memref<4x8x8xbf16, #tpu.memory_space<vmem>>, vector<4x8x8xbf16>
    %c0_10 = arith.constant 0 : index
    %c0_11 = arith.constant 0 : index
    %c0_12 = arith.constant 0 : index
    %15 = vector.load %arg21[%c0_10, %c0_11, %c0_12] : memref<4x8x8xbf16, #tpu.memory_space<vmem>>, vector<4x8x8xbf16>
    "tpu.trace_start"() <{level = 10 : i32, message = "hqd,hkd->hqk"}> : () -> ()
    %cst_13 = arith.constant dense<0.000000e+00> : vector<4x8x8xf32>
    %16 = tpu.matmul %13, %14, %cst_13 {dimension_numbers = #tpu.dot_dimension_numbers<[2], [2], [1], [1], [0, 0, 0, 1, 1, 1], [0], [0]>} : vector<4x8x8xbf16>, vector<4x8x8xbf16>, vector<4x8x8xf32> -> vector<4x8x8xf32>
    "tpu.trace_stop"() : () -> ()
    %cst_14 = arith.constant dense<0xFF800000> : vector<4x8xf32>
    %17 = vector.multi_reduction <maximumf>, %16, %cst_14 [2] : vector<4x8x8xf32> to vector<4x8xf32>
    %18 = vector.shape_cast %17 : vector<4x8xf32> to vector<4x8x1xf32>
    %19 = vector.broadcast %18 : vector<4x8x1xf32> to vector<4x8x8xf32>
    %20 = arith.subf %16, %19 : vector<4x8x8xf32>
    %21 = math.exp %20 : vector<4x8x8xf32>
    %cst_15 = arith.constant dense<0.000000e+00> : vector<4x8xf32>
    %22 = vector.multi_reduction <add>, %21, %cst_15 [2] : vector<4x8x8xf32> to vector<4x8xf32>
    %23 = vector.shape_cast %22 : vector<4x8xf32> to vector<4x8x1xf32>
    %24 = arith.truncf %21 : vector<4x8x8xf32> to vector<4x8x8xbf16>
    "tpu.trace_start"() <{level = 10 : i32, message = "hqk,hkd->hqd"}> : () -> ()
    %cst_16 = arith.constant dense<0.000000e+00> : vector<4x8x8xf32>
    %25 = tpu.matmul %24, %15, %cst_16 {dimension_numbers = #tpu.dot_dimension_numbers<[2], [1], [1], [2], [0, 0, 0, 1, 1, 2], [0], [0]>} : vector<4x8x8xbf16>, vector<4x8x8xbf16>, vector<4x8x8xf32> -> vector<4x8x8xf32>
    "tpu.trace_stop"() : () -> ()
    %26 = tpu.reciprocal %23 {approx = true} : vector<4x8x1xf32> -> vector<4x8x1xf32>
    %27 = vector.broadcast %26 : vector<4x8x1xf32> to vector<4x8x8xf32>
    %28 = arith.mulf %25, %27 : vector<4x8x8xf32>
    %29 = tpu.transpose %28, [1, 0, 2] : vector<4x8x8xf32> -> vector<8x4x8xf32>
    %30 = vector.shape_cast %29 : vector<8x4x8xf32> to vector<8x32xf32>
    %31 = arith.truncf %30 : vector<8x32xf32> to vector<8x32xbf16>
    %c0_17 = arith.constant 0 : index
    %c0_18 = arith.constant 0 : index
    %32 = vector.load %arg8[%c0_17, %c0_18] : memref<32x32xbf16, #tpu.memory_space<vmem>>, vector<32x32xbf16>
    %cst_19 = arith.constant dense<0.000000e+00> : vector<8x32xf32>
    %33 = tpu.matmul %31, %32, %cst_19 {dimension_numbers = #tpu.dot_dimension_numbers<[1], [0], [0], [1], [0, 0, 1, 1], [], []>} : vector<8x32xbf16>, vector<32x32xbf16>, vector<8x32xf32> -> vector<8x32xf32>
    %c0_20 = arith.constant 0 : index
    %c0_21 = arith.constant 0 : index
    %34 = vector.load %arg9[%c0_20, %c0_21] : memref<1x32xf32, #tpu.memory_space<vmem>>, vector<1x32xf32>
    %35 = vector.broadcast %34 : vector<1x32xf32> to vector<8x32xf32>
    %36 = arith.addf %33, %35 : vector<8x32xf32>
    %37 = arith.addf %1, %36 : vector<8x32xf32>
    %c0_22 = arith.constant 0 : index
    %c0_23 = arith.constant 0 : index
    %38 = vector.load %arg10[%c0_22, %c0_23] : memref<1x32xf32, #tpu.memory_space<vmem>>, vector<1x32xf32>
    %c0_24 = arith.constant 0 : index
    %c0_25 = arith.constant 0 : index
    %39 = vector.load %arg11[%c0_24, %c0_25] : memref<1x32xf32, #tpu.memory_space<vmem>>, vector<1x32xf32>
    %cst_26 = arith.constant dense<0.000000e+00> : vector<8xf32>
    %40 = vector.multi_reduction <add>, %37, %cst_26 [1] : vector<8x32xf32> to vector<8xf32>
    %41 = vector.shape_cast %40 : vector<8xf32> to vector<8x1xf32>
    %cst_27 = arith.constant 3.200000e+01 : f32
    %42 = vector.broadcast %cst_27 : f32 to vector<8x1xf32>
    %43 = arith.divf %41, %42 : vector<8x1xf32>
    %44 = vector.broadcast %43 : vector<8x1xf32> to vector<8x32xf32>
    %45 = arith.subf %37, %44 : vector<8x32xf32>
    %46 = arith.mulf %45, %45 : vector<8x32xf32>
    %cst_28 = arith.constant dense<0.000000e+00> : vector<8xf32>
    %47 = vector.multi_reduction <add>, %46, %cst_28 [1] : vector<8x32xf32> to vector<8xf32>
    %48 = vector.shape_cast %47 : vector<8xf32> to vector<8x1xf32>
    %cst_29 = arith.constant 3.200000e+01 : f32
    %49 = vector.broadcast %cst_29 : f32 to vector<8x1xf32>
    %50 = arith.divf %48, %49 : vector<8x1xf32>
    %cst_30 = arith.constant 9.99999974E-6 : f32
    %51 = vector.broadcast %cst_30 : f32 to vector<8x1xf32>
    %52 = arith.addf %50, %51 : vector<8x1xf32>
    %53 = math.rsqrt %52 : vector<8x1xf32>
    %54 = vector.broadcast %53 : vector<8x1xf32> to vector<8x32xf32>
    %55 = arith.mulf %45, %54 : vector<8x32xf32>
    %56 = vector.broadcast %38 : vector<1x32xf32> to vector<8x32xf32>
    %57 = arith.mulf %55, %56 : vector<8x32xf32>
    %58 = vector.broadcast %39 : vector<1x32xf32> to vector<8x32xf32>
    %59 = arith.addf %57, %58 : vector<8x32xf32>
    %60 = arith.truncf %59 : vector<8x32xf32> to vector<8x32xbf16>
    %cst_31 = arith.constant 0.000000e+00 : f32
    %61 = vector.broadcast %cst_31 : f32 to vector<8x32xf32>
    %c0_32 = arith.constant 0 : index
    %c0_33 = arith.constant 0 : index
    %62 = vector.load %arg12[%c0_32, %c0_33] : memref<32x128xbf16, #tpu.memory_space<vmem>>, vector<32x128xbf16>
    %cst_34 = arith.constant dense<0.000000e+00> : vector<8x128xf32>
    %63 = tpu.matmul %60, %62, %cst_34 {dimension_numbers = #tpu.dot_dimension_numbers<[1], [0], [0], [1], [0, 0, 1, 1], [], []>} : vector<8x32xbf16>, vector<32x128xbf16>, vector<8x128xf32> -> vector<8x128xf32>
    %c0_35 = arith.constant 0 : index
    %c0_36 = arith.constant 0 : index
    %64 = vector.load %arg13[%c0_35, %c0_36] : memref<1x128xf32, #tpu.memory_space<vmem>>, vector<1x128xf32>
    %65 = vector.broadcast %64 : vector<1x128xf32> to vector<8x128xf32>
    %66 = arith.addf %63, %65 : vector<8x128xf32>
    %cst_37 = arith.constant 0.000000e+00 : f32
    %67 = vector.broadcast %cst_37 : f32 to vector<8x128xf32>
    %68 = arith.maximumf %66, %67 : vector<8x128xf32>
    %69 = arith.truncf %68 : vector<8x128xf32> to vector<8x128xbf16>
    %c0_38 = arith.constant 0 : index
    %c0_39 = arith.constant 0 : index
    %70 = vector.load %arg14[%c0_38, %c0_39] : memref<128x32xbf16, #tpu.memory_space<vmem>>, vector<128x32xbf16>
    %cst_40 = arith.constant dense<0.000000e+00> : vector<8x32xf32>
    %71 = tpu.matmul %69, %70, %cst_40 {dimension_numbers = #tpu.dot_dimension_numbers<[1], [0], [0], [1], [0, 0, 1, 1], [], []>} : vector<8x128xbf16>, vector<128x32xbf16>, vector<8x32xf32> -> vector<8x32xf32>
    %72 = arith.addf %61, %71 : vector<8x32xf32>
    %c0_41 = arith.constant 0 : index
    %c0_42 = arith.constant 0 : index
    %73 = vector.load %arg15[%c0_41, %c0_42] : memref<1x32xf32, #tpu.memory_space<vmem>>, vector<1x32xf32>
    %74 = vector.broadcast %73 : vector<1x32xf32> to vector<8x32xf32>
    %75 = arith.addf %72, %74 : vector<8x32xf32>
    %c0_43 = arith.constant 0 : index
    %c0_44 = arith.constant 0 : index
    %c0_45 = arith.constant 0 : index
    %76 = vector.load %arg19[%c0_43, %c0_44, %c0_45] : memref<1x8x32xf32, #tpu.memory_space<vmem>>, vector<1x8x32xf32>
    %77 = vector.shape_cast %76 : vector<1x8x32xf32> to vector<8x32xf32>
    %78 = vector.shape_cast %75 : vector<8x32xf32> to vector<1x8x32xf32>
    tpu.vector_store %arg19[%c0_43, %c0_44, %c0_45], %78 {strides = array<i32>} : memref<1x8x32xf32, #tpu.memory_space<vmem>>, vector<1x8x32xf32>,
    %79 = arith.addf %59, %75 : vector<8x32xf32>
    %c0_46 = arith.constant 0 : index
    %c0_47 = arith.constant 0 : index
    %80 = vector.load %arg16[%c0_46, %c0_47] : memref<1x32xf32, #tpu.memory_space<vmem>>, vector<1x32xf32>
    %c0_48 = arith.constant 0 : index
    %c0_49 = arith.constant 0 : index
    %81 = vector.load %arg17[%c0_48, %c0_49] : memref<1x32xf32, #tpu.memory_space<vmem>>, vector<1x32xf32>
    %cst_50 = arith.constant dense<0.000000e+00> : vector<8xf32>
    %82 = vector.multi_reduction <add>, %79, %cst_50 [1] : vector<8x32xf32> to vector<8xf32>
    %83 = vector.shape_cast %82 : vector<8xf32> to vector<8x1xf32>
    %cst_51 = arith.constant 3.200000e+01 : f32
    %84 = vector.broadcast %cst_51 : f32 to vector<8x1xf32>
    %85 = arith.divf %83, %84 : vector<8x1xf32>
    %86 = vector.broadcast %85 : vector<8x1xf32> to vector<8x32xf32>
    %87 = arith.subf %79, %86 : vector<8x32xf32>
    %88 = arith.mulf %87, %87 : vector<8x32xf32>
    %cst_52 = arith.constant dense<0.000000e+00> : vector<8xf32>
    %89 = vector.multi_reduction <add>, %88, %cst_52 [1] : vector<8x32xf32> to vector<8xf32>
    %90 = vector.shape_cast %89 : vector<8xf32> to vector<8x1xf32>
    %cst_53 = arith.constant 3.200000e+01 : f32
    %91 = vector.broadcast %cst_53 : f32 to vector<8x1xf32>
    %92 = arith.divf %90, %91 : vector<8x1xf32>
    %cst_54 = arith.constant 9.99999974E-6 : f32
    %93 = vector.broadcast %cst_54 : f32 to vector<8x1xf32>
    %94 = arith.addf %92, %93 : vector<8x1xf32>
    %95 = math.rsqrt %94 : vector<8x1xf32>
    %96 = vector.broadcast %95 : vector<8x1xf32> to vector<8x32xf32>
    %97 = arith.mulf %87, %96 : vector<8x32xf32>
    %98 = vector.broadcast %80 : vector<1x32xf32> to vector<8x32xf32>
    %99 = arith.mulf %97, %98 : vector<8x32xf32>
    %100 = vector.broadcast %81 : vector<1x32xf32> to vector<8x32xf32>
    %101 = arith.addf %99, %100 : vector<8x32xf32>
    %c0_55 = arith.constant 0 : index
    %c0_56 = arith.constant 0 : index
    %c0_57 = arith.constant 0 : index
    %102 = vector.load %arg18[%c0_55, %c0_56, %c0_57] : memref<1x8x32xf32, #tpu.memory_space<vmem>>, vector<1x8x32xf32>
    %103 = vector.shape_cast %102 : vector<1x8x32xf32> to vector<8x32xf32>
    %104 = vector.shape_cast %101 : vector<8x32xf32> to vector<1x8x32xf32>
    tpu.vector_store %arg18[%c0_55, %c0_56, %c0_57], %104 {strides = array<i32>} : memref<1x8x32xf32, #tpu.memory_space<vmem>>, vector<1x8x32xf32>,
    return
  }
  func.func @transform_0(%arg0: i32, %arg1: i32) -> (i32, i32, i32) {
    %c0_i32 = arith.constant 0 : i32
    %c0_i32_0 = arith.constant 0 : i32
    return %arg0, %arg1, %c0_i32 : i32, i32, i32
  }
  func.func @transform_1(%arg0: i32, %arg1: i32) -> (i32, i32, i32) {
    %c0_i32 = arith.constant 0 : i32
    %c0_i32_0 = arith.constant 0 : i32
    %c0_i32_1 = arith.constant 0 : i32
    return %arg0, %c0_i32, %c0_i32_0 : i32, i32, i32
  }
  func.func @transform_2(%arg0: i32, %arg1: i32) -> (i32, i32) {
    %c0_i32 = arith.constant 0 : i32
    %c0_i32_0 = arith.constant 0 : i32
    %c0_i32_1 = arith.constant 0 : i32
    return %c0_i32, %c0_i32_0 : i32, i32
  }
  func.func @transform_3(%arg0: i32, %arg1: i32) -> (i32, i32) {
    %c0_i32 = arith.constant 0 : i32
    %c0_i32_0 = arith.constant 0 : i32
    %c0_i32_1 = arith.constant 0 : i32
    return %c0_i32, %c0_i32_0 : i32, i32
  }
  func.func @transform_4(%arg0: i32, %arg1: i32) -> (i32, i32) {
    %c0_i32 = arith.constant 0 : i32
    %c0_i32_0 = arith.constant 0 : i32
    %c0_i32_1 = arith.constant 0 : i32
    return %c0_i32, %c0_i32_0 : i32, i32
  }
  func.func @transform_5(%arg0: i32, %arg1: i32) -> (i32, i32) {
    %c0_i32 = arith.constant 0 : i32
    %c0_i32_0 = arith.constant 0 : i32
    %c0_i32_1 = arith.constant 0 : i32
    return %c0_i32, %c0_i32_0 : i32, i32
  }
  func.func @transform_6(%arg0: i32, %arg1: i32) -> (i32, i32) {
    %c0_i32 = arith.constant 0 : i32
    %c0_i32_0 = arith.constant 0 : i32
    %c0_i32_1 = arith.constant 0 : i32
    return %c0_i32, %c0_i32_0 : i32, i32
  }
  func.func @transform_7(%arg0: i32, %arg1: i32) -> (i32, i32) {
    %c0_i32 = arith.constant 0 : i32
    %c0_i32_0 = arith.constant 0 : i32
    %c0_i32_1 = arith.constant 0 : i32
    return %c0_i32, %c0_i32_0 : i32, i32
  }
  func.func @transform_8(%arg0: i32, %arg1: i32) -> (i32, i32) {
    %c0_i32 = arith.constant 0 : i32
    %c0_i32_0 = arith.constant 0 : i32
    %c0_i32_1 = arith.constant 0 : i32
    return %c0_i32, %c0_i32_0 : i32, i32
  }
  func.func @transform_9(%arg0: i32, %arg1: i32) -> (i32, i32) {
    %c0_i32 = arith.constant 0 : i32
    %c0_i32_0 = arith.constant 0 : i32
    %c0_i32_1 = arith.constant 0 : i32
    return %c0_i32, %c0_i32_0 : i32, i32
  }
  func.func @transform_10(%arg0: i32, %arg1: i32) -> (i32, i32) {
    %c0_i32 = arith.constant 0 : i32
    %c0_i32_0 = arith.constant 0 : i32
    %c0_i32_1 = arith.constant 0 : i32
    return %c0_i32, %c0_i32_0 : i32, i32
  }
  func.func @transform_11(%arg0: i32, %arg1: i32) -> (i32, i32) {
    %c0_i32 = arith.constant 0 : i32
    %c0_i32_0 = arith.constant 0 : i32
    %c0_i32_1 = arith.constant 0 : i32
    return %c0_i32, %c0_i32_0 : i32, i32
  }
  func.func @transform_12(%arg0: i32, %arg1: i32) -> (i32, i32) {
    %c0_i32 = arith.constant 0 : i32
    %c0_i32_0 = arith.constant 0 : i32
    %c0_i32_1 = arith.constant 0 : i32
    return %c0_i32, %c0_i32_0 : i32, i32
  }
  func.func @transform_13(%arg0: i32, %arg1: i32) -> (i32, i32) {
    %c0_i32 = arith.constant 0 : i32
    %c0_i32_0 = arith.constant 0 : i32
    %c0_i32_1 = arith.constant 0 : i32
    return %c0_i32, %c0_i32_0 : i32, i32
  }
  func.func @transform_14(%arg0: i32, %arg1: i32) -> (i32, i32) {
    %c0_i32 = arith.constant 0 : i32
    %c0_i32_0 = arith.constant 0 : i32
    %c0_i32_1 = arith.constant 0 : i32
    return %c0_i32, %c0_i32_0 : i32, i32
  }
  func.func @transform_15(%arg0: i32, %arg1: i32) -> (i32, i32) {
    %c0_i32 = arith.constant 0 : i32
    %c0_i32_0 = arith.constant 0 : i32
    %c0_i32_1 = arith.constant 0 : i32
    return %c0_i32, %c0_i32_0 : i32, i32
  }
  func.func @transform_16(%arg0: i32, %arg1: i32) -> (i32, i32, i32) {
    %c0_i32 = arith.constant 0 : i32
    %c0_i32_0 = arith.constant 0 : i32
    return %arg0, %arg1, %c0_i32 : i32, i32, i32
  }
  func.func @transform_17(%arg0: i32, %arg1: i32) -> (i32, i32, i32) {
    %c0_i32 = arith.constant 0 : i32
    %c0_i32_0 = arith.constant 0 : i32
    return %arg0, %arg1, %c0_i32 : i32, i32, i32
  }
}

</mosaic_0001>

<bundles_post_ra>
// kernel: tpu_custom_call.1
= control target key start
LH: loop header
LB: loop body
LE: loop exit
PB: predicated region body
PF: predicated region fallthrough
CT: control target
= control target key end

     0   :  { %s4577_s0 = inlined_call_operand.hbm [shape: f32[2,8,32], index: 0, kind: input, shape index: {}]   ;;  %s4578_s1 = inlined_call_operand.hbm [shape: bf16[2,8,32], index: 1, kind: input, shape index: {}]   ;;  %s4579_s2 = inlined_call_operand.hbm [shape: bf16[32,32], index: 2, kind: input, shape index: {}]   ;;  %s4580_s3 = inlined_call_operand.hbm [shape: f32[1,32], index: 3, kind: input, shape index: {}]   ;;  %s4581_s4 = inlined_call_operand.hbm [shape: bf16[32,64], index: 4, kind: input, shape index: {}]   ;;  %s4582_s5 = inlined_call_operand.hbm [shape: f32[1,64], index: 5, kind: input, shape index: {}]   ;;  %s4583_s6 = inlined_call_operand.hbm [shape: bf16[32,32], index: 6, kind: input, shape index: {}]   ;;  %s4584_s7 = inlined_call_operand.hbm [shape: f32[1,32], index: 7, kind: input, shape index: {}]   ;;  %s4585_s8 = inlined_call_operand.hbm [shape: f32[1,32], index: 8, kind: input, shape index: {}]   ;;  %s4586_s9 = inlined_call_operand.hbm [shape: f32[1,32], index: 9, kind: input, shape index: {}]   ;;  %s4587_s10 = inlined_call_operand.hbm [shape: bf16[32,128], index: 10, kind: input, shape index: {}]   ;;  %s4588_s11 = inlined_call_operand.hbm [shape: f32[1,128], index: 11, kind: input, shape index: {}]   ;;  %s4589_s12 = inlined_call_operand.hbm [shape: bf16[128,32], index: 12, kind: input, shape index: {}]   ;;  %s4590_s13 = inlined_call_operand.hbm [shape: f32[1,32], index: 13, kind: input, shape index: {}]   ;;  %s4591_s14 = inlined_call_operand.hbm [shape: f32[1,32], index: 14, kind: input, shape index: {}]   ;;  %s4592_s15 = inlined_call_operand.hbm [shape: f32[1,32], index: 15, kind: input, shape index: {}]   ;;  %s4593_s16 = inlined_call_operand.hbm [shape: f32[2,8,32], index: 16, kind: output, shape index: {0}]   ;;  %s4594_s17 = inlined_call_operand.hbm [shape: f32[2,8,32], index: 17, kind: output, shape index: {1}]  }
   0x1   :  { %4613 = sst [smem:[#allocation52_spill]] %s4577_s0 }
   0x2   :  { %4614 = sst [smem:[#allocation53_spill]] %s4578_s1 }
   0x3   :  { %4615 = sst [smem:[#allocation54_spill]] %s4579_s2 }
   0x4   :  { %4616 = sst [smem:[#allocation55_spill]] %s4580_s3 }
   0x5   :  { %4617 = sst [smem:[#allocation56_spill]] %s4581_s4 }
   0x6   :  { %4618 = sst [smem:[#allocation57_spill]] %s4582_s5 }
   0x7   :  { %4619 = sst [smem:[#allocation58_spill]] %s4583_s6 }
   0x8   :  { %4620 = sst [smem:[#allocation59_spill]] %s4584_s7 }
   0x9   :  { %4621 = sst [smem:[#allocation60_spill]] %s4585_s8 }
   0xa   :  { %4622 = sst [smem:[#allocation61_spill]] %s4593_s16 }
   0xb   :  { %4623 = sst [smem:[#allocation62_spill]] %s4594_s17 }
   0xc   :  { %23 = vsyncpa [#allocation5], 0 }
   0xd   :  { %25 = vsyncpa [#allocation5 + $0x1], 0 }
   0xe   :  { %26 = vsyncpa [#allocation8], 0 }
   0xf   :  { %28 = vsyncpa [#allocation8 + $0x1], 0 }
  0x10   :  { %29 = vsyncpa [#allocation11], 0 }
  0x11   :  { %30 = vsyncpa [#allocation14], 0 }
  0x12   :  { %31 = vsyncpa [#allocation17], 0 }
  0x13   :  { %32 = vsyncpa [#allocation20], 0 }
  0x14   :  { %33 = vsyncpa [#allocation23], 0 }
  0x15   :  { %34 = vsyncpa [#allocation26], 0 }
  0x16   :  { %35 = vsyncpa [#allocation29], 0 }
  0x17   :  { %36 = vsyncpa [#allocation6], 0 }
  0x18   :  { %38 = vsyncpa [#allocation6 + $0x1], 0 }
  0x19   :  { %39 = vsyncpa [#allocation32], 0 }
  0x1a   :  { %41 = vsyncpa [#allocation32 + $0x1], 0  ;;  %s3827_s24 = smov 0   ;;  %s3829_s25 = smov 0  }
  0x1b   :  { %s3831_s26 = smov 0   ;;  %s3833_s27 = smov 0  }
  0x1c   :  { %s3835_s28 = smov 0   ;;  %s3837_s29 = smov 0  }
  0x1d LB: > { %4624 = sst [smem:[#allocation45_spill]] %s3684_s24  ;;  %s3858_s0 = sadd.s32 4294967295, %s3704_s29   ;;  %s3704_s29 = sphi %s3837_s29, %s47_s29   ;;  %s3700_s28 = sphi %s3835_s28, %s4689_s28   ;;  %s3696_s27 = sphi %s3833_s27, %s4687_s27   ;;  %s3692_s26 = sphi %s3831_s26, %s4688_s26   ;;  %s3688_s25 = sphi %s3829_s25, %s4686_s25   ;;  %s3684_s24 = sphi %s3827_s24, %s4685_s24  }
  0x1e   : > { %4625 = sst [smem:[#allocation46_spill]] %s3688_s25  ;;  %p2613_p0 = scmp.ge.s32.totalorder %s3704_s29, 1 }
  0x1f   : > { %4626 = sst [smem:[#allocation47_spill]] %s3692_s26  ;;  %p4607_p1 = scmp.eq.s32.totalorder %s3858_s0, 0 }
  0x20   : > { %4627 = sst [smem:[#allocation48_spill]] %s3696_s27  ;;  %p468_p2 = scmp.lt.s32.totalorder %s3704_s29, 3 }
  0x21   : > { %4628 = sst [smem:[#allocation49_spill]] %s3700_s28  ;;  %s3706_s18 = smov [#allocation9]  }
  0x22   : > { %4629 = sst [smem:[#allocation50_spill]] %s3858_s0  ;;  %p3863_p3 = pnand %p2613_p0, %p468_p2 }
  0x23   : > { %s480_s19 = sshll.u32 %s3706_s18, 4  ;;  %s3707_s20 = smov [#allocation10]   ;;  %s3867_s19 = int_to_ptr.vmem [resolvable:$true] %s480_s19 }
  0x24   : > { %s4630_s30 = scalar_select %p3863_p3, 1, 0 }
  0x25   : > { %p2904_p4 = pneg %p3863_p3  ;;  %s494_s21 = sshll.u32 %s3707_s20, 4  ;;  %s3878_s21 = int_to_ptr.vmem [resolvable:$true] %s494_s21 }
  0x26   : > { %4631 = sst [smem:[#allocation51_spill]] %s4630_s30  ;;  %s3708_s22 = smov [#allocation13]  }
  0x27   : > { %p3874_p6 = pnand %p2904_p4, %p4607_p1  ;;  %s3880_s23 = sshll.u32 %s3708_s22, 4  ;;  %s519_s23 = int_to_ptr.vmem [resolvable:$true] %s3880_s23 }
  0x28   : > { %s4633_s2 = sld [smem:[#allocation54_spill]] }
  0x29   : > { %p3890_p8 = pneg %p3874_p6 }
  0x2e   : > { %s3102_s17 = scalar_lea.hbm %s4633_s2, 256 }
  0x2f   : > { %p3103_p7 = scmp.ne.s32.totalorder %s4633_s2, %s3102_s17  ;;  %p3109_p11 = scmp.lt.u32.totalorder %s3102_s17, %s4633_s2 }
  0x31   : > { %p3105_p9 = pnand %p3890_p8, %p3103_p7 }
  0x33   : > { %p3106_p10 = pneg %p3105_p9 }
  0x35   : > { %p3111_p12 = pnand %p3109_p11, %p3106_p10 }
  0x37   : > { %3114 = shalt.err (!%p3111_p12)
}
  0x38   : > { %s3115_s16 = scalar_lea.vmem %s3867_s19, 256  ;;  %p3123_p4 = scmp.lt.s32.totalorder %s3867_s19, %s3867_s19 }
  0x39   : > { %p3116_p13 = scmp.ne.s32.totalorder %s3867_s19, %s3115_s16  ;;  %p3124_p5 = scmp.lt.s32.totalorder %s3115_s16, %s3115_s16 }
  0x3b   : > { %p3118_p0 = pnand %p3116_p13, %p3890_p8  ;;  %p3125_p7 = por %p3124_p5, %p3123_p4 }
  0x3d   : > { %p3119_p2 = pneg %p3118_p0 }
  0x3f   : > { %p3126_p9 = pnand %p3125_p7, %p3119_p2 }
  0x41   : > { %3129 = shalt.err (!%p3126_p9)
}
  0x42   : > { %s4609_s27 = smov 64   ;;  %s3710_s17 = smov 4  }
  0x43   : > { %2907 = dma.hbm_to_vmem [thread:$0]  (!%p3874_p6), %s4633_s2, 256, %s3867_s19, [#allocation8], %s4609_s27, %s4609_s27, %s3710_s17  }
  0x44   : > { %s4635_s3 = sld [smem:[#allocation55_spill]] }
  0x4a   : > { %s3130_s16 = scalar_lea.hbm %s4635_s3, 16 }
  0x4b   : > { %p3131_p5 = scmp.ne.s32.totalorder %s4635_s3, %s3130_s16  ;;  %p3137_p12 = scmp.lt.u32.totalorder %s3130_s16, %s4635_s3 }
  0x4d   : > { %p3133_p10 = pnand %p3131_p5, %p3890_p8 }
  0x4f   : > { %p3134_p11 = pneg %p3133_p10 }
  0x51   : > { %p3139_p13 = pnand %p3137_p12, %p3134_p11 }
  0x53   : > { %3142 = shalt.err (!%p3139_p13)
}
  0x54   : > { %s3143_s19 = scalar_lea.vmem %s3878_s21, 16  ;;  %s3150_s24 = scalar_lea.vmem %s3878_s21, 32 }
  0x55   : > { %p3144_p0 = scmp.ne.s32.totalorder %s3878_s21, %s3143_s19  ;;  %p3151_p7 = scmp.lt.s32.totalorder %s3878_s21, %s3878_s21 }
  0x56   : > { %p3152_p9 = scmp.lt.s32.totalorder %s3150_s24, %s3143_s19 }
  0x57   : > { %p3146_p2 = pnand %p3144_p0, %p3890_p8 }
  0x58   : > { %p3153_p5 = por %p3152_p9, %p3151_p7 }
  0x59   : > { %p3147_p4 = pneg %p3146_p2 }
  0x5b   : > { %p3154_p10 = pnand %p3153_p5, %p3147_p4 }
  0x5d   : > { %3157 = shalt.err (!%p3154_p10)
}
  0x5e   : > { %2910 = dma.hbm_to_vmem [thread:$0]  (!%p3874_p6), %s4635_s3, 16, %s3878_s21, [#allocation11]  }
  0x5f   : > { %s4636_s5 = sld [smem:[#allocation57_spill]] }
  0x65   : > { %s3158_s18 = scalar_lea.hbm %s4636_s5, 16 }
  0x66   : > { %p3159_p11 = scmp.ne.s32.totalorder %s4636_s5, %s3158_s18  ;;  %p3165_p0 = scmp.lt.u32.totalorder %s3158_s18, %s4636_s5 }
  0x68   : > { %p3161_p12 = pnand %p3159_p11, %p3890_p8 }
  0x6a   : > { %p3162_p13 = pneg %p3161_p12 }
  0x6c   : > { %p3167_p2 = pnand %p3165_p0, %p3162_p13 }
  0x6e   : > { %3170 = shalt.err (!%p3167_p2)
}
  0x6f   : > { %s3171_s24 = scalar_lea.vmem %s519_s23, 16  ;;  %s3178_s21 = scalar_lea.vmem %s519_s23, 32 }
  0x70   : > { %p3172_p4 = scmp.ne.s32.totalorder %s519_s23, %s3171_s24  ;;  %p3179_p5 = scmp.lt.s32.totalorder %s519_s23, %s519_s23 }
  0x71   : > { %p3180_p10 = scmp.lt.s32.totalorder %s3178_s21, %s3171_s24 }
  0x72   : > { %p3174_p7 = pnand %p3172_p4, %p3890_p8 }
  0x73   : > { %p3181_p1 = por %p3180_p10, %p3179_p5 }
  0x74   : > { %p3175_p9 = pneg %p3174_p7 }
  0x76   : > { %p3182_p3 = pnand %p3181_p1, %p3175_p9 }
  0x78   : > { %3185 = shalt.err (!%p3182_p3)
}
  0x79   : > { %2916 = dma.hbm_to_vmem [thread:$0]  (!%p3874_p6), %s4636_s5, 16, %s519_s23, [#allocation14]  }
  0x7a   : > { %s3711_s28 = smov [#allocation16]   ;;  %s3712_s18 = smov [#allocation19]  }
  0x7b   : > { %s542_s30 = sshll.u32 %s3711_s28, 4  ;;  %s564_s20 = sshll.u32 %s3712_s18, 4  ;;  %s543_s30 = int_to_ptr.vmem [resolvable:$true] %s542_s30  ;;  %s565_s20 = int_to_ptr.vmem [resolvable:$true] %s564_s20 }
  0x7c   : > { %s4637_s7 = sld [smem:[#allocation59_spill]] }
  0x82   : > { %s3186_s19 = scalar_lea.hbm %s4637_s7, 16 }
  0x83   : > { %p3187_p1 = scmp.ne.s32.totalorder %s4637_s7, %s3186_s19  ;;  %p3193_p12 = scmp.lt.u32.totalorder %s3186_s19, %s4637_s7 }
  0x85   : > { %p3189_p3 = pnand %p3187_p1, %p3890_p8 }
  0x87   : > { %p3190_p11 = pneg %p3189_p3 }
  0x89   : > { %p3195_p13 = pnand %p3193_p12, %p3190_p11 }
  0x8b   : > { %3198 = shalt.err (!%p3195_p13)
}
  0x8c   : > { %s3199_s23 = scalar_lea.vmem %s543_s30, 16  ;;  %s3206_s26 = scalar_lea.vmem %s543_s30, 32 }
  0x8d   : > { %p3200_p0 = scmp.ne.s32.totalorder %s543_s30, %s3199_s23  ;;  %p3207_p7 = scmp.lt.s32.totalorder %s543_s30, %s543_s30 }
  0x8e   : > { %p3208_p9 = scmp.lt.s32.totalorder %s3206_s26, %s3199_s23 }
  0x8f   : > { %p3202_p2 = pnand %p3200_p0, %p3890_p8 }
  0x90   : > { %p3209_p5 = por %p3208_p9, %p3207_p7 }
  0x91   : > { %p3203_p4 = pneg %p3202_p2 }
  0x93   : > { %p3210_p10 = pnand %p3209_p5, %p3203_p4 }
  0x95   : > { %3213 = shalt.err (!%p3210_p10)
}
  0x96   : > { %2922 = dma.hbm_to_vmem [thread:$0]  (!%p3874_p6), %s4637_s7, 16, %s543_s30, [#allocation17]  }
  0x97   : > { %s3214_s16 = scalar_lea.hbm %s4586_s9, 16 }
  0x98   : > { %p3215_p1 = scmp.ne.s32.totalorder %s4586_s9, %s3214_s16  ;;  %p3221_p12 = scmp.lt.u32.totalorder %s3214_s16, %s4586_s9 }
  0x9a   : > { %p3217_p3 = pnand %p3215_p1, %p3890_p8 }
  0x9c   : > { %p3218_p11 = pneg %p3217_p3 }
  0x9e   : > { %p3223_p13 = pnand %p3221_p12, %p3218_p11 }
  0xa0   : > { %3226 = shalt.err (!%p3223_p13)
}
  0xa1   : > { %s3227_s23 = scalar_lea.vmem %s565_s20, 16  ;;  %s3234_s30 = scalar_lea.vmem %s565_s20, 32 }
  0xa2   : > { %p3228_p0 = scmp.ne.s32.totalorder %s565_s20, %s3227_s23  ;;  %p3235_p7 = scmp.lt.s32.totalorder %s565_s20, %s565_s20 }
  0xa3   : > { %p3236_p9 = scmp.lt.s32.totalorder %s3234_s30, %s3227_s23 }
  0xa4   : > { %p3230_p2 = pnand %p3228_p0, %p3890_p8 }
  0xa5   : > { %p3237_p5 = por %p3236_p9, %p3235_p7 }
  0xa6   : > { %p3231_p4 = pneg %p3230_p2 }
  0xa8   : > { %p3238_p10 = pnand %p3237_p5, %p3231_p4 }
  0xaa   : > { %3241 = shalt.err (!%p3238_p10)
}
  0xab   : > { %2928 = dma.hbm_to_vmem [thread:$0]  (!%p3874_p6), %s4586_s9, 16, %s565_s20, [#allocation20]  }
  0xac   : > { %s3713_s18 = smov [#allocation22]   ;;  %s3714_s22 = smov [#allocation25]  }
  0xad   : > { %s588_s27 = sshll.u32 %s3713_s18, 4  ;;  %s612_s16 = sshll.u32 %s3714_s22, 4  ;;  %s589_s27 = int_to_ptr.vmem [resolvable:$true] %s588_s27  ;;  %s613_s16 = int_to_ptr.vmem [resolvable:$true] %s612_s16 }
  0xae   : > { %s3242_s21 = scalar_lea.hbm %s4588_s11, 16 }
  0xaf   : > { %p3243_p1 = scmp.ne.s32.totalorder %s4588_s11, %s3242_s21  ;;  %p3249_p12 = scmp.lt.u32.totalorder %s3242_s21, %s4588_s11 }
  0xb1   : > { %p3245_p3 = pnand %p3243_p1, %p3890_p8 }
  0xb3   : > { %p3246_p11 = pneg %p3245_p3 }
  0xb5   : > { %p3251_p13 = pnand %p3249_p12, %p3246_p11 }
  0xb7   : > { %3254 = shalt.err (!%p3251_p13)
}
  0xb8   : > { %s3255_s20 = scalar_lea.vmem %s589_s27, 16  ;;  %s3262_s28 = scalar_lea.vmem %s589_s27, 32 }
  0xb9   : > { %p3256_p0 = scmp.ne.s32.totalorder %s589_s27, %s3255_s20  ;;  %p3263_p7 = scmp.lt.s32.totalorder %s589_s27, %s589_s27 }
  0xba   : > { %p3264_p9 = scmp.lt.s32.totalorder %s3262_s28, %s3255_s20 }
  0xbb   : > { %p3258_p2 = pnand %p3256_p0, %p3890_p8 }
  0xbc   : > { %p3265_p5 = por %p3264_p9, %p3263_p7 }
  0xbd   : > { %p3259_p4 = pneg %p3258_p2 }
  0xbf   : > { %p3266_p10 = pnand %p3265_p5, %p3259_p4 }
  0xc1   : > { %3269 = shalt.err (!%p3266_p10)
}
  0xc2   : > { %2934 = dma.hbm_to_vmem [thread:$0]  (!%p3874_p6), %s4588_s11, 16, %s589_s27, [#allocation23]  }
  0xc3   : > { %s3270_s21 = scalar_lea.hbm %s4590_s13, 16 }
  0xc4   : > { %p3271_p1 = scmp.ne.s32.totalorder %s4590_s13, %s3270_s21  ;;  %p3277_p12 = scmp.lt.u32.totalorder %s3270_s21, %s4590_s13 }
  0xc6   : > { %p3273_p3 = pnand %p3271_p1, %p3890_p8 }
  0xc8   : > { %p3274_p11 = pneg %p3273_p3 }
  0xca   : > { %p3279_p13 = pnand %p3277_p12, %p3274_p11 }
  0xcc   : > { %3282 = shalt.err (!%p3279_p13)
}
  0xcd   : > { %s3283_s20 = scalar_lea.vmem %s613_s16, 16  ;;  %s3290_s27 = scalar_lea.vmem %s613_s16, 32 }
  0xce   : > { %p3284_p0 = scmp.ne.s32.totalorder %s613_s16, %s3283_s20  ;;  %p3291_p7 = scmp.lt.s32.totalorder %s613_s16, %s613_s16 }
  0xcf   : > { %p3292_p9 = scmp.lt.s32.totalorder %s3290_s27, %s3283_s20 }
  0xd0   : > { %p3286_p2 = pnand %p3284_p0, %p3890_p8 }
  0xd1   : > { %p3293_p5 = por %p3292_p9, %p3291_p7 }
  0xd2   : > { %p3287_p4 = pneg %p3286_p2 }
  0xd4   : > { %p3294_p10 = pnand %p3293_p5, %p3287_p4 }
  0xd6   : > { %3297 = shalt.err (!%p3294_p10)
}
  0xd7   : > { %2940 = dma.hbm_to_vmem [thread:$0]  (!%p3874_p6), %s4590_s13, 16, %s613_s16, [#allocation26]  }
  0xd8   : > { %s3715_s22 = smov [#allocation12]   ;;  %s3716_s24 = smov [#allocation15]  }
  0xd9   : > { %s504_s19 = sshll.u32 %s3715_s22, 4  ;;  %s528_s21 = sshll.u32 %s3716_s24, 4  ;;  %s505_s19 = int_to_ptr.vmem [resolvable:$true] %s504_s19  ;;  %s529_s21 = int_to_ptr.vmem [resolvable:$true] %s528_s21 }
  0xda   : > { %s4638_s4 = sld [smem:[#allocation56_spill]] }
  0xe0   : > { %s3298_s30 = scalar_lea.hbm %s4638_s4, 256 }
  0xe1   : > { %p3299_p1 = scmp.ne.s32.totalorder %s4638_s4, %s3298_s30  ;;  %p3305_p12 = scmp.lt.u32.totalorder %s3298_s30, %s4638_s4 }
  0xe3   : > { %p3301_p3 = pnand %p3299_p1, %p3890_p8 }
  0xe5   : > { %p3302_p11 = pneg %p3301_p3 }
  0xe7   : > { %p3307_p13 = pnand %p3305_p12, %p3302_p11 }
  0xe9   : > { %3310 = shalt.err (!%p3307_p13)
}
  0xea   : > { %s3311_s16 = scalar_lea.vmem %s505_s19, 256  ;;  %p3319_p7 = scmp.lt.s32.totalorder %s505_s19, %s505_s19 }
  0xeb   : > { %p3312_p0 = scmp.ne.s32.totalorder %s505_s19, %s3311_s16  ;;  %p3320_p9 = scmp.lt.s32.totalorder %s3311_s16, %s3311_s16 }
  0xed   : > { %p3314_p2 = pnand %p3312_p0, %p3890_p8  ;;  %p3321_p5 = por %p3320_p9, %p3319_p7 }
  0xef   : > { %p3315_p4 = pneg %p3314_p2 }
  0xf1   : > { %p3322_p10 = pnand %p3321_p5, %p3315_p4 }
  0xf3   : > { %3325 = shalt.err (!%p3322_p10)
}
  0xf4   : > { %s4639_s18 = smov 64   ;;  %s4640_s6 = sld [smem:[#allocation58_spill]] }
  0xf5   : > { %2913 = dma.hbm_to_vmem [thread:$0]  (!%p3874_p6), %s4638_s4, 256, %s505_s19, [#allocation11], %s4639_s18, %s4639_s18, %s3710_s17  }
  0xfa   : > { %s3326_s30 = scalar_lea.hbm %s4640_s6, 256 }
  0xfb   : > { %p3327_p1 = scmp.ne.s32.totalorder %s4640_s6, %s3326_s30  ;;  %p3333_p12 = scmp.lt.u32.totalorder %s3326_s30, %s4640_s6 }
  0xfd   : > { %p3329_p3 = pnand %p3327_p1, %p3890_p8 }
  0xff   : > { %p3330_p11 = pneg %p3329_p3 }
 0x101   : > { %p3335_p13 = pnand %p3333_p12, %p3330_p11 }
 0x103   : > { %3338 = shalt.err (!%p3335_p13)
}
 0x104   : > { %s3339_s16 = scalar_lea.vmem %s529_s21, 256  ;;  %p3347_p7 = scmp.lt.s32.totalorder %s529_s21, %s529_s21 }
 0x105   : > { %p3340_p0 = scmp.ne.s32.totalorder %s529_s21, %s3339_s16  ;;  %p3348_p9 = scmp.lt.s32.totalorder %s3339_s16, %s3339_s16 }
 0x107   : > { %p3342_p2 = pnand %p3340_p0, %p3890_p8  ;;  %p3349_p5 = por %p3348_p9, %p3347_p7 }
 0x109   : > { %p3343_p4 = pneg %p3342_p2 }
 0x10b   : > { %p3350_p10 = pnand %p3349_p5, %p3343_p4 }
 0x10d   : > { %3353 = shalt.err (!%p3350_p10)
}
 0x10e   : > { %2919 = dma.hbm_to_vmem [thread:$0]  (!%p3874_p6), %s4640_s6, 256, %s529_s21, [#allocation14], %s4639_s18, %s4639_s18, %s3710_s17  }
 0x10f   : > { %s3717_s24 = smov [#allocation18]   ;;  %s3718_s23 = smov [#allocation21]  }
 0x110   : > { %s553_s25 = sshll.u32 %s3717_s24, 4  ;;  %s574_s30 = sshll.u32 %s3718_s23, 4  ;;  %s554_s25 = int_to_ptr.vmem [resolvable:$true] %s553_s25  ;;  %s575_s30 = int_to_ptr.vmem [resolvable:$true] %s574_s30 }
 0x111   : > { %s4641_s8 = sld [smem:[#allocation60_spill]] }
 0x117   : > { %s3354_s27 = scalar_lea.hbm %s4641_s8, 16 }
 0x118   : > { %p3355_p1 = scmp.ne.s32.totalorder %s4641_s8, %s3354_s27  ;;  %p3361_p12 = scmp.lt.u32.totalorder %s3354_s27, %s4641_s8 }
 0x11a   : > { %p3357_p3 = pnand %p3355_p1, %p3890_p8 }
 0x11c   : > { %p3358_p11 = pneg %p3357_p3 }
 0x11e   : > { %p3363_p13 = pnand %p3361_p12, %p3358_p11 }
 0x120   : > { %3366 = shalt.err (!%p3363_p13)
}
 0x121   : > { %s3367_s21 = scalar_lea.vmem %s554_s25, 16  ;;  %s3374_s22 = scalar_lea.vmem %s554_s25, 32 }
 0x122   : > { %p3368_p0 = scmp.ne.s32.totalorder %s554_s25, %s3367_s21  ;;  %p3375_p7 = scmp.lt.s32.totalorder %s554_s25, %s554_s25 }
 0x123   : > { %p3376_p9 = scmp.lt.s32.totalorder %s3374_s22, %s3367_s21 }
 0x124   : > { %p3370_p2 = pnand %p3368_p0, %p3890_p8 }
 0x125   : > { %p3377_p5 = por %p3376_p9, %p3375_p7 }
 0x126   : > { %p3371_p4 = pneg %p3370_p2 }
 0x128   : > { %p3378_p10 = pnand %p3377_p5, %p3371_p4 }
 0x12a   : > { %3381 = shalt.err (!%p3378_p10)
}
 0x12b   : > { %2925 = dma.hbm_to_vmem [thread:$0]  (!%p3874_p6), %s4641_s8, 16, %s554_s25, [#allocation17]  }
 0x12c   : > { %s3382_s20 = scalar_lea.hbm %s4587_s10, 256 }
 0x12d   : > { %p3383_p1 = scmp.ne.s32.totalorder %s4587_s10, %s3382_s20  ;;  %p3389_p12 = scmp.lt.u32.totalorder %s3382_s20, %s4587_s10 }
 0x12f   : > { %p3385_p3 = pnand %p3383_p1, %p3890_p8 }
 0x131   : > { %p3386_p11 = pneg %p3385_p3 }
 0x133   : > { %p3391_p13 = pnand %p3389_p12, %p3386_p11 }
 0x135   : > { %3394 = shalt.err (!%p3391_p13)
}
 0x136   : > { %s3395_s21 = scalar_lea.vmem %s575_s30, 256  ;;  %p3403_p7 = scmp.lt.s32.totalorder %s575_s30, %s575_s30 }
 0x137   : > { %p3396_p0 = scmp.ne.s32.totalorder %s575_s30, %s3395_s21  ;;  %p3404_p9 = scmp.lt.s32.totalorder %s3395_s21, %s3395_s21 }
 0x139   : > { %p3398_p2 = pnand %p3396_p0, %p3890_p8  ;;  %p3405_p5 = por %p3404_p9, %p3403_p7 }
 0x13b   : > { %p3399_p4 = pneg %p3398_p2 }
 0x13d   : > { %p3406_p10 = pnand %p3405_p5, %p3399_p4 }
 0x13f   : > { %3409 = shalt.err (!%p3406_p10)
}
 0x140   : > { %2931 = dma.hbm_to_vmem [thread:$0]  (!%p3874_p6), %s4587_s10, 256, %s575_s30, [#allocation20], %s4639_s18, %s4639_s18, %s3710_s17  }
 0x141   : > { %s3719_s24 = smov [#allocation24]   ;;  %s3720_s2 = smov [#allocation27]  }
 0x142   : > { %s598_s23 = sshll.u32 %s3719_s24, 4  ;;  %s623_s26 = sshll.u32 %s3720_s2, 4  ;;  %s599_s23 = int_to_ptr.vmem [resolvable:$true] %s598_s23  ;;  %s624_s26 = int_to_ptr.vmem [resolvable:$true] %s623_s26 }
 0x143   : > { %s3410_s28 = scalar_lea.hbm %s4589_s12, 1024 }
 0x144   : > { %p3411_p1 = scmp.ne.s32.totalorder %s4589_s12, %s3410_s28  ;;  %p3417_p12 = scmp.lt.u32.totalorder %s3410_s28, %s4589_s12 }
 0x146   : > { %p3413_p3 = pnand %p3411_p1, %p3890_p8 }
 0x148   : > { %p3414_p11 = pneg %p3413_p3 }
 0x14a   : > { %p3419_p13 = pnand %p3417_p12, %p3414_p11 }
 0x14c   : > { %3422 = shalt.err (!%p3419_p13)
}
 0x14d   : > { %s3423_s30 = scalar_lea.vmem %s599_s23, 1024  ;;  %p3431_p7 = scmp.lt.s32.totalorder %s599_s23, %s599_s23 }
 0x14e   : > { %p3424_p0 = scmp.ne.s32.totalorder %s599_s23, %s3423_s30  ;;  %p3432_p9 = scmp.lt.s32.totalorder %s3423_s30, %s3423_s30 }
 0x150   : > { %p3426_p2 = pnand %p3424_p0, %p3890_p8  ;;  %p3433_p5 = por %p3432_p9, %p3431_p7 }
 0x152   : > { %p3427_p4 = pneg %p3426_p2 }
 0x154   : > { %p3434_p10 = pnand %p3433_p5, %p3427_p4 }
 0x156   : > { %3437 = shalt.err (!%p3434_p10)
}
 0x157   : > { %2937 = dma.hbm_to_vmem [thread:$0]  (!%p3874_p6), %s4589_s12, 1024, %s599_s23, [#allocation23], %s4639_s18, %s4639_s18, %s3710_s17  }
 0x158   : > { %s3438_s27 = scalar_lea.hbm %s4591_s14, 16 }
 0x159   : > { %p3439_p1 = scmp.ne.s32.totalorder %s4591_s14, %s3438_s27  ;;  %p3445_p12 = scmp.lt.u32.totalorder %s3438_s27, %s4591_s14 }
 0x15b   : > { %p3441_p3 = pnand %p3439_p1, %p3890_p8 }
 0x15d   : > { %p3442_p11 = pneg %p3441_p3 }
 0x15f   : > { %p3447_p13 = pnand %p3445_p12, %p3442_p11 }
 0x161   : > { %3450 = shalt.err (!%p3447_p13)
}
 0x162   : > { %s3451_s25 = scalar_lea.vmem %s624_s26, 16  ;;  %s3458_s17 = scalar_lea.vmem %s624_s26, 32 }
 0x163   : > { %p3452_p0 = scmp.ne.s32.totalorder %s624_s26, %s3451_s25  ;;  %p3459_p7 = scmp.lt.s32.totalorder %s624_s26, %s624_s26 }
 0x164   : > { %p3460_p9 = scmp.lt.s32.totalorder %s3458_s17, %s3451_s25 }
 0x165   : > { %p3454_p2 = pnand %p3452_p0, %p3890_p8 }
 0x166   : > { %p3461_p5 = por %p3460_p9, %p3459_p7 }
 0x167   : > { %p3455_p4 = pneg %p3454_p2 }
 0x169   : > { %p3462_p10 = pnand %p3461_p5, %p3455_p4 }
 0x16b   : > { %3465 = shalt.err (!%p3462_p10)
}
 0x16c   : > { %2943 = dma.hbm_to_vmem [thread:$0]  (!%p3874_p6), %s4591_s14, 16, %s624_s26, [#allocation26]  }
 0x16d   : > { %s3721_s30 = smov [#allocation28]   ;;  %s3466_s20 = scalar_lea.hbm %s4592_s15, 16 }
 0x16e   : > { %s634_s22 = sshll.u32 %s3721_s30, 4  ;;  %p3467_p1 = scmp.ne.s32.totalorder %s4592_s15, %s3466_s20  ;;  %s635_s22 = int_to_ptr.vmem [resolvable:$true] %s634_s22 }
 0x16f   : > { %p3473_p12 = scmp.lt.u32.totalorder %s3466_s20, %s4592_s15 }
 0x170   : > { %p3469_p3 = pnand %p3467_p1, %p3890_p8 }
 0x172   : > { %p3470_p11 = pneg %p3469_p3 }
 0x174   : > { %p3475_p13 = pnand %p3473_p12, %p3470_p11 }
 0x176   : > { %3478 = shalt.err (!%p3475_p13)
}
 0x177   : > { %s3479_s26 = scalar_lea.vmem %s635_s22, 16  ;;  %s3486_s21 = scalar_lea.vmem %s635_s22, 32 }
 0x178   : > { %p3480_p0 = scmp.ne.s32.totalorder %s635_s22, %s3479_s26  ;;  %p3487_p7 = scmp.lt.s32.totalorder %s635_s22, %s635_s22 }
 0x179   : > { %p3488_p9 = scmp.lt.s32.totalorder %s3486_s21, %s3479_s26 }
 0x17a   : > { %p3482_p2 = pnand %p3480_p0, %p3890_p8 }
 0x17b   : > { %p3489_p5 = por %p3488_p9, %p3487_p7 }
 0x17c   : > { %p3483_p4 = pneg %p3482_p2 }
 0x17e   : > { %p3490_p10 = pnand %p3489_p5, %p3483_p4 }
 0x180   : > { %3493 = shalt.err (!%p3490_p10)
}
 0x181   : > { %s4642_s18 = sld [smem:[#allocation49_spill]]  ;;  %s4643_s23 = sld [smem:[#allocation47_spill]] }
 0x182   : > { %s4644_s30 = sld [smem:[#allocation46_spill]]  ;;  %s4645_s0 = sld [smem:[#allocation45_spill]] }
 0x183   : > { %s4646_s24 = sld [smem:[#allocation50_spill]]  ;;  %s2612_s2 = sadd.s32 4294967294, %s3704_s29  }
 0x184   : > { %2946 = dma.hbm_to_vmem [thread:$0]  (!%p3874_p6), %s4592_s15, 16, %s635_s22, [#allocation29]  }
 0x185   : > { %p76_p3 = scmp.eq.s32.totalorder %s3704_s29, 0  ;;  %p433_p7 = scmp.eq.s32.totalorder %s2612_s2, 1 }
 0x186   : > { %p2975_p5 = scmp.lt.s32.totalorder %s3704_s29, 2 }
 0x187   : > { %s59_s20 = sadd.s32 1, %s4642_s18  ;;  %s68_s1 = sadd.s32 1, %s4643_s23 }
 0x188   : > { %p61_p8 = scmp.ge.s32.totalorder %s59_s20, 2  ;;  %p75_p1 = scmp.ne.s32.totalorder %s4643_s23, %s4644_s30 }
 0x189   : > { %p81_p12 = scmp.ne.s32.totalorder %s4644_s30, %s4645_s0  ;;  %p427_p6 = scmp.eq.s32.totalorder %s4646_s24, 1 }
 0x18a   : > { %s4691_s20 = smov (%p61_p8, %s59_s20), 0  ;;  %p4175_p11 = por %p76_p3, %p75_p1 }
 0x18b   : > { %s63_s22 = ssub.s32 %s4642_s18, %s4691_s20  ;;  %p4648_p0 = scmp.eq.s32.totalorder %s4646_s24, 0 }
 0x18c   : > { %p66_p13 = scmp.eq.s32.totalorder %s63_s22, 0  ;;  %p4190_p4 = por %p427_p6, %p75_p1 }
 0x18d   : > { %p4186_p2 = por %p4648_p0, %p81_p12  ;;  %p4197_p9 = por %p433_p7, %p81_p12 }
 0x18e   : > { %s4650_s16 = scalar_select %p4190_p4, 1, 0 }
 0x18f   : > { %s4649_s28 = scalar_select %p4186_p2, 1, 0 }
 0x190   : > { %s4195_s19 = scalar_select %p66_p13, %s4643_s23, %s68_s1  }
 0x191   : > { %s4651_s26 = scalar_select %p4197_p9, 1, 0 }
 0x192   : > { %s4203_s21 = sand.u32 1, %s4643_s23   ;;  %s2630_s25 = sshll.u32 %s4642_s18, 7 }
 0x193   : > { %s2629_s17 = sshll.u32 %s4203_s21, 3  ;;  %s4652_s24 = sld [smem:[#allocation52_spill]] }
 0x194   : > { %s649_s2 = scalar_lea.vmem [#allocation4], %s2629_s17  ;;  %p4214_p10 = pnand %p2975_p5, %p4175_p11 }
 0x195   : > { %s657_s1 = sshll.u32 %s649_s2, 4  ;;  %s646_s5 = scalar_lea.sflag [#allocation5], %s4203_s21  ;;  %s4218_s1 = int_to_ptr.vmem [resolvable:$true] %s657_s1 }
 0x196   : > { %p3496_p1 = pneg %p4214_p10 }
 0x199   : > { %s4653_s22 = smov %s4652_s24  ;;  %s4210_s3 = scalar_lea.hbm %s4652_s24, %s2630_s25 }
 0x19a   : > { %s3494_s30 = scalar_lea.hbm %s4210_s3, 128  ;;  %s3499_s17 = scalar_lea.hbm %s4653_s22, 256 }
 0x19b   : > { %p3495_p8 = scmp.ne.s32.totalorder %s4210_s3, %s3494_s30  ;;  %p3500_p11 = scmp.lt.u32.totalorder %s4210_s3, %s4653_s22 }
 0x19c   : > { %p3501_p6 = scmp.lt.u32.totalorder %s3499_s17, %s3494_s30  ;;  %p3503_p0 = scmp.lt.u32.totalorder %s3494_s30, %s4210_s3 }
 0x19d   : > { %p3497_p3 = pnand %p3496_p1, %p3495_p8 }
 0x19e   : > { %p3502_p13 = por %p3501_p6, %p3500_p11 }
 0x19f   : > { %p3498_p12 = pneg %p3497_p3 }
 0x1a0   : > { %p3504_p7 = por %p3503_p0, %p3502_p13 }
 0x1a2   : > { %p3505_p5 = pnand %p3504_p7, %p3498_p12 }
 0x1a4   : > { %3508 = shalt.err (!%p3505_p5)
}
 0x1a5   : > { %s3509_s2 = scalar_lea.vmem %s4218_s1, 128  ;;  %s3722_s25 = smov [#allocation4]  }
 0x1a6   : > { %p3510_p8 = scmp.ne.s32.totalorder %s4218_s1, %s3509_s2  ;;  %s3514_s27 = sshll.u32 %s3722_s25, 4  ;;  %s3515_s27 = int_to_ptr.vmem [resolvable:$false] %s3514_s27 }
 0x1a7   : > { %s3516_s0 = scalar_lea.vmem %s3515_s27, 256  ;;  %p3517_p4 = scmp.lt.s32.totalorder %s4218_s1, %s3515_s27 }
 0x1a8   : > { %p3512_p3 = pnand %p3510_p8, %p3496_p1  ;;  %p3518_p11 = scmp.lt.s32.totalorder %s3516_s0, %s3509_s2 }
 0x1aa   : > { %p3513_p9 = pneg %p3512_p3  ;;  %p3519_p6 = por %p3518_p11, %p3517_p4 }
 0x1ac   : > { %p3520_p13 = pnand %p3519_p6, %p3513_p9 }
 0x1ae   : > { %3523 = shalt.err (!%p3520_p13)
}
 0x1af   : > { %2950 = dma.hbm_to_vmem [thread:$0]  (!%p4214_p10), %s4210_s3, 128, %s4218_s1, %s646_s5  }
 0x1b0   : > { %s2631_s30 = sshll.u32 %s4203_s21, 2  ;;  %s2632_s17 = sshll.u32 %s4642_s18, 6 }
 0x1b1   : > { %s4655_s23 = sld [smem:[#allocation53_spill]]  ;;  %s668_s2 = scalar_lea.vmem [#allocation7], %s2631_s30 }
 0x1b2   : > { %s675_s27 = sshll.u32 %s668_s2, 4  ;;  %s4656_s0 = sand.u32 1, %s3704_s29   ;;  %s676_s27 = int_to_ptr.vmem [resolvable:$true] %s675_s27 }
 0x1b3   : > { %s665_s7 = scalar_lea.sflag [#allocation8], %s4656_s0 }
 0x1b7   : > { %s4252_s6 = scalar_lea.hbm %s4655_s23, %s2632_s17  ;;  %s3529_s18 = scalar_lea.hbm %s4655_s23, 128 }
 0x1b8   : > { %s3524_s8 = scalar_lea.hbm %s4252_s6, 64  ;;  %p3530_p0 = scmp.lt.u32.totalorder %s4252_s6, %s4655_s23 }
 0x1b9   : > { %p3525_p4 = scmp.ne.s32.totalorder %s4252_s6, %s3524_s8  ;;  %p3531_p7 = scmp.lt.u32.totalorder %s3529_s18, %s3524_s8 }
 0x1ba   : > { %p3533_p8 = scmp.lt.u32.totalorder %s3524_s8, %s4252_s6 }
 0x1bb   : > { %p3527_p9 = pnand %p3525_p4, %p3496_p1  ;;  %p3532_p5 = por %p3531_p7, %p3530_p0 }
 0x1bd   : > { %p3528_p12 = pneg %p3527_p9  ;;  %p3534_p3 = por %p3533_p8, %p3532_p5 }
 0x1bf   : > { %p3535_p11 = pnand %p3534_p3, %p3528_p12 }
 0x1c1   : > { %3538 = shalt.err (!%p3535_p11)
}
 0x1c2   : > { %s3539_s30 = scalar_lea.vmem %s676_s27, 64  ;;  %s3723_s17 = smov [#allocation7]  }
 0x1c3   : > { %p3540_p6 = scmp.ne.s32.totalorder %s676_s27, %s3539_s30  ;;  %s3544_s24 = sshll.u32 %s3723_s17, 4  ;;  %s3545_s24 = int_to_ptr.vmem [resolvable:$false] %s3544_s24 }
 0x1c4   : > { %s3546_s25 = scalar_lea.vmem %s3545_s24, 128  ;;  %p3547_p9 = scmp.lt.s32.totalorder %s676_s27, %s3545_s24 }
 0x1c5   : > { %p3542_p13 = pnand %p3540_p6, %p3496_p1  ;;  %p3548_p2 = scmp.lt.s32.totalorder %s3546_s25, %s3539_s30 }
 0x1c7   : > { %p3543_p4 = pneg %p3542_p13  ;;  %p3549_p0 = por %p3548_p2, %p3547_p9 }
 0x1c9   : > { %p3550_p7 = pnand %p3549_p0, %p3543_p4 }
 0x1cb   : > { %3553 = shalt.err (!%p3550_p7)
}
 0x1cc   : > { %2953 = dma.hbm_to_vmem [thread:$0]  (!%p4214_p10), %s4252_s6, 64, %s676_s27, %s665_s7  }
 0x1cd   : > { %s4657_s8 = sld [smem:[#allocation51_spill]] }
 0x1d3   : > { %p4658_p12 = scmp.ne.s32.totalorder %s4657_s8, 0 }
 0x1d4   : > { %s4659_s2 = sld [smem:[#allocation46_spill]] (!%p4658_p12)  ;;  %p4660_p2 = scmp.ne.s32.totalorder (!%p4658_p12), %s4649_s28, 0 }
 0x1d5   : > { %684 = sbr.rel (%p4658_p12) target bundleno = 2925 (0xb6d), region = 84 }
 0x1da   : > { %s4278_s0 = sand.u32 (!%p4658_p12), 1, %s4659_s2  }
 0x1db   : > { %s4281_s3 = sshll.u32 (!%p4658_p12), %s4278_s0, 3  ;;  %s687_s5 = scalar_lea.sflag (!%p4658_p12), [#allocation5], %s4278_s0 }
 0x1dc   : > { %s690_s18 = scalar_lea.vmem [#allocation4], %s4281_s3 }
 0x1dd   : > { %3635 = dma.done.wait (%p4660_p2), %s687_s5, 128  }
 0x1de   : > { %3637 = vsyncadd (%p4660_p2), %s687_s5, 4294967168  ;;  %s4661_s4 = sld [smem:[#allocation50_spill]]  ;;  %s2635_s7 = sshll.u32 %s4278_s0, 2 }
 0x1df   : > { %s699_s21 = scalar_lea.vmem [#allocation7], %s2635_s7 }
 0x1e4   : > { %s695_s6 = sand.u32 1, %s4661_s4  }
 0x1e5   : > { %s696_s27 = scalar_lea.sflag [#allocation8], %s695_s6 }
 0x1e6   : > { %3639 = dma.done.wait (%p4660_p2), %s696_s27, 64  }
 0x1e7   : > { %3641 = vsyncadd (%p4660_p2), %s696_s27, 4294967232  ;;  %p4662_p10 = scmp.eq.s32.totalorder %s4661_s4, 0 }
 0x1e9   : > { %3643 = dma.done.wait (%p4662_p10), [#allocation8], 256   ;;  %p4663_p1 = pmov %p4662_p10 }
 0x1eb   : > { %3645 = vsyncadd (%p4663_p1), [#allocation8], 4294967040  ;;  %p4664_p5 = pmov %p4663_p1 }
 0x1ec   : > { %p4665_p8 = pmov %p4663_p1 }
 0x1ed   : > { %3647 = dma.done.wait (%p4664_p5), [#allocation11], 272  }
 0x1ee   : > { %3649 = vsyncadd (%p4665_p8), [#allocation11], 4294967024  ;;  %p4666_p3 = pmov %p4663_p1 }
 0x1ef   : > { %p4667_p11 = pmov %p4663_p1 }
 0x1f0   : > { %3651 = dma.done.wait (%p4666_p3), [#allocation14], 272  }
 0x1f1   : > { %3653 = vsyncadd (%p4667_p11), [#allocation14], 4294967024  ;;  %p4668_p6 = pmov %p4663_p1 }
 0x1f2   : > { %p4669_p13 = pmov %p4663_p1 }
 0x1f3   : > { %3655 = dma.done.wait (%p4668_p6), [#allocation17], 32  }
 0x1f4   : > { %3657 = vsyncadd (%p4669_p13), [#allocation17], 4294967264  ;;  %p4670_p4 = pmov %p4663_p1 }
 0x1f5   : > { %p4671_p9 = pmov %p4663_p1 }
 0x1f6   : > { %3659 = dma.done.wait (%p4670_p4), [#allocation20], 272  }
 0x1f7   : > { %3661 = vsyncadd (%p4671_p9), [#allocation20], 4294967024  ;;  %p4672_p0 = pmov %p4663_p1 }
 0x1f9   : > { %3663 = dma.done.wait (%p4672_p0), [#allocation23], 1040   ;;  %p4673_p7 = pmov %p4672_p0 }
 0x1fa   : > { %p4674_p12 = pmov %p4672_p0 }
 0x1fb   : > { %3665 = vsyncadd (%p4673_p7), [#allocation23], 4294966256 }
 0x1fc   : > { %3667 = dma.done.wait (%p4674_p12), [#allocation26], 32   ;;  %p4675_p2 = pmov %p4672_p0 }
 0x1fd   : > { %p4676_p10 = pmov %p4672_p0 }
 0x1fe   : > { %3669 = vsyncadd (%p4675_p2), [#allocation26], 4294967264 }
 0x1ff   : > { %3671 = dma.done.wait (%p4676_p10), [#allocation29], 16   ;;  %p4677_p1 = pmov %p4672_p0 }
 0x200   : > { %v3724_v0 = vmov 0.0   ;;  %vm3725_vm0 = vmmov 0   ;;  %v3066_v1 = vld [vmem:[#allocation12] sm:$0xff]   ;;  %v3067_v2 = vld [vmem:[#allocation12 + $0x8] sm:$0xff]   ;;  %vm846_vm1 = vcmask 261120   ;;  %v3069_v5 = vld [vmem:[#allocation9 + $0x8] sm:$0xff]   ;;  %v905_v22 = vlaneseq }
 0x201   : > { %3673 = vsyncadd (%p4677_p1), [#allocation29], 4294967280  ;;  %2740 = vmatprep.subr.bf16.mxu1 %v3724_v0  ;;  %2744 = vmatprep.mubr.msk.bf16.mxu1 %vm3725_vm0, %v3724_v0  ;;  %v822_v3 = vld [vmem:[%s699_s21] sm:$0xf]  ;;  %v3068_v4 = vld [vmem:[#allocation9] sm:$0xff]   ;;  %s3726_s28 = smov 104  }
 0x202   : > { %2768 = vmatprep.subr.bf16.mxu0 %v3724_v0  ;;  %2770 = vmatprep.mubr.msk.bf16.mxu0 %vm3725_vm0, %v3724_v0  ;;  %v4337_v6 = vld [vmem:[%s690_s18] sm:$0xff]  ;;  %v2652_v8 = vld [vmem:[#allocation13] ss:$0 sm:$0xff]  ;;  %s3727_s1 = smov 120   ;;  %s3728_s30 = smov 112   ;;  %v906_v26 = vshrl.u32 %v905_v22, 7 }
 0x203   : > { %2741 = vmatpush3.bf16.msra.mxu1 %v3066_v1  ;;  %v1201_v7 = vpack.c.bf16 %v4337_v6, %v4337_v6  ;;  %v2660_v14 = vld [vmem:[#allocation10] ss:$0 sm:$0xff]  ;;  %s3729_s17 = smov 96   ;;  %v3730_v20 = vmov 1983009808   ;;  %vm1040_vm2 = vcmask 60416  }
 0x204   : > { %2742 = vmatprep.subr.bf16.mxu1 %v3724_v0  ;;  %v903_v21 = vunpack.c.l.s4 %v3730_v20  ;;  %v3731_v23 = vmov 1934713408   ;;  %vm1427_vm3 = vcmask 64512   ;;  %vm1655_vm4 = vcmask 1043456   ;;  %s3732_s24 = smov 16   ;;  %s3733_s25 = smov 8  }
 0x205   : > { %v935_v24 = vunpack.c.l.s4 %v3731_v23  ;;  %s3734_s8 = smov 24   ;;  %vm1994_vm5 = vcmask 130048   ;;  %vm1996_vm6 = vcmask 195584   ;;  %s4678_s2 = sld [smem:[#allocation48_spill]] }
 0x206   : > { %v904_v25 = vunpack.c.0.s8 %v903_v21  ;;  %s815_s5 = scalar_lea.vmem [#allocation31], %s4281_s3  ;;  %s4679_s7 = sld [smem:[#allocation62_spill]] }
 0x207   : > { %2743 = vmatpush3.bf16.msra.mxu1 %v3067_v2  ;;  %v936_v29 = vunpack.c.0.s8 %v935_v24  ;;  %s2342_s21 = sshll.u32 %s815_s5, 4  ;;  %p4680_p8 = scmp.ne.s32.totalorder %s4650_s16, 0  ;;  %s2343_s21 = int_to_ptr.vmem [resolvable:$true] %s2342_s21 }
 0x208   : > { %2748 = vmatprep.subr.bf16.mxu1 %v3724_v0  ;;  %v4349_v30 = vsub.s32 %v904_v25, %v906_v26 }
 0x209   : > { %v4351_v36 = vsub.s32 %v936_v29, %v906_v26 }
 0x20a   : > { %2745 = vmatmul.mubr.msk.bf16.vlgmr.msra.gmra.mrb[0].mxu1 %vm846_vm1, %v822_v3 }
 0x20b   : > { %2749 = vmatpush3.bf16.msra.mxu1 %v3068_v4  ;;  %2752 = vmatprep.mubr.msk.bf16.mxu1 %vm3725_vm0, %v3724_v0  ;;  %s2699_s18 = sshll.u32 %s4678_s2, 7 }
 0x20c   : > { %2750 = vmatprep.subr.bf16.mxu1 %v3724_v0  ;;  %s4501_s27 = scalar_lea.hbm %s4679_s7, %s2699_s18 }
 0x20f   : > { %2751 = vmatpush3.bf16.msra.mxu1 %v3069_v5 }
 0x210   : > { %2756 = vmatprep.subr.bf16.mxu1 %v3724_v0 }
 0x212   : > { %2753 = vmatmul.mubr.msk.bf16.vlgmr.msra.gmra.mrb[4].mxu1 %vm846_vm1, %v1201_v7 }
 0x213   : > { %2758 = vmatprep.mubr.msk.bf16.mxu1 %vm3725_vm0, %v3724_v0 }
 0x2dd   : > { %v884_v9 = vpop.f32.mrb[0].mxu1 }
 0x2de   : > { %v885_v10 = vadd.f32 %v2652_v8, %v884_v9  ;;  %v2746_v11 = vpop.f32.mrb[1].mxu1 }
 0x2df   : > { %v887_v12 = vpop.f32.mrb[2].mxu1 }
 0x2e0   : > { %897 = vrot.lane.b32.xlu1 %v885_v10, %s3726_s28  ;;  %891 = vrot.lane.b32.xlu0 %v885_v10, %s3727_s1  ;;  %v2747_v13 = vpop.f32.mrb[3].mxu1 }
 0x2e4   : > { %894 = vrot.lane.b32.xlu0 %v885_v10, %s3728_s30 }
 0x2e5   : > { %v1263_v15 = vpop.f32.mrb[4].mxu1 }
 0x2e6   : > { %v1264_v16 = vadd.f32 %v2660_v14, %v1263_v15  ;;  %v2754_v17 = vpop.f32.mrb[5].mxu1 }
 0x2e7   : > { %v1266_v18 = vpop.f32.mrb[6].mxu1 }
 0x2e8   : > { %1273 = vrot.lane.b32.xlu0 %v1264_v16, %s3728_s30  ;;  %1270 = vrot.lane.b32.xlu1 %v1264_v16, %s3727_s1  ;;  %v2755_v19 = vpop.f32.mrb[7].mxu1  ;;  %s3554_s1 = scalar_lea.vmem %s2343_s21, 128  ;;  %s3735_s30 = smov [#allocation31]  }
 0x2e9   : > { %p3555_p5 = scmp.ne.s32.totalorder %s2343_s21, %s3554_s1 }
 0x2eb   : > { %p3556_p3 = pnand %p3555_p5, %p4680_p8 }
 0x2ec   : > { %1045 = vrot.lane.b32.xlu0 %v885_v10, %s3729_s17  ;;  %1276 = vrot.lane.b32.xlu1 %v1264_v16, %s3726_s28  ;;  %s2314_s28 = scalar_lea.sflag [#allocation32], %s4278_s0 }
 0x2ed   : > { %p3557_p11 = pneg %p3556_p3 }
 0x352   : > { %v898_v27 = vpop.permute.xlu1 %897  ;;  %v892_v28 = vpop.permute.xlu0 %891 }
 0x353   : > { %1047 = vrot.lane.b32.xlu1 %v892_v28, %s3729_s17  ;;  %v916_v31 = vcombine.low %v892_v28, %v898_v27  ;;  %v917_v32 = vcombine.high %v892_v28, %v898_v27 }
 0x355   : > { %v924_v37 = vrot.slane %v916_v31, %v4349_v30  ;;  %v931_v38 = vrot.slane %v917_v32, %v4349_v30 }
 0x356   : > { %v895_v33 = vpop.permute.xlu0 %894 }
 0x357   : > { %v900_v34 = vcombine.low %v885_v10, %v895_v33  ;;  %v901_v35 = vcombine.high %v885_v10, %v895_v33  ;;  %1049 = vrot.lane.b32.xlu0 %v895_v33, %s3729_s17  ;;  %1051 = vrot.lane.b32.xlu1 %v898_v27, %s3729_s17  ;;  %s3558_s17 = sshll.u32 %s3735_s30, 4  ;;  %s3559_s17 = int_to_ptr.vmem [resolvable:$false] %s3558_s17 }
 0x358   : > { %p3561_p6 = scmp.lt.s32.totalorder %s2343_s21, %s3559_s17 }
 0x359   : > { %v908_v39 = vrot.slane %v900_v34, %v4349_v30  ;;  %v915_v40 = vrot.slane %v901_v35, %v4349_v30 }
 0x35a   : > { %v1271_v41 = vpop.permute.xlu1 %1270  ;;  %v1274_v46 = vpop.permute.xlu0 %1273 }
 0x35b   : > { %v932_v42 = vcombine.low %v908_v39, %v924_v37  ;;  %v933_v43 = vcombine.high %v908_v39, %v924_v37  ;;  %v948_v44 = vcombine.low %v915_v40, %v931_v38  ;;  %v949_v45 = vcombine.high %v915_v40, %v931_v38 }
 0x35c   : > { %v1279_v51 = vcombine.low %v1264_v16, %v1274_v46  ;;  %v1280_v52 = vcombine.high %v1264_v16, %v1274_v46 }
 0x35d   : > { %v940_v47 = vrot.slane %v932_v42, %v4351_v36  ;;  %v947_v48 = vrot.slane %v933_v43, %v4351_v36  ;;  %v956_v49 = vrot.slane %v948_v44, %v4351_v36  ;;  %v963_v50 = vrot.slane %v949_v45, %v4351_v36 }
 0x35e   : > { %v1277_v53 = vpop.permute.xlu1 %1276  ;;  %v1287_v1 = vrot.slane %v1279_v51, %v4349_v30  ;;  %v1294_v2 = vrot.slane %v1280_v52, %v4349_v30 }
 0x35f   : > { %v968_v54 = vcombine.low %v940_v47, %v947_v48  ;;  %v2656_v55 = vcombine.high %v940_v47, %v947_v48  ;;  %v984_v56 = vcombine.low %v956_v49, %v963_v50  ;;  %v2657_v57 = vcombine.high %v956_v49, %v963_v50 }
 0x360   : > { %v1295_v58 = vcombine.low %v1271_v41, %v1277_v53  ;;  %v1296_v59 = vcombine.high %v1271_v41, %v1277_v53 }
 0x361   : > { %v975_v60 = vrot.slane %v968_v54, %v4349_v30  ;;  %v983_v61 = vrot.slane %v2656_v55, %v4349_v30  ;;  %v991_v62 = vrot.slane %v984_v56, %v4349_v30  ;;  %v999_v63 = vrot.slane %v2657_v57, %v4349_v30 }
 0x362   : > { %v1303_v3 = vrot.slane %v1295_v58, %v4349_v30  ;;  %v1310_v4 = vrot.slane %v1296_v59, %v4349_v30 }
 0x363   : > { %v1000_v5 = vcombine.low %v975_v60, %v983_v61  ;;  %v1001_v7 = vcombine.high %v975_v60, %v983_v61  ;;  %v1016_v8 = vcombine.low %v991_v62, %v999_v63  ;;  %v1017_v9 = vcombine.high %v991_v62, %v999_v63 }
 0x364   : > { %v1311_v10 = vcombine.low %v1287_v1, %v1303_v3  ;;  %v1312_v11 = vcombine.high %v1287_v1, %v1303_v3  ;;  %v1327_v12 = vcombine.low %v1294_v2, %v1310_v4  ;;  %v1328_v13 = vcombine.high %v1294_v2, %v1310_v4  ;;  %v1046_v1 = vpop.permute.xlu0 %1045 }
 0x365   : > { %v1008_v14 = vrot.slane %v1000_v5, %v4351_v36  ;;  %v1015_v15 = vrot.slane %v1001_v7, %v4351_v36  ;;  %v1024_v16 = vrot.slane %v1016_v8, %v4351_v36  ;;  %v1031_v17 = vrot.slane %v1017_v9, %v4351_v36 }
 0x366   : > { %v1319_v18 = vrot.slane %v1311_v10, %v4351_v36  ;;  %v1326_v19 = vrot.slane %v1312_v11, %v4351_v36  ;;  %v1335_v20 = vrot.slane %v1327_v12, %v4351_v36  ;;  %v1342_v21 = vrot.slane %v1328_v13, %v4351_v36 }
 0x367   : > { %v1032_v22 = vcombine.low %v1008_v14, %v1024_v16  ;;  %v1033_v23 = vcombine.high %v1008_v14, %v1024_v16  ;;  %v1034_v24 = vcombine.low %v1015_v15, %v1031_v17  ;;  %v1035_v25 = vcombine.high %v1015_v15, %v1031_v17 }
 0x368   : > { %v1347_v26 = vcombine.low %v1319_v18, %v1326_v19  ;;  %v2664_v27 = vcombine.high %v1319_v18, %v1326_v19  ;;  %v1363_v28 = vcombine.low %v1335_v20, %v1342_v21  ;;  %v2665_v29 = vcombine.high %v1335_v20, %v1342_v21 }
 0x369   : > { %v1036_v31 = vpack.c.bf16 %v1032_v22, %v1032_v22  ;;  %v1037_v32 = vpack.c.bf16 %v1033_v23, %v1033_v23  ;;  %v1038_v33 = vpack.c.bf16 %v1034_v24, %v1034_v24  ;;  %v1039_v34 = vpack.c.bf16 %v1035_v25, %v1035_v25 }
 0x36a   : > { %v1354_v35 = vrot.slane %v1347_v26, %v4349_v30  ;;  %v1362_v37 = vrot.slane %v2664_v27, %v4349_v30  ;;  %v1370_v38 = vrot.slane %v1363_v28, %v4349_v30  ;;  %v1378_v39 = vrot.slane %v2665_v29, %v4349_v30 }
 0x36b   : > { %1041 = vst.msk [vmem:[#allocation2] sm:$0xf] %vm1040_vm2, %v1036_v31  ;;  %1042 = vst.msk [vmem:[#allocation2 + $0x4] sm:$0xf] %vm1040_vm2, %v1037_v32 }
 0x36c   : > { %1043 = vst.msk [vmem:[#allocation2 + $0x8] sm:$0xf] %vm1040_vm2, %v1038_v33  ;;  %1044 = vst.msk [vmem:[#allocation2 + $0xc] sm:$0xf] %vm1040_vm2, %v1039_v34  ;;  %v1379_v40 = vcombine.low %v1354_v35, %v1362_v37  ;;  %v1395_v41 = vcombine.low %v1370_v38, %v1378_v39  ;;  %v1380_v42 = vcombine.high %v1354_v35, %v1362_v37 }
 0x36d   : > { %v1396_v43 = vcombine.high %v1370_v38, %v1378_v39 }
 0x36e   : > { %v1387_v44 = vrot.slane %v1379_v40, %v4351_v36  ;;  %v1403_v45 = vrot.slane %v1395_v41, %v4351_v36  ;;  %v1394_v46 = vrot.slane %v1380_v42, %v4351_v36 }
 0x36f   : > { %v1410_v47 = vrot.slane %v1396_v43, %v4351_v36 }
 0x370   : > { %v1411_v52 = vcombine.low %v1387_v44, %v1403_v45  ;;  %v1412_v58 = vcombine.high %v1387_v44, %v1403_v45 }
 0x371   : > { %v1413_v53 = vcombine.low %v1394_v46, %v1410_v47  ;;  %v1414_v62 = vcombine.high %v1394_v46, %v1410_v47 }
 0x372   : > { %v1419_v48 = vld [vmem:[#allocation2] sm:$0xf]  ;;  %v1420_v54 = vld [vmem:[#allocation2 + $0x4] sm:$0xf]  ;;  %v1415_v55 = vpack.c.bf16 %v1411_v52, %v1411_v52  ;;  %v1416_v60 = vpack.c.bf16 %v1412_v58, %v1412_v58 }
 0x373   : > { %v1421_v49 = vld [vmem:[#allocation2 + $0x8] sm:$0xf]  ;;  %v1432_v50 = vsel %vm1427_vm3, %v1419_v48, 0  ;;  %v1417_v56 = vpack.c.bf16 %v1413_v53, %v1413_v53  ;;  %v1478_v57 = vsel %vm1427_vm3, %v1420_v54, 0  ;;  %v1422_v59 = vld [vmem:[#allocation2 + $0xc] sm:$0xf]  ;;  %v1418_v63 = vpack.c.bf16 %v1414_v62, %v1414_v62 }
 0x374   : > { %v1524_v51 = vsel %vm1427_vm3, %v1421_v49, 0  ;;  %2757 = vmatpush3.bf16.xpose.msra.mxu1 %v1432_v50  ;;  %v1570_v61 = vsel %vm1427_vm3, %v1422_v59, 0 }
 0x375   : > { %2769 = vmatpush3.bf16.xpose.msra.mxu0 %v1524_v51  ;;  %2762 = vmatprep.subr.bf16.mxu1 %v3724_v0 }
 0x376   : > { %2780 = vmatprep.subr.bf16.mxu0 %v3724_v0 }
 0x37b   : > { %2759 = vmatmul.mubr.msk.bf16.vlgmr.msra.gmra.mrb[8].mxu1 %vm1427_vm3, %v1415_v55 }
 0x37c   : > { %2771 = vmatmul.mubr.msk.bf16.vlgmr.msra.gmra.mrb[0].mxu0 %vm1427_vm3, %v1417_v56  ;;  %2763 = vmatpush3.bf16.xpose.msra.mxu1 %v1478_v57 }
 0x37d   : > { %2764 = vmatprep.mubr.msk.bf16.mxu1 %vm3725_vm0, %v3724_v0  ;;  %2774 = vmatprep.subr.bf16.mxu1 %v3724_v0 }
 0x37e   : > { %2782 = vmatprep.mubr.msk.bf16.mxu0 %vm3725_vm0, %v3724_v0 }
 0x383   : > { %2765 = vmatmul.mubr.msk.bf16.vlgmr.msra.gmra.mrb[12].mxu1 %vm1427_vm3, %v1416_v60 }
 0x384   : > { %2775 = vmatpush3.bf16.xpose.msra.mxu1 %v1570_v61  ;;  %2776 = vmatprep.mubr.msk.bf16.mxu1 %vm3725_vm0, %v3724_v0 }
 0x385   : > { %2786 = vmatprep.subr.bf16.mxu1 %v3724_v0 }
 0x38b   : > { %2777 = vmatmul.mubr.msk.bf16.vlgmr.msra.gmra.mrb[16].mxu1 %vm1427_vm3, %v1418_v63 }
 0x38c   : > { %2788 = vmatprep.mubr.msk.bf16.mxu1 %vm3725_vm0, %v3724_v0 }
 0x3c5   : > { %v1048_v2 = vpop.permute.xlu1 %1047 }
 0x3c9   : > { %v1050_v3 = vpop.permute.xlu0 %1049  ;;  %v1052_v4 = vpop.permute.xlu1 %1051 }
 0x3ca   : > { %v1057_v5 = vcombine.low %v1046_v1, %v1050_v3  ;;  %v1058_v7 = vcombine.high %v1046_v1, %v1050_v3  ;;  %v1073_v8 = vcombine.low %v1048_v2, %v1052_v4  ;;  %v1074_v9 = vcombine.high %v1048_v2, %v1052_v4 }
 0x3cc   : > { %v1065_v10 = vrot.slane %v1057_v5, %v4349_v30  ;;  %v1072_v11 = vrot.slane %v1058_v7, %v4349_v30  ;;  %v1081_v12 = vrot.slane %v1073_v8, %v4349_v30  ;;  %v1088_v13 = vrot.slane %v1074_v9, %v4349_v30 }
 0x3ce   : > { %v1089_v14 = vcombine.low %v1065_v10, %v1081_v12  ;;  %v1090_v15 = vcombine.high %v1065_v10, %v1081_v12  ;;  %v1105_v16 = vcombine.low %v1072_v11, %v1088_v13  ;;  %v1106_v17 = vcombine.high %v1072_v11, %v1088_v13 }
 0x3d0   : > { %v1097_v18 = vrot.slane %v1089_v14, %v4351_v36  ;;  %v1104_v19 = vrot.slane %v1090_v15, %v4351_v36  ;;  %v1113_v20 = vrot.slane %v1105_v16, %v4351_v36  ;;  %v1120_v21 = vrot.slane %v1106_v17, %v4351_v36 }
 0x3d2   : > { %v1125_v22 = vcombine.low %v1097_v18, %v1104_v19  ;;  %v2658_v23 = vcombine.high %v1097_v18, %v1104_v19  ;;  %v1141_v24 = vcombine.low %v1113_v20, %v1120_v21  ;;  %v2659_v25 = vcombine.high %v1113_v20, %v1120_v21 }
 0x3d4   : > { %v1132_v26 = vrot.slane %v1125_v22, %v4349_v30  ;;  %v1140_v27 = vrot.slane %v2658_v23, %v4349_v30  ;;  %v1148_v28 = vrot.slane %v1141_v24, %v4349_v30  ;;  %v1156_v29 = vrot.slane %v2659_v25, %v4349_v30 }
 0x3d6   : > { %v1157_v31 = vcombine.low %v1132_v26, %v1140_v27  ;;  %v1158_v32 = vcombine.high %v1132_v26, %v1140_v27  ;;  %v1173_v33 = vcombine.low %v1148_v28, %v1156_v29  ;;  %v1174_v34 = vcombine.high %v1148_v28, %v1156_v29 }
 0x3d8   : > { %v1165_v35 = vrot.slane %v1157_v31, %v4351_v36  ;;  %v1172_v37 = vrot.slane %v1158_v32, %v4351_v36  ;;  %v1181_v38 = vrot.slane %v1173_v33, %v4351_v36  ;;  %v1188_v39 = vrot.slane %v1174_v34, %v4351_v36 }
 0x3da   : > { %v1189_v40 = vcombine.low %v1165_v35, %v1181_v38  ;;  %v1190_v41 = vcombine.high %v1165_v35, %v1181_v38  ;;  %v1191_v42 = vcombine.low %v1172_v37, %v1188_v39  ;;  %v1192_v43 = vcombine.high %v1172_v37, %v1188_v39 }
 0x3dc   : > { %v1193_v44 = vpack.c.bf16 %v1189_v40, %v1189_v40  ;;  %v1194_v45 = vpack.c.bf16 %v1190_v41, %v1190_v41  ;;  %v1195_v46 = vpack.c.bf16 %v1191_v42, %v1191_v42  ;;  %v1196_v47 = vpack.c.bf16 %v1192_v43, %v1192_v43 }
 0x3de   : > { %1197 = vst.msk [vmem:[#allocation3] sm:$0xf] %vm1040_vm2, %v1193_v44  ;;  %1198 = vst.msk [vmem:[#allocation3 + $0x4] sm:$0xf] %vm1040_vm2, %v1194_v45 }
 0x3df   : > { %1199 = vst.msk [vmem:[#allocation3 + $0x8] sm:$0xf] %vm1040_vm2, %v1195_v46  ;;  %1200 = vst.msk [vmem:[#allocation3 + $0xc] sm:$0xf] %vm1040_vm2, %v1196_v47 }
 0x3e5   : > { %v1423_v48 = vld [vmem:[#allocation3] sm:$0xf]  ;;  %v1424_v49 = vld [vmem:[#allocation3 + $0x4] sm:$0xf] }
 0x3e6   : > { %v1657_v50 = vsel %vm1655_vm4, %v1423_v48, 0  ;;  %v1703_v51 = vsel %vm1655_vm4, %v1424_v49, 0  ;;  %v1425_v20 = vld [vmem:[#allocation3 + $0x8] sm:$0xf]  ;;  %v1426_v31 = vld [vmem:[#allocation3 + $0xc] sm:$0xf] }
 0x3e7   : > { %2781 = vmatpush3.bf16.msra.mxu0 %v1657_v50  ;;  %2787 = vmatpush3.bf16.msra.mxu1 %v1703_v51  ;;  %v1749_v25 = vsel %vm1655_vm4, %v1425_v20, 0  ;;  %v1795_v35 = vsel %vm1655_vm4, %v1426_v31, 0 }
 0x3e8   : > { %2792 = vmatprep.subr.bf16.mxu0 %v3724_v0  ;;  %2798 = vmatprep.subr.bf16.mxu1 %v3724_v0 }
 0x44e   : > { %v1468_v52 = vpop.f32.mrb[8].mxu1 }
 0x44f   : > { %v1560_v53 = vpop.f32.mrb[0].mxu0  ;;  %v2760_v54 = vpop.f32.mrb[9].mxu1  ;;  %v1612_v56 = vsel %vm1427_vm3, %v1468_v52, -inf }
 0x450   : > { %v2772_v55 = vpop.f32.mrb[1].mxu0  ;;  %1613 = vmax.xlane.f32.xlu0 %v1612_v56  ;;  %v1471_v58 = vpop.f32.mrb[10].mxu1  ;;  %v1618_v61 = vsel %vm1427_vm3, %v1560_v53, -inf }
 0x451   : > { %v1563_v57 = vpop.f32.mrb[2].mxu0  ;;  %v2761_v59 = vpop.f32.mrb[11].mxu1 }
 0x452   : > { %v2773_v60 = vpop.f32.mrb[3].mxu0 }
 0x454   : > { %1619 = vmax.xlane.f32.xlu0 %v1618_v61 }
 0x456   : > { %v1514_v62 = vpop.f32.mrb[12].mxu1 }
 0x457   : > { %v2766_v63 = vpop.f32.mrb[13].mxu1  ;;  %v1615_v1 = vsel %vm1427_vm3, %v1514_v62, -inf }
 0x458   : > { %1616 = vmax.xlane.f32.xlu1 %v1615_v1  ;;  %v1517_v2 = vpop.f32.mrb[14].mxu1 }
 0x459   : > { %v2767_v3 = vpop.f32.mrb[15].mxu1 }
 0x45e   : > { %v1606_v4 = vpop.f32.mrb[16].mxu1 }
 0x45f   : > { %v2778_v5 = vpop.f32.mrb[17].mxu1  ;;  %v1621_v7 = vsel %vm1427_vm3, %v1606_v4, -inf }
 0x460   : > { %1622 = vmax.xlane.f32.xlu0 %v1621_v7  ;;  %v1609_v8 = vpop.f32.mrb[18].mxu1 }
 0x461   : > { %v2779_v9 = vpop.f32.mrb[19].mxu1 }
 0x4dd   : > { %v1614_v10 = vpop.xlane.xlu0 %1613 }
 0x4de   : > { %v1624_v11 = vsub.f32 %v1468_v52, %v1614_v10 }
 0x4e0   : > { %v1628_v12 = vmul.f32 1.442695, %v1624_v11 }
 0x4e1   : > { %v1620_v13 = vpop.xlane.xlu0 %1619 }
 0x4e2   : > { %3082 = vpow2.f32 %v1628_v12  ;;  %v1626_v14 = vsub.f32 %v1560_v53, %v1620_v13 }
 0x4e4   : > { %v1632_v15 = vmul.f32 1.442695, %v1626_v14 }
 0x4e5   : > { %v1617_v16 = vpop.xlane.xlu1 %1616 }
 0x4e6   : > { %3084 = vpow2.f32 %v1632_v15  ;;  %v1625_v17 = vsub.f32 %v1514_v62, %v1617_v16 }
 0x4e8   : > { %v1630_v18 = vmul.f32 1.442695, %v1625_v17 }
 0x4ea   : > { %3086 = vpow2.f32 %v1630_v18  ;;  %v3070_v18 = vld [vmem:[#allocation15] sm:$0xff]  }
 0x4ec   : > { %v3083_v19 = vpop.eup %3082 }
 0x4ed   : > { %v1623_v21 = vpop.xlane.xlu0 %1622  ;;  %v1636_v22 = vsel %vm1427_vm3, %v3083_v19, 0.0  ;;  %v1648_v23 = vpack.c.bf16 %v3083_v19, %v3083_v19 }
 0x4ee   : > { %v1627_v24 = vsub.f32 %v1606_v4, %v1623_v21  ;;  %1637 = vadd.xlane.f32.xlu1 %v1636_v22 }
 0x4ef   : > { %2783 = vmatmul.mubr.msk.bf16.vlgmr.msra.gmra.mrb[4].mxu0 %vm1427_vm3, %v1648_v23 }
 0x4f0   : > { %v3085_v26 = vpop.eup %3084  ;;  %v1634_v27 = vmul.f32 1.442695, %v1627_v24  ;;  %2793 = vmatpush3.bf16.msra.mxu0 %v1749_v25  ;;  %2794 = vmatprep.mubr.msk.bf16.mxu0 %vm3725_vm0, %v3724_v0 }
 0x4f1   : > { %v1642_v28 = vsel %vm1427_vm3, %v3085_v26, 0.0  ;;  %2804 = vmatprep.subr.bf16.mxu0 %v3724_v0  ;;  %v1650_v34 = vpack.c.bf16 %v3085_v26, %v3085_v26 }
 0x4f2   : > { %3088 = vpow2.f32 %v1634_v27  ;;  %1643 = vadd.xlane.f32.xlu1 %v1642_v28  ;;  %v3071_v27 = vld [vmem:[#allocation15 + $0x8] sm:$0xff]  }
 0x4f4   : > { %v3087_v29 = vpop.eup %3086 }
 0x4f5   : > { %v1639_v32 = vsel %vm1427_vm3, %v3087_v29, 0.0  ;;  %v1649_v33 = vpack.c.bf16 %v3087_v29, %v3087_v29 }
 0x4f6   : > { %1640 = vadd.xlane.f32.xlu0 %v1639_v32 }
 0x4f7   : > { %2789 = vmatmul.mubr.msk.bf16.vlgmr.msra.gmra.mrb[20].mxu1 %vm1427_vm3, %v1649_v33  ;;  %2795 = vmatmul.mubr.msk.bf16.vlgmr.msra.gmra.mrb[8].mxu0 %vm1427_vm3, %v1650_v34 }
 0x4f8   : > { %2799 = vmatpush3.bf16.msra.mxu1 %v1795_v35  ;;  %2800 = vmatprep.mubr.msk.bf16.mxu1 %vm3725_vm0, %v3724_v0 }
 0x4f9   : > { %2808 = vmatprep.mubr.msk.bf16.mxu0 %vm3725_vm0, %v3724_v0  ;;  %2812 = vmatprep.subr.bf16.mxu1 %v3724_v0 }
 0x4fa   : > { %2805 = vmatpush3.bf16.msra.mxu0 %v3070_v18 }
 0x4fb   : > { %2806 = vmatprep.subr.bf16.mxu0 %v3724_v0 }
 0x4fc   : > { %v3089_v37 = vpop.eup %3088 }
 0x4fd   : > { %v1645_v38 = vsel %vm1427_vm3, %v3089_v37, 0.0  ;;  %v1651_v39 = vpack.c.bf16 %v3089_v37, %v3089_v37 }
 0x4fe   : > { %1646 = vadd.xlane.f32.xlu0 %v1645_v38  ;;  %2807 = vmatpush3.bf16.msra.mxu0 %v3071_v27 }
 0x4ff   : > { %2801 = vmatmul.mubr.msk.bf16.vlgmr.msra.gmra.mrb[24].mxu1 %vm1427_vm3, %v1651_v39  ;;  %2820 = vmatprep.subr.bf16.mxu0 %v3724_v0 }
 0x500   : > { %2816 = vmatprep.mubr.msk.bf16.mxu1 %vm3725_vm0, %v3724_v0 }
 0x57b   : > { %v1638_v40 = vpop.xlane.xlu1 %1637 }
 0x57c   : > { %3090 = vrcp.f32 %v1638_v40 }
 0x57f   : > { %v1644_v41 = vpop.xlane.xlu1 %1643 }
 0x580   : > { %3092 = vrcp.f32 %v1644_v41 }
 0x583   : > { %v1641_v42 = vpop.xlane.xlu0 %1640 }
 0x584   : > { %3094 = vrcp.f32 %v1641_v42 }
 0x586   : > { %v3091_v48 = vpop.eup %3090 }
 0x58a   : > { %v3093_v49 = vpop.eup %3092 }
 0x58b   : > { %v1647_v46 = vpop.xlane.xlu0 %1646 }
 0x58c   : > { %3096 = vrcp.f32 %v1647_v46 }
 0x58e   : > { %v3095_v62 = vpop.eup %3094 }
 0x596   : > { %v3097_v63 = vpop.eup %3096 }
 0x5c2   : > { %v1693_v43 = vpop.f32.mrb[4].mxu0 }
 0x5c3   : > { %v2784_v44 = vpop.f32.mrb[5].mxu0  ;;  %v1841_v52 = vmul.f32 %v3091_v48, %v1693_v43 }
 0x5c4   : > { %v1696_v45 = vpop.f32.mrb[6].mxu0 }
 0x5c5   : > { %v2785_v47 = vpop.f32.mrb[7].mxu0 }
 0x5ca   : > { %v1739_v50 = vpop.f32.mrb[20].mxu1  ;;  %v1785_v51 = vpop.f32.mrb[8].mxu0 }
 0x5cb   : > { %v1843_v53 = vmul.f32 %v3093_v49, %v1785_v51  ;;  %v2790_v54 = vpop.f32.mrb[21].mxu1  ;;  %v2796_v55 = vpop.f32.mrb[9].mxu0  ;;  %v1842_v2 = vmul.f32 %v3095_v62, %v1739_v50  ;;  %v2676_v51 = vld [vmem:[#allocation16] ss:$0 sm:$0xff] }
 0x5cc   : > { %v1742_v56 = vpop.f32.mrb[22].mxu1  ;;  %v1788_v57 = vpop.f32.mrb[10].mxu0 }
 0x5cd   : > { %v1845_v58 = vcombine.low %v1841_v52, %v1843_v53  ;;  %v1846_v59 = vcombine.high %v1841_v52, %v1843_v53  ;;  %v2791_v60 = vpop.f32.mrb[23].mxu1  ;;  %v2797_v61 = vpop.f32.mrb[11].mxu0 }
 0x5cf   : > { %v1853_v10 = vrot.slane %v1845_v58, %v4349_v30  ;;  %v1860_v11 = vrot.slane %v1846_v59, %v4349_v30 }
 0x5d2   : > { %v1831_v1 = vpop.f32.mrb[24].mxu1 }
 0x5d3   : > { %v1844_v3 = vmul.f32 %v3097_v63, %v1831_v1  ;;  %v2802_v4 = vpop.f32.mrb[25].mxu1  ;;  %v3072_v1 = vld [vmem:[#allocation21] sm:$0xff]  }
 0x5d4   : > { %v1834_v5 = vpop.f32.mrb[26].mxu1  ;;  %2813 = vmatpush3.bf16.msra.mxu1 %v3072_v1  ;;  %v3075_v4 = vld [vmem:[#allocation24 + $0x8] sm:$0xff]  }
 0x5d5   : > { %v1861_v7 = vcombine.low %v1842_v2, %v1844_v3  ;;  %v1862_v8 = vcombine.high %v1842_v2, %v1844_v3  ;;  %v2803_v9 = vpop.f32.mrb[27].mxu1  ;;  %v3073_v2 = vld [vmem:[#allocation21 + $0x8] sm:$0xff]   ;;  %2814 = vmatprep.subr.bf16.mxu1 %v3724_v0  ;;  %v3074_v3 = vld [vmem:[#allocation24] sm:$0xff]  }
 0x5d6   : > { %v3077_v5 = vld [vmem:[#allocation24 + $0x18] sm:$0xff]  }
 0x5d7   : > { %v1869_v12 = vrot.slane %v1861_v7, %v4349_v30  ;;  %v1876_v13 = vrot.slane %v1862_v8, %v4349_v30  ;;  %v3078_v7 = vld [vmem:[#allocation24 + $0x20] sm:$0xff]   ;;  %v3079_v8 = vld [vmem:[#allocation24 + $0x28] sm:$0xff]  }
 0x5d8   : > { %2815 = vmatpush3.bf16.msra.mxu1 %v3073_v2 }
 0x5d9   : > { %v1877_v14 = vcombine.low %v1853_v10, %v1869_v12  ;;  %v1878_v15 = vcombine.high %v1853_v10, %v1869_v12  ;;  %v1893_v16 = vcombine.low %v1860_v11, %v1876_v13  ;;  %v1894_v17 = vcombine.high %v1860_v11, %v1876_v13  ;;  %v2680_v13 = vld [vmem:[#allocation18] ss:$0 sm:$0xff] }
 0x5db   : > { %v1885_v19 = vrot.slane %v1877_v14, %v4351_v36  ;;  %v1892_v20 = vrot.slane %v1878_v15, %v4351_v36  ;;  %v1901_v21 = vrot.slane %v1893_v16, %v4351_v36  ;;  %v1908_v22 = vrot.slane %v1894_v17, %v4351_v36  ;;  %v2681_v15 = vld [vmem:[#allocation19] ss:$0 sm:$0xff] }
 0x5dd   : > { %v1913_v23 = vcombine.low %v1885_v19, %v1892_v20  ;;  %v2674_v24 = vcombine.high %v1885_v19, %v1892_v20  ;;  %v1929_v25 = vcombine.low %v1901_v21, %v1908_v22  ;;  %v2675_v26 = vcombine.high %v1901_v21, %v1908_v22  ;;  %v3080_v19 = vld [vmem:[#allocation24 + $0x30] sm:$0xff]   ;;  %v3081_v20 = vld [vmem:[#allocation24 + $0x38] sm:$0xff]  }
 0x5de   : > { %v2682_v21 = vld [vmem:[#allocation22] ss:$0 sm:$0xff] }
 0x5df   : > { %v1920_v28 = vrot.slane %v1913_v23, %v4349_v30  ;;  %v1928_v29 = vrot.slane %v2674_v24, %v4349_v30  ;;  %v1936_v31 = vrot.slane %v1929_v25, %v4349_v30  ;;  %v1944_v32 = vrot.slane %v2675_v26, %v4349_v30 }
 0x5e1   : > { %v1946_v33 = vcombine.high %v1920_v28, %v1928_v29  ;;  %v1962_v34 = vcombine.high %v1936_v31, %v1944_v32  ;;  %v1945_v35 = vcombine.low %v1920_v28, %v1928_v29  ;;  %v1961_v37 = vcombine.low %v1936_v31, %v1944_v32  ;;  %v2686_v29 = vld [vmem:[#allocation25] ss:$0 sm:$0xff] }
 0x5e3   : > { %v1960_v38 = vrot.slane %v1946_v33, %v4351_v36  ;;  %v1976_v39 = vrot.slane %v1962_v34, %v4351_v36  ;;  %v1953_v40 = vrot.slane %v1945_v35, %v4351_v36  ;;  %v1969_v41 = vrot.slane %v1961_v37, %v4351_v36 }
 0x5e5   : > { %v1979_v42 = vcombine.low %v1960_v38, %v1976_v39  ;;  %v1978_v43 = vcombine.high %v1953_v40, %v1969_v41  ;;  %v1980_v44 = vcombine.high %v1960_v38, %v1976_v39  ;;  %v1977_v45 = vcombine.low %v1953_v40, %v1969_v41 }
 0x5e7   : > { %1986 = vrot.lane.b32.xlu0 %v1979_v42, %s3732_s24  ;;  %1982 = vrot.lane.b32.xlu1 %v1978_v43, %s3733_s25  ;;  %s3560_s24 = scalar_lea.vmem %s3559_s17, 256 }
 0x5e8   : > { %p3562_p13 = scmp.lt.s32.totalorder %s3560_s24, %s3554_s1 }
 0x5ea   : > { %p3563_p4 = por %p3562_p13, %p3561_p6 }
 0x5eb   : > { %1990 = vrot.lane.b32.xlu1 %v1980_v44, %s3734_s8 }
 0x5ec   : > { %p3564_p9 = pnand %p3563_p4, %p3557_p11 }
 0x659   : > { %v1983_v30 = vpop.permute.xlu1 %1982  ;;  %v1987_v46 = vpop.permute.xlu0 %1986 }
 0x65a   : > { %v1993_v47 = vsel %vm1427_vm3, %v1977_v45, %v1983_v30 }
 0x65b   : > { %v1995_v49 = vsel %vm1994_vm5, %v1993_v47, %v1987_v46 }
 0x65d   : > { %v1991_v48 = vpop.permute.xlu1 %1990 }
 0x65e   : > { %v1997_v50 = vsel %vm1996_vm6, %v1995_v49, %v1991_v48 }
 0x65f   : > { %v1998_v36 = vpack.c.bf16 %v1997_v50, %v1997_v50 }
 0x661   : > { %2809 = vmatmul.mubr.msk.bf16.vlgmr.msra.gmra.mrb[12].mxu0 %vm846_vm1, %v1998_v36 }
 0x662   : > { %2836 = vmatprep.mubr.msk.bf16.mxu0 %vm3725_vm0, %v3724_v0  ;;  %2821 = vmatpush3.bf16.msra.mxu0 %v3074_v3 }
 0x663   : > { %2822 = vmatprep.subr.bf16.mxu0 %v3724_v0 }
 0x666   : > { %2823 = vmatpush3.bf16.msra.mxu0 %v3075_v4 }
 0x667   : > { %2824 = vmatprep.subr.bf16.mxu0 %v3724_v0 }
 0x734   : > { %v2059_v52 = vpop.f32.mrb[12].mxu0 }
 0x735   : > { %v2060_v53 = vadd.f32 %v2676_v51, %v2059_v52  ;;  %v2810_v54 = vpop.f32.mrb[13].mxu0 }
 0x736   : > { %v2062_v55 = vpop.f32.mrb[14].mxu0 }
 0x737   : > { %v2811_v56 = vpop.f32.mrb[15].mxu0  ;;  %v2065_v57 = vadd.f32 %v2060_v53, %v4337_v6  ;;  %v3076_v6 = vld [vmem:[#allocation24 + $0x10] sm:$0xff]  }
 0x738   : > { %2825 = vmatpush3.bf16.msra.mxu0 %v3076_v6 }
 0x739   : > { %v2068_v58 = vsel %vm846_vm1, %v2065_v57, 0.0  ;;  %2826 = vmatprep.subr.bf16.mxu0 %v3724_v0 }
 0x73a   : > { %2069 = vadd.xlane.f32.xlu1 %v2068_v58 }
 0x73c   : > { %2827 = vmatpush3.bf16.msra.mxu0 %v3077_v5 }
 0x73d   : > { %2828 = vmatprep.subr.bf16.mxu0 %v3724_v0 }
 0x740   : > { %2829 = vmatpush3.bf16.msra.mxu0 %v3078_v7 }
 0x741   : > { %2830 = vmatprep.subr.bf16.mxu0 %v3724_v0 }
 0x744   : > { %2831 = vmatpush3.bf16.msra.mxu0 %v3079_v8 }
 0x745   : > { %2832 = vmatprep.subr.bf16.mxu0 %v3724_v0 }
 0x748   : > { %2833 = vmatpush3.bf16.msra.mxu0 %v3080_v19 }
 0x749   : > { %2834 = vmatprep.subr.bf16.mxu0 %v3724_v0 }
 0x74c   : > { %2835 = vmatpush3.bf16.msra.mxu0 %v3081_v20 }
 0x7c7   : > { %v2070_v59 = vpop.xlane.xlu1 %2069 }
 0x7c8   : > { %v2072_v60 = vmul.f32 0.03125, %v2070_v59 }
 0x7ca   : > { %v2073_v61 = vsub.f32 %v2065_v57, %v2072_v60 }
 0x7cc   : > { %v2074_v62 = vmul.f32 %v2073_v61, %v2073_v61 }
 0x7ce   : > { %v2075_v63 = vsel %vm846_vm1, %v2074_v62, 0.0 }
 0x7cf   : > { %2076 = vadd.xlane.f32.xlu0 %v2075_v63 }
 0x85c   : > { %v2077_v9 = vpop.xlane.xlu0 %2076 }
 0x85d   : > { %v2078_v10 = vmul.f32 0.03125, %v2077_v9 }
 0x85f   : > { %v2079_v11 = vadd.f32 1e-05, %v2078_v10 }
 0x861   : > { %3098 = vrsqrt.f32 %v2079_v11 }
 0x86b   : > { %v3099_v12 = vpop.eup %3098 }
 0x86c   : > { %v2081_v14 = vmul.f32 %v3099_v12, %v2073_v61 }
 0x86e   : > { %v2088_v16 = vmul.f32 %v2680_v13, %v2081_v14 }
 0x870   : > { %v2095_v17 = vadd.f32 %v2681_v15, %v2088_v16 }
 0x872   : > { %v2096_v18 = vpack.c.bf16 %v2095_v17, %v2095_v17 }
 0x874   : > { %2817 = vmatmul.mubr.msk.bf16.vlgmr.msra.gmra.mrb[28].mxu1 %vm846_vm1, %v2096_v18 }
 0x947   : > { %v2157_v22 = vpop.f32.mrb[28].mxu1 }
 0x948   : > { %v2158_v23 = vadd.f32 %v2682_v21, %v2157_v22  ;;  %v2818_v24 = vpop.f32.mrb[29].mxu1 }
 0x949   : > { %v2160_v25 = vpop.f32.mrb[30].mxu1 }
 0x94a   : > { %v2163_v26 = vmax.f32 %v2158_v23, 0.0  ;;  %v2819_v27 = vpop.f32.mrb[31].mxu1 }
 0x94c   : > { %v2164_v28 = vpack.c.bf16 %v2163_v26, %v2163_v26 }
 0x94e   : > { %2837 = vmatmul.mubr.bf16.vlgmr.msra.gmra.mrb[16].mxu0 %v2164_v28 }
 0xa21   : > { %v2270_v31 = vpop.f32.mrb[16].mxu0 }
 0xa22   : > { %v2271_v32 = vadd.f32 %v2686_v29, %v2270_v31  ;;  %v2838_v33 = vpop.f32.mrb[17].mxu0 }
 0xa23   : > { %v2273_v34 = vpop.f32.mrb[18].mxu0 }
 0xa24   : > { %v2839_v0 = vpop.f32.mrb[19].mxu0  ;;  %v2277_v35 = vadd.f32 %v2271_v32, %v2095_v17  ;;  %2276 = vst.msk [vmem:[%s815_s5] sm:$0xff] %vm846_vm1, %v2271_v32 }
 0xa26   : > { %v2280_v37 = vsel %vm846_vm1, %v2277_v35, 0.0 }
 0xa27   : > { %2281 = vadd.xlane.f32.xlu0 %v2280_v37 }
 0xab4   : > { %v2282_v38 = vpop.xlane.xlu0 %2281 }
 0xab5   : > { %v2283_v39 = vmul.f32 0.03125, %v2282_v38 }
 0xab7   : > { %v2284_v40 = vsub.f32 %v2277_v35, %v2283_v39 }
 0xab9   : > { %v2285_v41 = vmul.f32 %v2284_v40, %v2284_v40 }
 0xabb   : > { %v2286_v42 = vsel %vm846_vm1, %v2285_v41, 0.0 }
 0xabc   : > { %2287 = vadd.xlane.f32.xlu1 %v2286_v42 }
 0xabd   : > { %3567 = shalt.err (!%p3564_p9)
}
 0xabe   : > { %s3568_s25 = scalar_lea.hbm %s4501_s27, 128  ;;  %s3572_s4 = scalar_lea.hbm %s4679_s7, 256 }
 0xabf   : > { %p3569_p0 = scmp.ne.s32.totalorder %s4501_s27, %s3568_s25  ;;  %p3573_p2 = scmp.lt.u32.totalorder %s4501_s27, %s4679_s7 }
 0xac0   : > { %p3574_p10 = scmp.lt.u32.totalorder %s3572_s4, %s3568_s25  ;;  %p3576_p5 = scmp.lt.u32.totalorder %s3568_s25, %s4501_s27 }
 0xac1   : > { %p3570_p7 = pnand %p3569_p0, %p4680_p8 }
 0xac2   : > { %p3575_p1 = por %p3574_p10, %p3573_p2 }
 0xac3   : > { %p3571_p12 = pneg %p3570_p7 }
 0xac4   : > { %p3577_p3 = por %p3576_p5, %p3575_p1 }
 0xac6   : > { %p3578_p11 = pnand %p3577_p3, %p3571_p12 }
 0xac8   : > { %3581 = shalt.err (!%p3578_p11)
}
 0xac9   : > { %2901 = dma.vmem_to_hbm [thread:$0]  (%p4680_p8), %s2343_s21, 128, %s4501_s27, %s2314_s28   ;;  %v2695_v46 = vld [vmem:[#allocation27] ss:$0 sm:$0xff]  ;;  %v2696_v48 = vld [vmem:[#allocation28] ss:$0 sm:$0xff] }
 0xaca   : > { %s808_s1 = scalar_lea.vmem [#allocation30], %s4281_s3  ;;  %s4681_s8 = sld [smem:[#allocation61_spill]] }
 0xacb   : > { %s2328_s17 = sshll.u32 %s808_s1, 4  ;;  %s2309_s27 = scalar_lea.sflag [#allocation6], %s4278_s0  ;;  %s4529_s17 = int_to_ptr.vmem [resolvable:$true] %s2328_s17 }
 0xacc   : > { %s3582_s21 = scalar_lea.vmem %s4529_s17, 128  ;;  %s3736_s3 = smov [#allocation30]  }
 0xacd   : > { %p3583_p6 = scmp.ne.s32.totalorder %s4529_s17, %s3582_s21  ;;  %s3586_s2 = sshll.u32 %s3736_s3, 4  ;;  %s3587_s2 = int_to_ptr.vmem [resolvable:$false] %s3586_s2 }
 0xace   : > { %s3588_s28 = scalar_lea.vmem %s3587_s2, 256  ;;  %p3589_p9 = scmp.lt.s32.totalorder %s4529_s17, %s3587_s2 }
 0xacf   : > { %p3584_p13 = pnand %p3583_p6, %p4680_p8  ;;  %p3590_p0 = scmp.lt.s32.totalorder %s3588_s28, %s3582_s21 }
 0xad0   : > { %s4527_s5 = scalar_lea.hbm %s4681_s8, %s2699_s18 }
 0xad1   : > { %p3585_p4 = pneg %p3584_p13  ;;  %p3591_p7 = por %p3590_p0, %p3589_p9 }
 0xad3   : > { %p3592_p12 = pnand %p3591_p7, %p3585_p4 }
 0xb49   : > { %v2288_v43 = vpop.xlane.xlu1 %2287 }
 0xb4a   : > { %v2289_v44 = vmul.f32 0.03125, %v2288_v43 }
 0xb4c   : > { %v2290_v45 = vadd.f32 1e-05, %v2289_v44 }
 0xb4e   : > { %3100 = vrsqrt.f32 %v2290_v45 }
 0xb58   : > { %v3101_v30 = vpop.eup %3100 }
 0xb59   : > { %v2292_v47 = vmul.f32 %v3101_v30, %v2284_v40 }
 0xb5b   : > { %v2299_v49 = vmul.f32 %v2695_v46, %v2292_v47 }
 0xb5d   : > { %v2306_v50 = vadd.f32 %v2696_v48, %v2299_v49 }
 0xb5f   : > { %2307 = vst.msk [vmem:[%s808_s1] sm:$0xff] %vm846_vm1, %v2306_v50 }
 0xb60   : > { %3595 = shalt.err (!%p3592_p12)
}
 0xb61   : > { %s3596_s0 = scalar_lea.hbm %s4527_s5, 128  ;;  %s3600_s6 = scalar_lea.hbm %s4681_s8, 256 }
 0xb62   : > { %p3597_p2 = scmp.ne.s32.totalorder %s4527_s5, %s3596_s0  ;;  %p3601_p5 = scmp.lt.u32.totalorder %s4527_s5, %s4681_s8 }
 0xb63   : > { %p3602_p3 = scmp.lt.u32.totalorder %s3600_s6, %s3596_s0  ;;  %p3604_p6 = scmp.lt.u32.totalorder %s3596_s0, %s4527_s5 }
 0xb64   : > { %p3598_p10 = pnand %p3597_p2, %p4680_p8 }
 0xb65   : > { %p3603_p11 = por %p3602_p3, %p3601_p5 }
 0xb66   : > { %p3599_p1 = pneg %p3598_p10 }
 0xb67   : > { %p3605_p13 = por %p3604_p6, %p3603_p11 }
 0xb69   : > { %p3606_p4 = pnand %p3605_p13, %p3599_p1 }
 0xb6b   : > { %3609 = shalt.err (!%p3606_p4)
}
 0xb6c   : > { %2900 = dma.vmem_to_hbm [thread:$0]  (%p4680_p8), %s4529_s17, 128, %s4527_s5, %s2309_s27  }
 0xb6d PF: > { %s4682_s24 = sld [smem:[#allocation45_spill]]  ;;  %p4683_p9 = scmp.ne.s32.totalorder %s4651_s26, 0 }
 0xb6e   : > { %p4684_p0 = scmp.ge.s32.totalorder %s3704_s29, 2 }
 0xb70   : > { %p2955_p7 = pnand %p4684_p0, %p4683_p9 }
 0xb73   : > { %s2354_s25 = sand.u32 1, %s4682_s24  }
 0xb74   : > { %s2355_s21 = scalar_lea.sflag [#allocation6], %s2354_s25 }
 0xb75   : > { %3675 = dma.done.wait (!%p2955_p7), %s2355_s21, 128  }
 0xb76   : > { %3677 = vsyncadd (!%p2955_p7), %s2355_s21, 4294967168  ;;  %s2364_s3 = scalar_lea.sflag [#allocation32], %s2354_s25 }
 0xb77   : > { %3679 = dma.done.wait (!%p2955_p7), %s2364_s3, 128  }
 0xb78   : > { %3681 = vsyncadd (!%p2955_p7), %s2364_s3, 4294967168  ;;  %s47_s29 = sadd.s32 1, %s3704_s29   ;;  %s4685_s24 = sld [smem:[#allocation46_spill]] }
 0xb79   : > { %p44_p12 = scmp.ge.s32.totalorder %s47_s29, 4   ;;  %s4686_s25 = sld [smem:[#allocation47_spill]] }
 0xb7a   : > { %s4687_s27 = sld [smem:[#allocation49_spill]]  ;;  %s4688_s26 = smov %s4195_s19 }
 0xb7b   : > { %s4689_s28 = smov %s4691_s20  ;;  %46 = sbr.rel (!%p44_p12) target bundleno = 29 (0x1d), region = 219 }
 0xb82   :  { %2369 = vsyncpa [#allocation5], 1 }
 0xb83   :  { %2371 = vsyncpa [#allocation5 + $0x1], 1 }
 0xb84   :  { %2372 = vsyncpa [#allocation8], 1 }
 0xb85   :  { %2374 = vsyncpa [#allocation8 + $0x1], 1 }
 0xb86   :  { %2375 = vsyncpa [#allocation11], 1 }
 0xb87   :  { %2376 = vsyncpa [#allocation14], 1 }
 0xb88   :  { %2377 = vsyncpa [#allocation17], 1 }
 0xb89   :  { %2378 = vsyncpa [#allocation20], 1 }
 0xb8a   :  { %2379 = vsyncpa [#allocation23], 1 }
 0xb8b   :  { %2380 = vsyncpa [#allocation26], 1 }
 0xb8c   :  { %2381 = vsyncpa [#allocation29], 1 }
 0xb8d   :  { %2382 = vsyncpa [#allocation6], 1 }
 0xb8e   :  { %2384 = vsyncpa [#allocation6 + $0x1], 1 }
 0xb8f   :  { %2385 = vsyncpa [#allocation32], 1 }
 0xb90   :  { %2387 = vsyncpa [#allocation32 + $0x1], 1 }

// kernel: tpu_custom_call.1
= control target key start
LH: loop header
LB: loop body
LE: loop exit
PB: predicated region body
PF: predicated region fallthrough
CT: control target
= control target key end

     0   :  { %s4577_s0 = inlined_call_operand.hbm [shape: f32[2,8,32], index: 0, kind: input, shape index: {}]   ;;  %s4578_s1 = inlined_call_operand.hbm [shape: bf16[2,8,32], index: 1, kind: input, shape index: {}]   ;;  %s4579_s2 = inlined_call_operand.hbm [shape: bf16[32,32], index: 2, kind: input, shape index: {}]   ;;  %s4580_s3 = inlined_call_operand.hbm [shape: f32[1,32], index: 3, kind: input, shape index: {}]   ;;  %s4581_s4 = inlined_call_operand.hbm [shape: bf16[32,64], index: 4, kind: input, shape index: {}]   ;;  %s4582_s5 = inlined_call_operand.hbm [shape: f32[1,64], index: 5, kind: input, shape index: {}]   ;;  %s4583_s6 = inlined_call_operand.hbm [shape: bf16[32,32], index: 6, kind: input, shape index: {}]   ;;  %s4584_s7 = inlined_call_operand.hbm [shape: f32[1,32], index: 7, kind: input, shape index: {}]   ;;  %s4585_s8 = inlined_call_operand.hbm [shape: f32[1,32], index: 8, kind: input, shape index: {}]   ;;  %s4586_s9 = inlined_call_operand.hbm [shape: f32[1,32], index: 9, kind: input, shape index: {}]   ;;  %s4587_s10 = inlined_call_operand.hbm [shape: bf16[32,128], index: 10, kind: input, shape index: {}]   ;;  %s4588_s11 = inlined_call_operand.hbm [shape: f32[1,128], index: 11, kind: input, shape index: {}]   ;;  %s4589_s12 = inlined_call_operand.hbm [shape: bf16[128,32], index: 12, kind: input, shape index: {}]   ;;  %s4590_s13 = inlined_call_operand.hbm [shape: f32[1,32], index: 13, kind: input, shape index: {}]   ;;  %s4591_s14 = inlined_call_operand.hbm [shape: f32[1,32], index: 14, kind: input, shape index: {}]   ;;  %s4592_s15 = inlined_call_operand.hbm [shape: f32[1,32], index: 15, kind: input, shape index: {}]   ;;  %s4593_s16 = inlined_call_operand.hbm [shape: f32[2,8,32], index: 16, kind: output, shape index: {0}]   ;;  %s4594_s17 = inlined_call_operand.hbm [shape: f32[2,8,32], index: 17, kind: output, shape index: {1}]  }
   0x1   :  { %4613 = sst [smem:[#allocation52_spill]] %s4577_s0 }
   0x2   :  { %4614 = sst [smem:[#allocation53_spill]] %s4578_s1 }
   0x3   :  { %4615 = sst [smem:[#allocation54_spill]] %s4579_s2 }
   0x4   :  { %4616 = sst [smem:[#allocation55_spill]] %s4580_s3 }
   0x5   :  { %4617 = sst [smem:[#allocation56_spill]] %s4581_s4 }
   0x6   :  { %4618 = sst [smem:[#allocation57_spill]] %s4582_s5 }
   0x7   :  { %4619 = sst [smem:[#allocation58_spill]] %s4583_s6 }
   0x8   :  { %4620 = sst [smem:[#allocation59_spill]] %s4584_s7 }
   0x9   :  { %4621 = sst [smem:[#allocation60_spill]] %s4585_s8 }
   0xa   :  { %4622 = sst [smem:[#allocation61_spill]] %s4593_s16 }
   0xb   :  { %4623 = sst [smem:[#allocation62_spill]] %s4594_s17 }
   0xc   :  { %23 = vsyncpa [#allocation5], 0 }
   0xd   :  { %25 = vsyncpa [#allocation5 + $0x1], 0 }
   0xe   :  { %26 = vsyncpa [#allocation8], 0 }
   0xf   :  { %28 = vsyncpa [#allocation8 + $0x1], 0 }
  0x10   :  { %29 = vsyncpa [#allocation11], 0 }
  0x11   :  { %30 = vsyncpa [#allocation14], 0 }
  0x12   :  { %31 = vsyncpa [#allocation17], 0 }
  0x13   :  { %32 = vsyncpa [#allocation20], 0 }
  0x14   :  { %33 = vsyncpa [#allocation23], 0 }
  0x15   :  { %34 = vsyncpa [#allocation26], 0 }
  0x16   :  { %35 = vsyncpa [#allocation29], 0 }
  0x17   :  { %36 = vsyncpa [#allocation6], 0 }
  0x18   :  { %38 = vsyncpa [#allocation6 + $0x1], 0 }
  0x19   :  { %39 = vsyncpa [#allocation32], 0 }
  0x1a   :  { %41 = vsyncpa [#allocation32 + $0x1], 0  ;;  %s3827_s24 = smov 0   ;;  %s3829_s25 = smov 0  }
  0x1b   :  { %s3831_s26 = smov 0   ;;  %s3833_s27 = smov 0  }
  0x1c   :  { %s3835_s28 = smov 0   ;;  %s3837_s29 = smov 0  }
  0x1d LB: > { %4624 = sst [smem:[#allocation45_spill]] %s3684_s24  ;;  %s3858_s0 = sadd.s32 4294967295, %s3704_s29   ;;  %s3704_s29 = sphi %s3837_s29, %s47_s29   ;;  %s3700_s28 = sphi %s3835_s28, %s4689_s28   ;;  %s3696_s27 = sphi %s3833_s27, %s4687_s27   ;;  %s3692_s26 = sphi %s3831_s26, %s4688_s26   ;;  %s3688_s25 = sphi %s3829_s25, %s4686_s25   ;;  %s3684_s24 = sphi %s3827_s24, %s4685_s24  }
  0x1e   : > { %4625 = sst [smem:[#allocation46_spill]] %s3688_s25  ;;  %p2613_p0 = scmp.ge.s32.totalorder %s3704_s29, 1 }
  0x1f   : > { %4626 = sst [smem:[#allocation47_spill]] %s3692_s26  ;;  %p4607_p1 = scmp.eq.s32.totalorder %s3858_s0, 0 }
  0x20   : > { %4627 = sst [smem:[#allocation48_spill]] %s3696_s27  ;;  %p468_p2 = scmp.lt.s32.totalorder %s3704_s29, 3 }
  0x21   : > { %4628 = sst [smem:[#allocation49_spill]] %s3700_s28  ;;  %s3706_s18 = smov [#allocation9]  }
  0x22   : > { %4629 = sst [smem:[#allocation50_spill]] %s3858_s0  ;;  %p3863_p3 = pnand %p2613_p0, %p468_p2 }
  0x23   : > { %s480_s19 = sshll.u32 %s3706_s18, 4  ;;  %s3707_s20 = smov [#allocation10]   ;;  %s3867_s19 = int_to_ptr.vmem [resolvable:$true] %s480_s19 }
  0x24   : > { %s4630_s30 = scalar_select %p3863_p3, 1, 0 }
  0x25   : > { %p2904_p4 = pneg %p3863_p3  ;;  %s494_s21 = sshll.u32 %s3707_s20, 4  ;;  %s3878_s21 = int_to_ptr.vmem [resolvable:$true] %s494_s21 }
  0x26   : > { %4631 = sst [smem:[#allocation51_spill]] %s4630_s30  ;;  %s3708_s22 = smov [#allocation13]  }
  0x27   : > { %p3874_p6 = pnand %p2904_p4, %p4607_p1  ;;  %s3880_s23 = sshll.u32 %s3708_s22, 4  ;;  %s519_s23 = int_to_ptr.vmem [resolvable:$true] %s3880_s23 }
  0x28   : > { %s4633_s2 = sld [smem:[#allocation54_spill]] }
  0x29   : > { %p3890_p8 = pneg %p3874_p6 }
  0x2e   : > { %s3102_s17 = scalar_lea.hbm %s4633_s2, 256 }
  0x2f   : > { %p3103_p7 = scmp.ne.s32.totalorder %s4633_s2, %s3102_s17  ;;  %p3109_p11 = scmp.lt.u32.totalorder %s3102_s17, %s4633_s2 }
  0x31   : > { %p3105_p9 = pnand %p3890_p8, %p3103_p7 }
  0x33   : > { %p3106_p10 = pneg %p3105_p9 }
  0x35   : > { %p3111_p12 = pnand %p3109_p11, %p3106_p10 }
  0x37   : > { %3114 = shalt.err (!%p3111_p12)
}
  0x38   : > { %s3115_s16 = scalar_lea.vmem %s3867_s19, 256  ;;  %p3123_p4 = scmp.lt.s32.totalorder %s3867_s19, %s3867_s19 }
  0x39   : > { %p3116_p13 = scmp.ne.s32.totalorder %s3867_s19, %s3115_s16  ;;  %p3124_p5 = scmp.lt.s32.totalorder %s3115_s16, %s3115_s16 }
  0x3b   : > { %p3118_p0 = pnand %p3116_p13, %p3890_p8  ;;  %p3125_p7 = por %p3124_p5, %p3123_p4 }
  0x3d   : > { %p3119_p2 = pneg %p3118_p0 }
  0x3f   : > { %p3126_p9 = pnand %p3125_p7, %p3119_p2 }
  0x41   : > { %3129 = shalt.err (!%p3126_p9)
}
  0x42   : > { %s4609_s27 = smov 64   ;;  %s3710_s17 = smov 4  }
  0x43   : > { %2907 = dma.hbm_to_vmem [thread:$0]  (!%p3874_p6), %s4633_s2, 256, %s3867_s19, [#allocation8], %s4609_s27, %s4609_s27, %s3710_s17  }
  0x44   : > { %s4635_s3 = sld [smem:[#allocation55_spill]] }
  0x4a   : > { %s3130_s16 = scalar_lea.hbm %s4635_s3, 16 }
  0x4b   : > { %p3131_p5 = scmp.ne.s32.totalorder %s4635_s3, %s3130_s16  ;;  %p3137_p12 = scmp.lt.u32.totalorder %s3130_s16, %s4635_s3 }
  0x4d   : > { %p3133_p10 = pnand %p3131_p5, %p3890_p8 }
  0x4f   : > { %p3134_p11 = pneg %p3133_p10 }
  0x51   : > { %p3139_p13 = pnand %p3137_p12, %p3134_p11 }
  0x53   : > { %3142 = shalt.err (!%p3139_p13)
}
  0x54   : > { %s3143_s19 = scalar_lea.vmem %s3878_s21, 16  ;;  %s3150_s24 = scalar_lea.vmem %s3878_s21, 32 }
  0x55   : > { %p3144_p0 = scmp.ne.s32.totalorder %s3878_s21, %s3143_s19  ;;  %p3151_p7 = scmp.lt.s32.totalorder %s3878_s21, %s3878_s21 }
  0x56   : > { %p3152_p9 = scmp.lt.s32.totalorder %s3150_s24, %s3143_s19 }
  0x57   : > { %p3146_p2 = pnand %p3144_p0, %p3890_p8 }
  0x58   : > { %p3153_p5 = por %p3152_p9, %p3151_p7 }
  0x59   : > { %p3147_p4 = pneg %p3146_p2 }
  0x5b   : > { %p3154_p10 = pnand %p3153_p5, %p3147_p4 }
  0x5d   : > { %3157 = shalt.err (!%p3154_p10)
}
  0x5e   : > { %2910 = dma.hbm_to_vmem [thread:$0]  (!%p3874_p6), %s4635_s3, 16, %s3878_s21, [#allocation11]  }
  0x5f   : > { %s4636_s5 = sld [smem:[#allocation57_spill]] }
  0x65   : > { %s3158_s18 = scalar_lea.hbm %s4636_s5, 16 }
  0x66   : > { %p3159_p11 = scmp.ne.s32.totalorder %s4636_s5, %s3158_s18  ;;  %p3165_p0 = scmp.lt.u32.totalorder %s3158_s18, %s4636_s5 }
  0x68   : > { %p3161_p12 = pnand %p3159_p11, %p3890_p8 }
  0x6a   : > { %p3162_p13 = pneg %p3161_p12 }
  0x6c   : > { %p3167_p2 = pnand %p3165_p0, %p3162_p13 }
  0x6e   : > { %3170 = shalt.err (!%p3167_p2)
}
  0x6f   : > { %s3171_s24 = scalar_lea.vmem %s519_s23, 16  ;;  %s3178_s21 = scalar_lea.vmem %s519_s23, 32 }
  0x70   : > { %p3172_p4 = scmp.ne.s32.totalorder %s519_s23, %s3171_s24  ;;  %p3179_p5 = scmp.lt.s32.totalorder %s519_s23, %s519_s23 }
  0x71   : > { %p3180_p10 = scmp.lt.s32.totalorder %s3178_s21, %s3171_s24 }
  0x72   : > { %p3174_p7 = pnand %p3172_p4, %p3890_p8 }
  0x73   : > { %p3181_p1 = por %p3180_p10, %p3179_p5 }
  0x74   : > { %p3175_p9 = pneg %p3174_p7 }
  0x76   : > { %p3182_p3 = pnand %p3181_p1, %p3175_p9 }
  0x78   : > { %3185 = shalt.err (!%p3182_p3)
}
  0x79   : > { %2916 = dma.hbm_to_vmem [thread:$0]  (!%p3874_p6), %s4636_s5, 16, %s519_s23, [#allocation14]  }
  0x7a   : > { %s3711_s28 = smov [#allocation16]   ;;  %s3712_s18 = smov [#allocation19]  }
  0x7b   : > { %s542_s30 = sshll.u32 %s3711_s28, 4  ;;  %s564_s20 = sshll.u32 %s3712_s18, 4  ;;  %s543_s30 = int_to_ptr.vmem [resolvable:$true] %s542_s30  ;;  %s565_s20 = int_to_ptr.vmem [resolvable:$true] %s564_s20 }
  0x7c   : > { %s4637_s7 = sld [smem:[#allocation59_spill]] }
  0x82   : > { %s3186_s19 = scalar_lea.hbm %s4637_s7, 16 }
  0x83   : > { %p3187_p1 = scmp.ne.s32.totalorder %s4637_s7, %s3186_s19  ;;  %p3193_p12 = scmp.lt.u32.totalorder %s3186_s19, %s4637_s7 }
  0x85   : > { %p3189_p3 = pnand %p3187_p1, %p3890_p8 }
  0x87   : > { %p3190_p11 = pneg %p3189_p3 }
  0x89   : > { %p3195_p13 = pnand %p3193_p12, %p3190_p11 }
  0x8b   : > { %3198 = shalt.err (!%p3195_p13)
}
  0x8c   : > { %s3199_s23 = scalar_lea.vmem %s543_s30, 16  ;;  %s3206_s26 = scalar_lea.vmem %s543_s30, 32 }
  0x8d   : > { %p3200_p0 = scmp.ne.s32.totalorder %s543_s30, %s3199_s23  ;;  %p3207_p7 = scmp.lt.s32.totalorder %s543_s30, %s543_s30 }
  0x8e   : > { %p3208_p9 = scmp.lt.s32.totalorder %s3206_s26, %s3199_s23 }
  0x8f   : > { %p3202_p2 = pnand %p3200_p0, %p3890_p8 }
  0x90   : > { %p3209_p5 = por %p3208_p9, %p3207_p7 }
  0x91   : > { %p3203_p4 = pneg %p3202_p2 }
  0x93   : > { %p3210_p10 = pnand %p3209_p5, %p3203_p4 }
  0x95   : > { %3213 = shalt.err (!%p3210_p10)
}
  0x96   : > { %2922 = dma.hbm_to_vmem [thread:$0]  (!%p3874_p6), %s4637_s7, 16, %s543_s30, [#allocation17]  }
  0x97   : > { %s3214_s16 = scalar_lea.hbm %s4586_s9, 16 }
  0x98   : > { %p3215_p1 = scmp.ne.s32.totalorder %s4586_s9, %s3214_s16  ;;  %p3221_p12 = scmp.lt.u32.totalorder %s3214_s16, %s4586_s9 }
  0x9a   : > { %p3217_p3 = pnand %p3215_p1, %p3890_p8 }
  0x9c   : > { %p3218_p11 = pneg %p3217_p3 }
  0x9e   : > { %p3223_p13 = pnand %p3221_p12, %p3218_p11 }
  0xa0   : > { %3226 = shalt.err (!%p3223_p13)
}
  0xa1   : > { %s3227_s23 = scalar_lea.vmem %s565_s20, 16  ;;  %s3234_s30 = scalar_lea.vmem %s565_s20, 32 }
  0xa2   : > { %p3228_p0 = scmp.ne.s32.totalorder %s565_s20, %s3227_s23  ;;  %p3235_p7 = scmp.lt.s32.totalorder %s565_s20, %s565_s20 }
  0xa3   : > { %p3236_p9 = scmp.lt.s32.totalorder %s3234_s30, %s3227_s23 }
  0xa4   : > { %p3230_p2 = pnand %p3228_p0, %p3890_p8 }
  0xa5   : > { %p3237_p5 = por %p3236_p9, %p3235_p7 }
  0xa6   : > { %p3231_p4 = pneg %p3230_p2 }
  0xa8   : > { %p3238_p10 = pnand %p3237_p5, %p3231_p4 }
  0xaa   : > { %3241 = shalt.err (!%p3238_p10)
}
  0xab   : > { %2928 = dma.hbm_to_vmem [thread:$0]  (!%p3874_p6), %s4586_s9, 16, %s565_s20, [#allocation20]  }
  0xac   : > { %s3713_s18 = smov [#allocation22]   ;;  %s3714_s22 = smov [#allocation25]  }
  0xad   : > { %s588_s27 = sshll.u32 %s3713_s18, 4  ;;  %s612_s16 = sshll.u32 %s3714_s22, 4  ;;  %s589_s27 = int_to_ptr.vmem [resolvable:$true] %s588_s27  ;;  %s613_s16 = int_to_ptr.vmem [resolvable:$true] %s612_s16 }
  0xae   : > { %s3242_s21 = scalar_lea.hbm %s4588_s11, 16 }
  0xaf   : > { %p3243_p1 = scmp.ne.s32.totalorder %s4588_s11, %s3242_s21  ;;  %p3249_p12 = scmp.lt.u32.totalorder %s3242_s21, %s4588_s11 }
  0xb1   : > { %p3245_p3 = pnand %p3243_p1, %p3890_p8 }
  0xb3   : > { %p3246_p11 = pneg %p3245_p3 }
  0xb5   : > { %p3251_p13 = pnand %p3249_p12, %p3246_p11 }
  0xb7   : > { %3254 = shalt.err (!%p3251_p13)
}
  0xb8   : > { %s3255_s20 = scalar_lea.vmem %s589_s27, 16  ;;  %s3262_s28 = scalar_lea.vmem %s589_s27, 32 }
  0xb9   : > { %p3256_p0 = scmp.ne.s32.totalorder %s589_s27, %s3255_s20  ;;  %p3263_p7 = scmp.lt.s32.totalorder %s589_s27, %s589_s27 }
  0xba   : > { %p3264_p9 = scmp.lt.s32.totalorder %s3262_s28, %s3255_s20 }
  0xbb   : > { %p3258_p2 = pnand %p3256_p0, %p3890_p8 }
  0xbc   : > { %p3265_p5 = por %p3264_p9, %p3263_p7 }
  0xbd   : > { %p3259_p4 = pneg %p3258_p2 }
  0xbf   : > { %p3266_p10 = pnand %p3265_p5, %p3259_p4 }
  0xc1   : > { %3269 = shalt.err (!%p3266_p10)
}
  0xc2   : > { %2934 = dma.hbm_to_vmem [thread:$0]  (!%p3874_p6), %s4588_s11, 16, %s589_s27, [#allocation23]  }
  0xc3   : > { %s3270_s21 = scalar_lea.hbm %s4590_s13, 16 }
  0xc4   : > { %p3271_p1 = scmp.ne.s32.totalorder %s4590_s13, %s3270_s21  ;;  %p3277_p12 = scmp.lt.u32.totalorder %s3270_s21, %s4590_s13 }
  0xc6   : > { %p3273_p3 = pnand %p3271_p1, %p3890_p8 }
  0xc8   : > { %p3274_p11 = pneg %p3273_p3 }
  0xca   : > { %p3279_p13 = pnand %p3277_p12, %p3274_p11 }
  0xcc   : > { %3282 = shalt.err (!%p3279_p13)
}
  0xcd   : > { %s3283_s20 = scalar_lea.vmem %s613_s16, 16  ;;  %s3290_s27 = scalar_lea.vmem %s613_s16, 32 }
  0xce   : > { %p3284_p0 = scmp.ne.s32.totalorder %s613_s16, %s3283_s20  ;;  %p3291_p7 = scmp.lt.s32.totalorder %s613_s16, %s613_s16 }
  0xcf   : > { %p3292_p9 = scmp.lt.s32.totalorder %s3290_s27, %s3283_s20 }
  0xd0   : > { %p3286_p2 = pnand %p3284_p0, %p3890_p8 }
  0xd1   : > { %p3293_p5 = por %p3292_p9, %p3291_p7 }
  0xd2   : > { %p3287_p4 = pneg %p3286_p2 }
  0xd4   : > { %p3294_p10 = pnand %p3293_p5, %p3287_p4 }
  0xd6   : > { %3297 = shalt.err (!%p3294_p10)
}
  0xd7   : > { %2940 = dma.hbm_to_vmem [thread:$0]  (!%p3874_p6), %s4590_s13, 16, %s613_s16, [#allocation26]  }
  0xd8   : > { %s3715_s22 = smov [#allocation12]   ;;  %s3716_s24 = smov [#allocation15]  }
  0xd9   : > { %s504_s19 = sshll.u32 %s3715_s22, 4  ;;  %s528_s21 = sshll.u32 %s3716_s24, 4  ;;  %s505_s19 = int_to_ptr.vmem [resolvable:$true] %s504_s19  ;;  %s529_s21 = int_to_ptr.vmem [resolvable:$true] %s528_s21 }
  0xda   : > { %s4638_s4 = sld [smem:[#allocation56_spill]] }
  0xe0   : > { %s3298_s30 = scalar_lea.hbm %s4638_s4, 256 }
  0xe1   : > { %p3299_p1 = scmp.ne.s32.totalorder %s4638_s4, %s3298_s30  ;;  %p3305_p12 = scmp.lt.u32.totalorder %s3298_s30, %s4638_s4 }
  0xe3   : > { %p3301_p3 = pnand %p3299_p1, %p3890_p8 }
  0xe5   : > { %p3302_p11 = pneg %p3301_p3 }
  0xe7   : > { %p3307_p13 = pnand %p3305_p12, %p3302_p11 }
  0xe9   : > { %3310 = shalt.err (!%p3307_p13)
}
  0xea   : > { %s3311_s16 = scalar_lea.vmem %s505_s19, 256  ;;  %p3319_p7 = scmp.lt.s32.totalorder %s505_s19, %s505_s19 }
  0xeb   : > { %p3312_p0 = scmp.ne.s32.totalorder %s505_s19, %s3311_s16  ;;  %p3320_p9 = scmp.lt.s32.totalorder %s3311_s16, %s3311_s16 }
  0xed   : > { %p3314_p2 = pnand %p3312_p0, %p3890_p8  ;;  %p3321_p5 = por %p3320_p9, %p3319_p7 }
  0xef   : > { %p3315_p4 = pneg %p3314_p2 }
  0xf1   : > { %p3322_p10 = pnand %p3321_p5, %p3315_p4 }
  0xf3   : > { %3325 = shalt.err (!%p3322_p10)
}
  0xf4   : > { %s4639_s18 = smov 64   ;;  %s4640_s6 = sld [smem:[#allocation58_spill]] }
  0xf5   : > { %2913 = dma.hbm_to_vmem [thread:$0]  (!%p3874_p6), %s4638_s4, 256, %s505_s19, [#allocation11], %s4639_s18, %s4639_s18, %s3710_s17  }
  0xfa   : > { %s3326_s30 = scalar_lea.hbm %s4640_s6, 256 }
  0xfb   : > { %p3327_p1 = scmp.ne.s32.totalorder %s4640_s6, %s3326_s30  ;;  %p3333_p12 = scmp.lt.u32.totalorder %s3326_s30, %s4640_s6 }
  0xfd   : > { %p3329_p3 = pnand %p3327_p1, %p3890_p8 }
  0xff   : > { %p3330_p11 = pneg %p3329_p3 }
 0x101   : > { %p3335_p13 = pnand %p3333_p12, %p3330_p11 }
 0x103   : > { %3338 = shalt.err (!%p3335_p13)
}
 0x104   : > { %s3339_s16 = scalar_lea.vmem %s529_s21, 256  ;;  %p3347_p7 = scmp.lt.s32.totalorder %s529_s21, %s529_s21 }
 0x105   : > { %p3340_p0 = scmp.ne.s32.totalorder %s529_s21, %s3339_s16  ;;  %p3348_p9 = scmp.lt.s32.totalorder %s3339_s16, %s3339_s16 }
 0x107   : > { %p3342_p2 = pnand %p3340_p0, %p3890_p8  ;;  %p3349_p5 = por %p3348_p9, %p3347_p7 }
 0x109   : > { %p3343_p4 = pneg %p3342_p2 }
 0x10b   : > { %p3350_p10 = pnand %p3349_p5, %p3343_p4 }
 0x10d   : > { %3353 = shalt.err (!%p3350_p10)
}
 0x10e   : > { %2919 = dma.hbm_to_vmem [thread:$0]  (!%p3874_p6), %s4640_s6, 256, %s529_s21, [#allocation14], %s4639_s18, %s4639_s18, %s3710_s17  }
 0x10f   : > { %s3717_s24 = smov [#allocation18]   ;;  %s3718_s23 = smov [#allocation21]  }
 0x110   : > { %s553_s25 = sshll.u32 %s3717_s24, 4  ;;  %s574_s30 = sshll.u32 %s3718_s23, 4  ;;  %s554_s25 = int_to_ptr.vmem [resolvable:$true] %s553_s25  ;;  %s575_s30 = int_to_ptr.vmem [resolvable:$true] %s574_s30 }
 0x111   : > { %s4641_s8 = sld [smem:[#allocation60_spill]] }
 0x117   : > { %s3354_s27 = scalar_lea.hbm %s4641_s8, 16 }
 0x118   : > { %p3355_p1 = scmp.ne.s32.totalorder %s4641_s8, %s3354_s27  ;;  %p3361_p12 = scmp.lt.u32.totalorder %s3354_s27, %s4641_s8 }
 0x11a   : > { %p3357_p3 = pnand %p3355_p1, %p3890_p8 }
 0x11c   : > { %p3358_p11 = pneg %p3357_p3 }
 0x11e   : > { %p3363_p13 = pnand %p3361_p12, %p3358_p11 }
 0x120   : > { %3366 = shalt.err (!%p3363_p13)
}
 0x121   : > { %s3367_s21 = scalar_lea.vmem %s554_s25, 16  ;;  %s3374_s22 = scalar_lea.vmem %s554_s25, 32 }
 0x122   : > { %p3368_p0 = scmp.ne.s32.totalorder %s554_s25, %s3367_s21  ;;  %p3375_p7 = scmp.lt.s32.totalorder %s554_s25, %s554_s25 }
 0x123   : > { %p3376_p9 = scmp.lt.s32.totalorder %s3374_s22, %s3367_s21 }
 0x124   : > { %p3370_p2 = pnand %p3368_p0, %p3890_p8 }
 0x125   : > { %p3377_p5 = por %p3376_p9, %p3375_p7 }
 0x126   : > { %p3371_p4 = pneg %p3370_p2 }
 0x128   : > { %p3378_p10 = pnand %p3377_p5, %p3371_p4 }
 0x12a   : > { %3381 = shalt.err (!%p3378_p10)
}
 0x12b   : > { %2925 = dma.hbm_to_vmem [thread:$0]  (!%p3874_p6), %s4641_s8, 16, %s554_s25, [#allocation17]  }
 0x12c   : > { %s3382_s20 = scalar_lea.hbm %s4587_s10, 256 }
 0x12d   : > { %p3383_p1 = scmp.ne.s32.totalorder %s4587_s10, %s3382_s20  ;;  %p3389_p12 = scmp.lt.u32.totalorder %s3382_s20, %s4587_s10 }
 0x12f   : > { %p3385_p3 = pnand %p3383_p1, %p3890_p8 }
 0x131   : > { %p3386_p11 = pneg %p3385_p3 }
 0x133   : > { %p3391_p13 = pnand %p3389_p12, %p3386_p11 }
 0x135   : > { %3394 = shalt.err (!%p3391_p13)
}
 0x136   : > { %s3395_s21 = scalar_lea.vmem %s575_s30, 256  ;;  %p3403_p7 = scmp.lt.s32.totalorder %s575_s30, %s575_s30 }
 0x137   : > { %p3396_p0 = scmp.ne.s32.totalorder %s575_s30, %s3395_s21  ;;  %p3404_p9 = scmp.lt.s32.totalorder %s3395_s21, %s3395_s21 }
 0x139   : > { %p3398_p2 = pnand %p3396_p0, %p3890_p8  ;;  %p3405_p5 = por %p3404_p9, %p3403_p7 }
 0x13b   : > { %p3399_p4 = pneg %p3398_p2 }
 0x13d   : > { %p3406_p10 = pnand %p3405_p5, %p3399_p4 }
 0x13f   : > { %3409 = shalt.err (!%p3406_p10)
}
 0x140   : > { %2931 = dma.hbm_to_vmem [thread:$0]  (!%p3874_p6), %s4587_s10, 256, %s575_s30, [#allocation20], %s4639_s18, %s4639_s18, %s3710_s17  }
 0x141   : > { %s3719_s24 = smov [#allocation24]   ;;  %s3720_s2 = smov [#allocation27]  }
 0x142   : > { %s598_s23 = sshll.u32 %s3719_s24, 4  ;;  %s623_s26 = sshll.u32 %s3720_s2, 4  ;;  %s599_s23 = int_to_ptr.vmem [resolvable:$true] %s598_s23  ;;  %s624_s26 = int_to_ptr.vmem [resolvable:$true] %s623_s26 }
 0x143   : > { %s3410_s28 = scalar_lea.hbm %s4589_s12, 1024 }
 0x144   : > { %p3411_p1 = scmp.ne.s32.totalorder %s4589_s12, %s3410_s28  ;;  %p3417_p12 = scmp.lt.u32.totalorder %s3410_s28, %s4589_s12 }
 0x146   : > { %p3413_p3 = pnand %p3411_p1, %p3890_p8 }
 0x148   : > { %p3414_p11 = pneg %p3413_p3 }
 0x14a   : > { %p3419_p13 = pnand %p3417_p12, %p3414_p11 }
 0x14c   : > { %3422 = shalt.err (!%p3419_p13)
}
 0x14d   : > { %s3423_s30 = scalar_lea.vmem %s599_s23, 1024  ;;  %p3431_p7 = scmp.lt.s32.totalorder %s599_s23, %s599_s23 }
 0x14e   : > { %p3424_p0 = scmp.ne.s32.totalorder %s599_s23, %s3423_s30  ;;  %p3432_p9 = scmp.lt.s32.totalorder %s3423_s30, %s3423_s30 }
 0x150   : > { %p3426_p2 = pnand %p3424_p0, %p3890_p8  ;;  %p3433_p5 = por %p3432_p9, %p3431_p7 }
 0x152   : > { %p3427_p4 = pneg %p3426_p2 }
 0x154   : > { %p3434_p10 = pnand %p3433_p5, %p3427_p4 }
 0x156   : > { %3437 = shalt.err (!%p3434_p10)
}
 0x157   : > { %2937 = dma.hbm_to_vmem [thread:$0]  (!%p3874_p6), %s4589_s12, 1024, %s599_s23, [#allocation23], %s4639_s18, %s4639_s18, %s3710_s17  }
 0x158   : > { %s3438_s27 = scalar_lea.hbm %s4591_s14, 16 }
 0x159   : > { %p3439_p1 = scmp.ne.s32.totalorder %s4591_s14, %s3438_s27  ;;  %p3445_p12 = scmp.lt.u32.totalorder %s3438_s27, %s4591_s14 }
 0x15b   : > { %p3441_p3 = pnand %p3439_p1, %p3890_p8 }
 0x15d   : > { %p3442_p11 = pneg %p3441_p3 }
 0x15f   : > { %p3447_p13 = pnand %p3445_p12, %p3442_p11 }
 0x161   : > { %3450 = shalt.err (!%p3447_p13)
}
 0x162   : > { %s3451_s25 = scalar_lea.vmem %s624_s26, 16  ;;  %s3458_s17 = scalar_lea.vmem %s624_s26, 32 }
 0x163   : > { %p3452_p0 = scmp.ne.s32.totalorder %s624_s26, %s3451_s25  ;;  %p3459_p7 = scmp.lt.s32.totalorder %s624_s26, %s624_s26 }
 0x164   : > { %p3460_p9 = scmp.lt.s32.totalorder %s3458_s17, %s3451_s25 }
 0x165   : > { %p3454_p2 = pnand %p3452_p0, %p3890_p8 }
 0x166   : > { %p3461_p5 = por %p3460_p9, %p3459_p7 }
 0x167   : > { %p3455_p4 = pneg %p3454_p2 }
 0x169   : > { %p3462_p10 = pnand %p3461_p5, %p3455_p4 }
 0x16b   : > { %3465 = shalt.err (!%p3462_p10)
}
 0x16c   : > { %2943 = dma.hbm_to_vmem [thread:$0]  (!%p3874_p6), %s4591_s14, 16, %s624_s26, [#allocation26]  }
 0x16d   : > { %s3721_s30 = smov [#allocation28]   ;;  %s3466_s20 = scalar_lea.hbm %s4592_s15, 16 }
 0x16e   : > { %s634_s22 = sshll.u32 %s3721_s30, 4  ;;  %p3467_p1 = scmp.ne.s32.totalorder %s4592_s15, %s3466_s20  ;;  %s635_s22 = int_to_ptr.vmem [resolvable:$true] %s634_s22 }
 0x16f   : > { %p3473_p12 = scmp.lt.u32.totalorder %s3466_s20, %s4592_s15 }
 0x170   : > { %p3469_p3 = pnand %p3467_p1, %p3890_p8 }
 0x172   : > { %p3470_p11 = pneg %p3469_p3 }
 0x174   : > { %p3475_p13 = pnand %p3473_p12, %p3470_p11 }
 0x176   : > { %3478 = shalt.err (!%p3475_p13)
}
 0x177   : > { %s3479_s26 = scalar_lea.vmem %s635_s22, 16  ;;  %s3486_s21 = scalar_lea.vmem %s635_s22, 32 }
 0x178   : > { %p3480_p0 = scmp.ne.s32.totalorder %s635_s22, %s3479_s26  ;;  %p3487_p7 = scmp.lt.s32.totalorder %s635_s22, %s635_s22 }
 0x179   : > { %p3488_p9 = scmp.lt.s32.totalorder %s3486_s21, %s3479_s26 }
 0x17a   : > { %p3482_p2 = pnand %p3480_p0, %p3890_p8 }
 0x17b   : > { %p3489_p5 = por %p3488_p9, %p3487_p7 }
 0x17c   : > { %p3483_p4 = pneg %p3482_p2 }
 0x17e   : > { %p3490_p10 = pnand %p3489_p5, %p3483_p4 }
 0x180   : > { %3493 = shalt.err (!%p3490_p10)
}
 0x181   : > { %s4642_s18 = sld [smem:[#allocation49_spill]]  ;;  %s4643_s23 = sld [smem:[#allocation47_spill]] }
 0x182   : > { %s4644_s30 = sld [smem:[#allocation46_spill]]  ;;  %s4645_s0 = sld [smem:[#allocation45_spill]] }
 0x183   : > { %s4646_s24 = sld [smem:[#allocation50_spill]]  ;;  %s2612_s2 = sadd.s32 4294967294, %s3704_s29  }
 0x184   : > { %2946 = dma.hbm_to_vmem [thread:$0]  (!%p3874_p6), %s4592_s15, 16, %s635_s22, [#allocation29]  }
 0x185   : > { %p76_p3 = scmp.eq.s32.totalorder %s3704_s29, 0  ;;  %p433_p7 = scmp.eq.s32.totalorder %s2612_s2, 1 }
 0x186   : > { %p2975_p5 = scmp.lt.s32.totalorder %s3704_s29, 2 }
 0x187   : > { %s59_s20 = sadd.s32 1, %s4642_s18  ;;  %s68_s1 = sadd.s32 1, %s4643_s23 }
 0x188   : > { %p61_p8 = scmp.ge.s32.totalorder %s59_s20, 2  ;;  %p75_p1 = scmp.ne.s32.totalorder %s4643_s23, %s4644_s30 }
 0x189   : > { %p81_p12 = scmp.ne.s32.totalorder %s4644_s30, %s4645_s0  ;;  %p427_p6 = scmp.eq.s32.totalorder %s4646_s24, 1 }
 0x18a   : > { %s4691_s20 = smov (%p61_p8, %s59_s20), 0  ;;  %p4175_p11 = por %p76_p3, %p75_p1 }
 0x18b   : > { %s63_s22 = ssub.s32 %s4642_s18, %s4691_s20  ;;  %p4648_p0 = scmp.eq.s32.totalorder %s4646_s24, 0 }
 0x18c   : > { %p66_p13 = scmp.eq.s32.totalorder %s63_s22, 0  ;;  %p4190_p4 = por %p427_p6, %p75_p1 }
 0x18d   : > { %p4186_p2 = por %p4648_p0, %p81_p12  ;;  %p4197_p9 = por %p433_p7, %p81_p12 }
 0x18e   : > { %s4650_s16 = scalar_select %p4190_p4, 1, 0 }
 0x18f   : > { %s4649_s28 = scalar_select %p4186_p2, 1, 0 }
 0x190   : > { %s4195_s19 = scalar_select %p66_p13, %s4643_s23, %s68_s1  }
 0x191   : > { %s4651_s26 = scalar_select %p4197_p9, 1, 0 }
 0x192   : > { %s4203_s21 = sand.u32 1, %s4643_s23   ;;  %s2630_s25 = sshll.u32 %s4642_s18, 7 }
 0x193   : > { %s2629_s17 = sshll.u32 %s4203_s21, 3  ;;  %s4652_s24 = sld [smem:[#allocation52_spill]] }
 0x194   : > { %s649_s2 = scalar_lea.vmem [#allocation4], %s2629_s17  ;;  %p4214_p10 = pnand %p2975_p5, %p4175_p11 }
 0x195   : > { %s657_s1 = sshll.u32 %s649_s2, 4  ;;  %s646_s5 = scalar_lea.sflag [#allocation5], %s4203_s21  ;;  %s4218_s1 = int_to_ptr.vmem [resolvable:$true] %s657_s1 }
 0x196   : > { %p3496_p1 = pneg %p4214_p10 }
 0x199   : > { %s4653_s22 = smov %s4652_s24  ;;  %s4210_s3 = scalar_lea.hbm %s4652_s24, %s2630_s25 }
 0x19a   : > { %s3494_s30 = scalar_lea.hbm %s4210_s3, 128  ;;  %s3499_s17 = scalar_lea.hbm %s4653_s22, 256 }
 0x19b   : > { %p3495_p8 = scmp.ne.s32.totalorder %s4210_s3, %s3494_s30  ;;  %p3500_p11 = scmp.lt.u32.totalorder %s4210_s3, %s4653_s22 }
 0x19c   : > { %p3501_p6 = scmp.lt.u32.totalorder %s3499_s17, %s3494_s30  ;;  %p3503_p0 = scmp.lt.u32.totalorder %s3494_s30, %s4210_s3 }
 0x19d   : > { %p3497_p3 = pnand %p3496_p1, %p3495_p8 }
 0x19e   : > { %p3502_p13 = por %p3501_p6, %p3500_p11 }
 0x19f   : > { %p3498_p12 = pneg %p3497_p3 }
 0x1a0   : > { %p3504_p7 = por %p3503_p0, %p3502_p13 }
 0x1a2   : > { %p3505_p5 = pnand %p3504_p7, %p3498_p12 }
 0x1a4   : > { %3508 = shalt.err (!%p3505_p5)
}
 0x1a5   : > { %s3509_s2 = scalar_lea.vmem %s4218_s1, 128  ;;  %s3722_s25 = smov [#allocation4]  }
 0x1a6   : > { %p3510_p8 = scmp.ne.s32.totalorder %s4218_s1, %s3509_s2  ;;  %s3514_s27 = sshll.u32 %s3722_s25, 4  ;;  %s3515_s27 = int_to_ptr.vmem [resolvable:$false] %s3514_s27 }
 0x1a7   : > { %s3516_s0 = scalar_lea.vmem %s3515_s27, 256  ;;  %p3517_p4 = scmp.lt.s32.totalorder %s4218_s1, %s3515_s27 }
 0x1a8   : > { %p3512_p3 = pnand %p3510_p8, %p3496_p1  ;;  %p3518_p11 = scmp.lt.s32.totalorder %s3516_s0, %s3509_s2 }
 0x1aa   : > { %p3513_p9 = pneg %p3512_p3  ;;  %p3519_p6 = por %p3518_p11, %p3517_p4 }
 0x1ac   : > { %p3520_p13 = pnand %p3519_p6, %p3513_p9 }
 0x1ae   : > { %3523 = shalt.err (!%p3520_p13)
}
 0x1af   : > { %2950 = dma.hbm_to_vmem [thread:$0]  (!%p4214_p10), %s4210_s3, 128, %s4218_s1, %s646_s5  }
 0x1b0   : > { %s2631_s30 = sshll.u32 %s4203_s21, 2  ;;  %s2632_s17 = sshll.u32 %s4642_s18, 6 }
 0x1b1   : > { %s4655_s23 = sld [smem:[#allocation53_spill]]  ;;  %s668_s2 = scalar_lea.vmem [#allocation7], %s2631_s30 }
 0x1b2   : > { %s675_s27 = sshll.u32 %s668_s2, 4  ;;  %s4656_s0 = sand.u32 1, %s3704_s29   ;;  %s676_s27 = int_to_ptr.vmem [resolvable:$true] %s675_s27 }
 0x1b3   : > { %s665_s7 = scalar_lea.sflag [#allocation8], %s4656_s0 }
 0x1b7   : > { %s4252_s6 = scalar_lea.hbm %s4655_s23, %s2632_s17  ;;  %s3529_s18 = scalar_lea.hbm %s4655_s23, 128 }
 0x1b8   : > { %s3524_s8 = scalar_lea.hbm %s4252_s6, 64  ;;  %p3530_p0 = scmp.lt.u32.totalorder %s4252_s6, %s4655_s23 }
 0x1b9   : > { %p3525_p4 = scmp.ne.s32.totalorder %s4252_s6, %s3524_s8  ;;  %p3531_p7 = scmp.lt.u32.totalorder %s3529_s18, %s3524_s8 }
 0x1ba   : > { %p3533_p8 = scmp.lt.u32.totalorder %s3524_s8, %s4252_s6 }
 0x1bb   : > { %p3527_p9 = pnand %p3525_p4, %p3496_p1  ;;  %p3532_p5 = por %p3531_p7, %p3530_p0 }
 0x1bd   : > { %p3528_p12 = pneg %p3527_p9  ;;  %p3534_p3 = por %p3533_p8, %p3532_p5 }
 0x1bf   : > { %p3535_p11 = pnand %p3534_p3, %p3528_p12 }
 0x1c1   : > { %3538 = shalt.err (!%p3535_p11)
}
 0x1c2   : > { %s3539_s30 = scalar_lea.vmem %s676_s27, 64  ;;  %s3723_s17 = smov [#allocation7]  }
 0x1c3   : > { %p3540_p6 = scmp.ne.s32.totalorder %s676_s27, %s3539_s30  ;;  %s3544_s24 = sshll.u32 %s3723_s17, 4  ;;  %s3545_s24 = int_to_ptr.vmem [resolvable:$false] %s3544_s24 }
 0x1c4   : > { %s3546_s25 = scalar_lea.vmem %s3545_s24, 128  ;;  %p3547_p9 = scmp.lt.s32.totalorder %s676_s27, %s3545_s24 }
 0x1c5   : > { %p3542_p13 = pnand %p3540_p6, %p3496_p1  ;;  %p3548_p2 = scmp.lt.s32.totalorder %s3546_s25, %s3539_s30 }
 0x1c7   : > { %p3543_p4 = pneg %p3542_p13  ;;  %p3549_p0 = por %p3548_p2, %p3547_p9 }
 0x1c9   : > { %p3550_p7 = pnand %p3549_p0, %p3543_p4 }
 0x1cb   : > { %3553 = shalt.err (!%p3550_p7)
}
 0x1cc   : > { %2953 = dma.hbm_to_vmem [thread:$0]  (!%p4214_p10), %s4252_s6, 64, %s676_s27, %s665_s7  }
 0x1cd   : > { %s4657_s8 = sld [smem:[#allocation51_spill]] }
 0x1d3   : > { %p4658_p12 = scmp.ne.s32.totalorder %s4657_s8, 0 }
 0x1d4   : > { %s4659_s2 = sld [smem:[#allocation46_spill]] (!%p4658_p12)  ;;  %p4660_p2 = scmp.ne.s32.totalorder (!%p4658_p12), %s4649_s28, 0 }
 0x1d5   : > { %684 = sbr.rel (%p4658_p12) target bundleno = 2925 (0xb6d), region = 84 }
 0x1da   : > { %s4278_s0 = sand.u32 (!%p4658_p12), 1, %s4659_s2  }
 0x1db   : > { %s4281_s3 = sshll.u32 (!%p4658_p12), %s4278_s0, 3  ;;  %s687_s5 = scalar_lea.sflag (!%p4658_p12), [#allocation5], %s4278_s0 }
 0x1dc   : > { %s690_s18 = scalar_lea.vmem [#allocation4], %s4281_s3 }
 0x1dd   : > { %3635 = dma.done.wait (%p4660_p2), %s687_s5, 128  }
 0x1de   : > { %3637 = vsyncadd (%p4660_p2), %s687_s5, 4294967168  ;;  %s4661_s4 = sld [smem:[#allocation50_spill]]  ;;  %s2635_s7 = sshll.u32 %s4278_s0, 2 }
 0x1df   : > { %s699_s21 = scalar_lea.vmem [#allocation7], %s2635_s7 }
 0x1e4   : > { %s695_s6 = sand.u32 1, %s4661_s4  }
 0x1e5   : > { %s696_s27 = scalar_lea.sflag [#allocation8], %s695_s6 }
 0x1e6   : > { %3639 = dma.done.wait (%p4660_p2), %s696_s27, 64  }
 0x1e7   : > { %3641 = vsyncadd (%p4660_p2), %s696_s27, 4294967232  ;;  %p4662_p10 = scmp.eq.s32.totalorder %s4661_s4, 0 }
 0x1e9   : > { %3643 = dma.done.wait (%p4662_p10), [#allocation8], 256   ;;  %p4663_p1 = pmov %p4662_p10 }
 0x1eb   : > { %3645 = vsyncadd (%p4663_p1), [#allocation8], 4294967040  ;;  %p4664_p5 = pmov %p4663_p1 }
 0x1ec   : > { %p4665_p8 = pmov %p4663_p1 }
 0x1ed   : > { %3647 = dma.done.wait (%p4664_p5), [#allocation11], 272  }
 0x1ee   : > { %3649 = vsyncadd (%p4665_p8), [#allocation11], 4294967024  ;;  %p4666_p3 = pmov %p4663_p1 }
 0x1ef   : > { %p4667_p11 = pmov %p4663_p1 }
 0x1f0   : > { %3651 = dma.done.wait (%p4666_p3), [#allocation14], 272  }
 0x1f1   : > { %3653 = vsyncadd (%p4667_p11), [#allocation14], 4294967024  ;;  %p4668_p6 = pmov %p4663_p1 }
 0x1f2   : > { %p4669_p13 = pmov %p4663_p1 }
 0x1f3   : > { %3655 = dma.done.wait (%p4668_p6), [#allocation17], 32  }
 0x1f4   : > { %3657 = vsyncadd (%p4669_p13), [#allocation17], 4294967264  ;;  %p4670_p4 = pmov %p4663_p1 }
 0x1f5   : > { %p4671_p9 = pmov %p4663_p1 }
 0x1f6   : > { %3659 = dma.done.wait (%p4670_p4), [#allocation20], 272  }
 0x1f7   : > { %3661 = vsyncadd (%p4671_p9), [#allocation20], 4294967024  ;;  %p4672_p0 = pmov %p4663_p1 }
 0x1f9   : > { %3663 = dma.done.wait (%p4672_p0), [#allocation23], 1040   ;;  %p4673_p7 = pmov %p4672_p0 }
 0x1fa   : > { %p4674_p12 = pmov %p4672_p0 }
 0x1fb   : > { %3665 = vsyncadd (%p4673_p7), [#allocation23], 4294966256 }
 0x1fc   : > { %3667 = dma.done.wait (%p4674_p12), [#allocation26], 32   ;;  %p4675_p2 = pmov %p4672_p0 }
 0x1fd   : > { %p4676_p10 = pmov %p4672_p0 }
 0x1fe   : > { %3669 = vsyncadd (%p4675_p2), [#allocation26], 4294967264 }
 0x1ff   : > { %3671 = dma.done.wait (%p4676_p10), [#allocation29], 16   ;;  %p4677_p1 = pmov %p4672_p0 }
 0x200   : > { %v3724_v0 = vmov 0.0   ;;  %vm3725_vm0 = vmmov 0   ;;  %v3066_v1 = vld [vmem:[#allocation12] sm:$0xff]   ;;  %v3067_v2 = vld [vmem:[#allocation12 + $0x8] sm:$0xff]   ;;  %vm846_vm1 = vcmask 261120   ;;  %v3069_v5 = vld [vmem:[#allocation9 + $0x8] sm:$0xff]   ;;  %v905_v22 = vlaneseq }
 0x201   : > { %3673 = vsyncadd (%p4677_p1), [#allocation29], 4294967280  ;;  %2740 = vmatprep.subr.bf16.mxu1 %v3724_v0  ;;  %2744 = vmatprep.mubr.msk.bf16.mxu1 %vm3725_vm0, %v3724_v0  ;;  %v822_v3 = vld [vmem:[%s699_s21] sm:$0xf]  ;;  %v3068_v4 = vld [vmem:[#allocation9] sm:$0xff]   ;;  %s3726_s28 = smov 104  }
 0x202   : > { %2768 = vmatprep.subr.bf16.mxu0 %v3724_v0  ;;  %2770 = vmatprep.mubr.msk.bf16.mxu0 %vm3725_vm0, %v3724_v0  ;;  %v4337_v6 = vld [vmem:[%s690_s18] sm:$0xff]  ;;  %v2652_v8 = vld [vmem:[#allocation13] ss:$0 sm:$0xff]  ;;  %s3727_s1 = smov 120   ;;  %s3728_s30 = smov 112   ;;  %v906_v26 = vshrl.u32 %v905_v22, 7 }
 0x203   : > { %2741 = vmatpush3.bf16.msra.mxu1 %v3066_v1  ;;  %v1201_v7 = vpack.c.bf16 %v4337_v6, %v4337_v6  ;;  %v2660_v14 = vld [vmem:[#allocation10] ss:$0 sm:$0xff]  ;;  %s3729_s17 = smov 96   ;;  %v3730_v20 = vmov 1983009808   ;;  %vm1040_vm2 = vcmask 60416  }
 0x204   : > { %2742 = vmatprep.subr.bf16.mxu1 %v3724_v0  ;;  %v903_v21 = vunpack.c.l.s4 %v3730_v20  ;;  %v3731_v23 = vmov 1934713408   ;;  %vm1427_vm3 = vcmask 64512   ;;  %vm1655_vm4 = vcmask 1043456   ;;  %s3732_s24 = smov 16   ;;  %s3733_s25 = smov 8  }
 0x205   : > { %v935_v24 = vunpack.c.l.s4 %v3731_v23  ;;  %s3734_s8 = smov 24   ;;  %vm1994_vm5 = vcmask 130048   ;;  %vm1996_vm6 = vcmask 195584   ;;  %s4678_s2 = sld [smem:[#allocation48_spill]] }
 0x206   : > { %v904_v25 = vunpack.c.0.s8 %v903_v21  ;;  %s815_s5 = scalar_lea.vmem [#allocation31], %s4281_s3  ;;  %s4679_s7 = sld [smem:[#allocation62_spill]] }
 0x207   : > { %2743 = vmatpush3.bf16.msra.mxu1 %v3067_v2  ;;  %v936_v29 = vunpack.c.0.s8 %v935_v24  ;;  %s2342_s21 = sshll.u32 %s815_s5, 4  ;;  %p4680_p8 = scmp.ne.s32.totalorder %s4650_s16, 0  ;;  %s2343_s21 = int_to_ptr.vmem [resolvable:$true] %s2342_s21 }
 0x208   : > { %2748 = vmatprep.subr.bf16.mxu1 %v3724_v0  ;;  %v4349_v30 = vsub.s32 %v904_v25, %v906_v26 }
 0x209   : > { %v4351_v36 = vsub.s32 %v936_v29, %v906_v26 }
 0x20a   : > { %2745 = vmatmul.mubr.msk.bf16.vlgmr.msra.gmra.mrb[0].mxu1 %vm846_vm1, %v822_v3 }
 0x20b   : > { %2749 = vmatpush3.bf16.msra.mxu1 %v3068_v4  ;;  %2752 = vmatprep.mubr.msk.bf16.mxu1 %vm3725_vm0, %v3724_v0  ;;  %s2699_s18 = sshll.u32 %s4678_s2, 7 }
 0x20c   : > { %2750 = vmatprep.subr.bf16.mxu1 %v3724_v0  ;;  %s4501_s27 = scalar_lea.hbm %s4679_s7, %s2699_s18 }
 0x20f   : > { %2751 = vmatpush3.bf16.msra.mxu1 %v3069_v5 }
 0x210   : > { %2756 = vmatprep.subr.bf16.mxu1 %v3724_v0 }
 0x212   : > { %2753 = vmatmul.mubr.msk.bf16.vlgmr.msra.gmra.mrb[4].mxu1 %vm846_vm1, %v1201_v7 }
 0x213   : > { %2758 = vmatprep.mubr.msk.bf16.mxu1 %vm3725_vm0, %v3724_v0 }
 0x2dd   : > { %v884_v9 = vpop.f32.mrb[0].mxu1 }
 0x2de   : > { %v885_v10 = vadd.f32 %v2652_v8, %v884_v9  ;;  %v2746_v11 = vpop.f32.mrb[1].mxu1 }
 0x2df   : > { %v887_v12 = vpop.f32.mrb[2].mxu1 }
 0x2e0   : > { %897 = vrot.lane.b32.xlu1 %v885_v10, %s3726_s28  ;;  %891 = vrot.lane.b32.xlu0 %v885_v10, %s3727_s1  ;;  %v2747_v13 = vpop.f32.mrb[3].mxu1 }
 0x2e4   : > { %894 = vrot.lane.b32.xlu0 %v885_v10, %s3728_s30 }
 0x2e5   : > { %v1263_v15 = vpop.f32.mrb[4].mxu1 }
 0x2e6   : > { %v1264_v16 = vadd.f32 %v2660_v14, %v1263_v15  ;;  %v2754_v17 = vpop.f32.mrb[5].mxu1 }
 0x2e7   : > { %v1266_v18 = vpop.f32.mrb[6].mxu1 }
 0x2e8   : > { %1273 = vrot.lane.b32.xlu0 %v1264_v16, %s3728_s30  ;;  %1270 = vrot.lane.b32.xlu1 %v1264_v16, %s3727_s1  ;;  %v2755_v19 = vpop.f32.mrb[7].mxu1  ;;  %s3554_s1 = scalar_lea.vmem %s2343_s21, 128  ;;  %s3735_s30 = smov [#allocation31]  }
 0x2e9   : > { %p3555_p5 = scmp.ne.s32.totalorder %s2343_s21, %s3554_s1 }
 0x2eb   : > { %p3556_p3 = pnand %p3555_p5, %p4680_p8 }
 0x2ec   : > { %1045 = vrot.lane.b32.xlu0 %v885_v10, %s3729_s17  ;;  %1276 = vrot.lane.b32.xlu1 %v1264_v16, %s3726_s28  ;;  %s2314_s28 = scalar_lea.sflag [#allocation32], %s4278_s0 }
 0x2ed   : > { %p3557_p11 = pneg %p3556_p3 }
 0x352   : > { %v898_v27 = vpop.permute.xlu1 %897  ;;  %v892_v28 = vpop.permute.xlu0 %891 }
 0x353   : > { %1047 = vrot.lane.b32.xlu1 %v892_v28, %s3729_s17  ;;  %v916_v31 = vcombine.low %v892_v28, %v898_v27  ;;  %v917_v32 = vcombine.high %v892_v28, %v898_v27 }
 0x355   : > { %v924_v37 = vrot.slane %v916_v31, %v4349_v30  ;;  %v931_v38 = vrot.slane %v917_v32, %v4349_v30 }
 0x356   : > { %v895_v33 = vpop.permute.xlu0 %894 }
 0x357   : > { %v900_v34 = vcombine.low %v885_v10, %v895_v33  ;;  %v901_v35 = vcombine.high %v885_v10, %v895_v33  ;;  %1049 = vrot.lane.b32.xlu0 %v895_v33, %s3729_s17  ;;  %1051 = vrot.lane.b32.xlu1 %v898_v27, %s3729_s17  ;;  %s3558_s17 = sshll.u32 %s3735_s30, 4  ;;  %s3559_s17 = int_to_ptr.vmem [resolvable:$false] %s3558_s17 }
 0x358   : > { %p3561_p6 = scmp.lt.s32.totalorder %s2343_s21, %s3559_s17 }
 0x359   : > { %v908_v39 = vrot.slane %v900_v34, %v4349_v30  ;;  %v915_v40 = vrot.slane %v901_v35, %v4349_v30 }
 0x35a   : > { %v1271_v41 = vpop.permute.xlu1 %1270  ;;  %v1274_v46 = vpop.permute.xlu0 %1273 }
 0x35b   : > { %v932_v42 = vcombine.low %v908_v39, %v924_v37  ;;  %v933_v43 = vcombine.high %v908_v39, %v924_v37  ;;  %v948_v44 = vcombine.low %v915_v40, %v931_v38  ;;  %v949_v45 = vcombine.high %v915_v40, %v931_v38 }
 0x35c   : > { %v1279_v51 = vcombine.low %v1264_v16, %v1274_v46  ;;  %v1280_v52 = vcombine.high %v1264_v16, %v1274_v46 }
 0x35d   : > { %v940_v47 = vrot.slane %v932_v42, %v4351_v36  ;;  %v947_v48 = vrot.slane %v933_v43, %v4351_v36  ;;  %v956_v49 = vrot.slane %v948_v44, %v4351_v36  ;;  %v963_v50 = vrot.slane %v949_v45, %v4351_v36 }
 0x35e   : > { %v1277_v53 = vpop.permute.xlu1 %1276  ;;  %v1287_v1 = vrot.slane %v1279_v51, %v4349_v30  ;;  %v1294_v2 = vrot.slane %v1280_v52, %v4349_v30 }
 0x35f   : > { %v968_v54 = vcombine.low %v940_v47, %v947_v48  ;;  %v2656_v55 = vcombine.high %v940_v47, %v947_v48  ;;  %v984_v56 = vcombine.low %v956_v49, %v963_v50  ;;  %v2657_v57 = vcombine.high %v956_v49, %v963_v50 }
 0x360   : > { %v1295_v58 = vcombine.low %v1271_v41, %v1277_v53  ;;  %v1296_v59 = vcombine.high %v1271_v41, %v1277_v53 }
 0x361   : > { %v975_v60 = vrot.slane %v968_v54, %v4349_v30  ;;  %v983_v61 = vrot.slane %v2656_v55, %v4349_v30  ;;  %v991_v62 = vrot.slane %v984_v56, %v4349_v30  ;;  %v999_v63 = vrot.slane %v2657_v57, %v4349_v30 }
 0x362   : > { %v1303_v3 = vrot.slane %v1295_v58, %v4349_v30  ;;  %v1310_v4 = vrot.slane %v1296_v59, %v4349_v30 }
 0x363   : > { %v1000_v5 = vcombine.low %v975_v60, %v983_v61  ;;  %v1001_v7 = vcombine.high %v975_v60, %v983_v61  ;;  %v1016_v8 = vcombine.low %v991_v62, %v999_v63  ;;  %v1017_v9 = vcombine.high %v991_v62, %v999_v63 }
 0x364   : > { %v1311_v10 = vcombine.low %v1287_v1, %v1303_v3  ;;  %v1312_v11 = vcombine.high %v1287_v1, %v1303_v3  ;;  %v1327_v12 = vcombine.low %v1294_v2, %v1310_v4  ;;  %v1328_v13 = vcombine.high %v1294_v2, %v1310_v4  ;;  %v1046_v1 = vpop.permute.xlu0 %1045 }
 0x365   : > { %v1008_v14 = vrot.slane %v1000_v5, %v4351_v36  ;;  %v1015_v15 = vrot.slane %v1001_v7, %v4351_v36  ;;  %v1024_v16 = vrot.slane %v1016_v8, %v4351_v36  ;;  %v1031_v17 = vrot.slane %v1017_v9, %v4351_v36 }
 0x366   : > { %v1319_v18 = vrot.slane %v1311_v10, %v4351_v36  ;;  %v1326_v19 = vrot.slane %v1312_v11, %v4351_v36  ;;  %v1335_v20 = vrot.slane %v1327_v12, %v4351_v36  ;;  %v1342_v21 = vrot.slane %v1328_v13, %v4351_v36 }
 0x367   : > { %v1032_v22 = vcombine.low %v1008_v14, %v1024_v16  ;;  %v1033_v23 = vcombine.high %v1008_v14, %v1024_v16  ;;  %v1034_v24 = vcombine.low %v1015_v15, %v1031_v17  ;;  %v1035_v25 = vcombine.high %v1015_v15, %v1031_v17 }
 0x368   : > { %v1347_v26 = vcombine.low %v1319_v18, %v1326_v19  ;;  %v2664_v27 = vcombine.high %v1319_v18, %v1326_v19  ;;  %v1363_v28 = vcombine.low %v1335_v20, %v1342_v21  ;;  %v2665_v29 = vcombine.high %v1335_v20, %v1342_v21 }
 0x369   : > { %v1036_v31 = vpack.c.bf16 %v1032_v22, %v1032_v22  ;;  %v1037_v32 = vpack.c.bf16 %v1033_v23, %v1033_v23  ;;  %v1038_v33 = vpack.c.bf16 %v1034_v24, %v1034_v24  ;;  %v1039_v34 = vpack.c.bf16 %v1035_v25, %v1035_v25 }
 0x36a   : > { %v1354_v35 = vrot.slane %v1347_v26, %v4349_v30  ;;  %v1362_v37 = vrot.slane %v2664_v27, %v4349_v30  ;;  %v1370_v38 = vrot.slane %v1363_v28, %v4349_v30  ;;  %v1378_v39 = vrot.slane %v2665_v29, %v4349_v30 }
 0x36b   : > { %1041 = vst.msk [vmem:[#allocation2] sm:$0xf] %vm1040_vm2, %v1036_v31  ;;  %1042 = vst.msk [vmem:[#allocation2 + $0x4] sm:$0xf] %vm1040_vm2, %v1037_v32 }
 0x36c   : > { %1043 = vst.msk [vmem:[#allocation2 + $0x8] sm:$0xf] %vm1040_vm2, %v1038_v33  ;;  %1044 = vst.msk [vmem:[#allocation2 + $0xc] sm:$0xf] %vm1040_vm2, %v1039_v34  ;;  %v1379_v40 = vcombine.low %v1354_v35, %v1362_v37  ;;  %v1395_v41 = vcombine.low %v1370_v38, %v1378_v39  ;;  %v1380_v42 = vcombine.high %v1354_v35, %v1362_v37 }
 0x36d   : > { %v1396_v43 = vcombine.high %v1370_v38, %v1378_v39 }
 0x36e   : > { %v1387_v44 = vrot.slane %v1379_v40, %v4351_v36  ;;  %v1403_v45 = vrot.slane %v1395_v41, %v4351_v36  ;;  %v1394_v46 = vrot.slane %v1380_v42, %v4351_v36 }
 0x36f   : > { %v1410_v47 = vrot.slane %v1396_v43, %v4351_v36 }
 0x370   : > { %v1411_v52 = vcombine.low %v1387_v44, %v1403_v45  ;;  %v1412_v58 = vcombine.high %v1387_v44, %v1403_v45 }
 0x371   : > { %v1413_v53 = vcombine.low %v1394_v46, %v1410_v47  ;;  %v1414_v62 = vcombine.high %v1394_v46, %v1410_v47 }
 0x372   : > { %v1419_v48 = vld [vmem:[#allocation2] sm:$0xf]  ;;  %v1420_v54 = vld [vmem:[#allocation2 + $0x4] sm:$0xf]  ;;  %v1415_v55 = vpack.c.bf16 %v1411_v52, %v1411_v52  ;;  %v1416_v60 = vpack.c.bf16 %v1412_v58, %v1412_v58 }
 0x373   : > { %v1421_v49 = vld [vmem:[#allocation2 + $0x8] sm:$0xf]  ;;  %v1432_v50 = vsel %vm1427_vm3, %v1419_v48, 0  ;;  %v1417_v56 = vpack.c.bf16 %v1413_v53, %v1413_v53  ;;  %v1478_v57 = vsel %vm1427_vm3, %v1420_v54, 0  ;;  %v1422_v59 = vld [vmem:[#allocation2 + $0xc] sm:$0xf]  ;;  %v1418_v63 = vpack.c.bf16 %v1414_v62, %v1414_v62 }
 0x374   : > { %v1524_v51 = vsel %vm1427_vm3, %v1421_v49, 0  ;;  %2757 = vmatpush3.bf16.xpose.msra.mxu1 %v1432_v50  ;;  %v1570_v61 = vsel %vm1427_vm3, %v1422_v59, 0 }
 0x375   : > { %2769 = vmatpush3.bf16.xpose.msra.mxu0 %v1524_v51  ;;  %2762 = vmatprep.subr.bf16.mxu1 %v3724_v0 }
 0x376   : > { %2780 = vmatprep.subr.bf16.mxu0 %v3724_v0 }
 0x37b   : > { %2759 = vmatmul.mubr.msk.bf16.vlgmr.msra.gmra.mrb[8].mxu1 %vm1427_vm3, %v1415_v55 }
 0x37c   : > { %2771 = vmatmul.mubr.msk.bf16.vlgmr.msra.gmra.mrb[0].mxu0 %vm1427_vm3, %v1417_v56  ;;  %2763 = vmatpush3.bf16.xpose.msra.mxu1 %v1478_v57 }
 0x37d   : > { %2764 = vmatprep.mubr.msk.bf16.mxu1 %vm3725_vm0, %v3724_v0  ;;  %2774 = vmatprep.subr.bf16.mxu1 %v3724_v0 }
 0x37e   : > { %2782 = vmatprep.mubr.msk.bf16.mxu0 %vm3725_vm0, %v3724_v0 }
 0x383   : > { %2765 = vmatmul.mubr.msk.bf16.vlgmr.msra.gmra.mrb[12].mxu1 %vm1427_vm3, %v1416_v60 }
 0x384   : > { %2775 = vmatpush3.bf16.xpose.msra.mxu1 %v1570_v61  ;;  %2776 = vmatprep.mubr.msk.bf16.mxu1 %vm3725_vm0, %v3724_v0 }
 0x385   : > { %2786 = vmatprep.subr.bf16.mxu1 %v3724_v0 }
 0x38b   : > { %2777 = vmatmul.mubr.msk.bf16.vlgmr.msra.gmra.mrb[16].mxu1 %vm1427_vm3, %v1418_v63 }
 0x38c   : > { %2788 = vmatprep.mubr.msk.bf16.mxu1 %vm3725_vm0, %v3724_v0 }
 0x3c5   : > { %v1048_v2 = vpop.permute.xlu1 %1047 }
 0x3c9   : > { %v1050_v3 = vpop.permute.xlu0 %1049  ;;  %v1052_v4 = vpop.permute.xlu1 %1051 }
 0x3ca   : > { %v1057_v5 = vcombine.low %v1046_v1, %v1050_v3  ;;  %v1058_v7 = vcombine.high %v1046_v1, %v1050_v3  ;;  %v1073_v8 = vcombine.low %v1048_v2, %v1052_v4  ;;  %v1074_v9 = vcombine.high %v1048_v2, %v1052_v4 }
 0x3cc   : > { %v1065_v10 = vrot.slane %v1057_v5, %v4349_v30  ;;  %v1072_v11 = vrot.slane %v1058_v7, %v4349_v30  ;;  %v1081_v12 = vrot.slane %v1073_v8, %v4349_v30  ;;  %v1088_v13 = vrot.slane %v1074_v9, %v4349_v30 }
 0x3ce   : > { %v1089_v14 = vcombine.low %v1065_v10, %v1081_v12  ;;  %v1090_v15 = vcombine.high %v1065_v10, %v1081_v12  ;;  %v1105_v16 = vcombine.low %v1072_v11, %v1088_v13  ;;  %v1106_v17 = vcombine.high %v1072_v11, %v1088_v13 }
 0x3d0   : > { %v1097_v18 = vrot.slane %v1089_v14, %v4351_v36  ;;  %v1104_v19 = vrot.slane %v1090_v15, %v4351_v36  ;;  %v1113_v20 = vrot.slane %v1105_v16, %v4351_v36  ;;  %v1120_v21 = vrot.slane %v1106_v17, %v4351_v36 }
 0x3d2   : > { %v1125_v22 = vcombine.low %v1097_v18, %v1104_v19  ;;  %v2658_v23 = vcombine.high %v1097_v18, %v1104_v19  ;;  %v1141_v24 = vcombine.low %v1113_v20, %v1120_v21  ;;  %v2659_v25 = vcombine.high %v1113_v20, %v1120_v21 }
 0x3d4   : > { %v1132_v26 = vrot.slane %v1125_v22, %v4349_v30  ;;  %v1140_v27 = vrot.slane %v2658_v23, %v4349_v30  ;;  %v1148_v28 = vrot.slane %v1141_v24, %v4349_v30  ;;  %v1156_v29 = vrot.slane %v2659_v25, %v4349_v30 }
 0x3d6   : > { %v1157_v31 = vcombine.low %v1132_v26, %v1140_v27  ;;  %v1158_v32 = vcombine.high %v1132_v26, %v1140_v27  ;;  %v1173_v33 = vcombine.low %v1148_v28, %v1156_v29  ;;  %v1174_v34 = vcombine.high %v1148_v28, %v1156_v29 }
 0x3d8   : > { %v1165_v35 = vrot.slane %v1157_v31, %v4351_v36  ;;  %v1172_v37 = vrot.slane %v1158_v32, %v4351_v36  ;;  %v1181_v38 = vrot.slane %v1173_v33, %v4351_v36  ;;  %v1188_v39 = vrot.slane %v1174_v34, %v4351_v36 }
 0x3da   : > { %v1189_v40 = vcombine.low %v1165_v35, %v1181_v38  ;;  %v1190_v41 = vcombine.high %v1165_v35, %v1181_v38  ;;  %v1191_v42 = vcombine.low %v1172_v37, %v1188_v39  ;;  %v1192_v43 = vcombine.high %v1172_v37, %v1188_v39 }
 0x3dc   : > { %v1193_v44 = vpack.c.bf16 %v1189_v40, %v1189_v40  ;;  %v1194_v45 = vpack.c.bf16 %v1190_v41, %v1190_v41  ;;  %v1195_v46 = vpack.c.bf16 %v1191_v42, %v1191_v42  ;;  %v1196_v47 = vpack.c.bf16 %v1192_v43, %v1192_v43 }
 0x3de   : > { %1197 = vst.msk [vmem:[#allocation3] sm:$0xf] %vm1040_vm2, %v1193_v44  ;;  %1198 = vst.msk [vmem:[#allocation3 + $0x4] sm:$0xf] %vm1040_vm2, %v1194_v45 }
 0x3df   : > { %1199 = vst.msk [vmem:[#allocation3 + $0x8] sm:$0xf] %vm1040_vm2, %v1195_v46  ;;  %1200 = vst.msk [vmem:[#allocation3 + $0xc] sm:$0xf] %vm1040_vm2, %v1196_v47 }
 0x3e5   : > { %v1423_v48 = vld [vmem:[#allocation3] sm:$0xf]  ;;  %v1424_v49 = vld [vmem:[#allocation3 + $0x4] sm:$0xf] }
 0x3e6   : > { %v1657_v50 = vsel %vm1655_vm4, %v1423_v48, 0  ;;  %v1703_v51 = vsel %vm1655_vm4, %v1424_v49, 0  ;;  %v1425_v20 = vld [vmem:[#allocation3 + $0x8] sm:$0xf]  ;;  %v1426_v31 = vld [vmem:[#allocation3 + $0xc] sm:$0xf] }
 0x3e7   : > { %2781 = vmatpush3.bf16.msra.mxu0 %v1657_v50  ;;  %2787 = vmatpush3.bf16.msra.mxu1 %v1703_v51  ;;  %v1749_v25 = vsel %vm1655_vm4, %v1425_v20, 0  ;;  %v1795_v35 = vsel %vm1655_vm4, %v1426_v31, 0 }
 0x3e8   : > { %2792 = vmatprep.subr.bf16.mxu0 %v3724_v0  ;;  %2798 = vmatprep.subr.bf16.mxu1 %v3724_v0 }
 0x44e   : > { %v1468_v52 = vpop.f32.mrb[8].mxu1 }
 0x44f   : > { %v1560_v53 = vpop.f32.mrb[0].mxu0  ;;  %v2760_v54 = vpop.f32.mrb[9].mxu1  ;;  %v1612_v56 = vsel %vm1427_vm3, %v1468_v52, -inf }
 0x450   : > { %v2772_v55 = vpop.f32.mrb[1].mxu0  ;;  %1613 = vmax.xlane.f32.xlu0 %v1612_v56  ;;  %v1471_v58 = vpop.f32.mrb[10].mxu1  ;;  %v1618_v61 = vsel %vm1427_vm3, %v1560_v53, -inf }
 0x451   : > { %v1563_v57 = vpop.f32.mrb[2].mxu0  ;;  %v2761_v59 = vpop.f32.mrb[11].mxu1 }
 0x452   : > { %v2773_v60 = vpop.f32.mrb[3].mxu0 }
 0x454   : > { %1619 = vmax.xlane.f32.xlu0 %v1618_v61 }
 0x456   : > { %v1514_v62 = vpop.f32.mrb[12].mxu1 }
 0x457   : > { %v2766_v63 = vpop.f32.mrb[13].mxu1  ;;  %v1615_v1 = vsel %vm1427_vm3, %v1514_v62, -inf }
 0x458   : > { %1616 = vmax.xlane.f32.xlu1 %v1615_v1  ;;  %v1517_v2 = vpop.f32.mrb[14].mxu1 }
 0x459   : > { %v2767_v3 = vpop.f32.mrb[15].mxu1 }
 0x45e   : > { %v1606_v4 = vpop.f32.mrb[16].mxu1 }
 0x45f   : > { %v2778_v5 = vpop.f32.mrb[17].mxu1  ;;  %v1621_v7 = vsel %vm1427_vm3, %v1606_v4, -inf }
 0x460   : > { %1622 = vmax.xlane.f32.xlu0 %v1621_v7  ;;  %v1609_v8 = vpop.f32.mrb[18].mxu1 }
 0x461   : > { %v2779_v9 = vpop.f32.mrb[19].mxu1 }
 0x4dd   : > { %v1614_v10 = vpop.xlane.xlu0 %1613 }
 0x4de   : > { %v1624_v11 = vsub.f32 %v1468_v52, %v1614_v10 }
 0x4e0   : > { %v1628_v12 = vmul.f32 1.442695, %v1624_v11 }
 0x4e1   : > { %v1620_v13 = vpop.xlane.xlu0 %1619 }
 0x4e2   : > { %3082 = vpow2.f32 %v1628_v12  ;;  %v1626_v14 = vsub.f32 %v1560_v53, %v1620_v13 }
 0x4e4   : > { %v1632_v15 = vmul.f32 1.442695, %v1626_v14 }
 0x4e5   : > { %v1617_v16 = vpop.xlane.xlu1 %1616 }
 0x4e6   : > { %3084 = vpow2.f32 %v1632_v15  ;;  %v1625_v17 = vsub.f32 %v1514_v62, %v1617_v16 }
 0x4e8   : > { %v1630_v18 = vmul.f32 1.442695, %v1625_v17 }
 0x4ea   : > { %3086 = vpow2.f32 %v1630_v18  ;;  %v3070_v18 = vld [vmem:[#allocation15] sm:$0xff]  }
 0x4ec   : > { %v3083_v19 = vpop.eup %3082 }
 0x4ed   : > { %v1623_v21 = vpop.xlane.xlu0 %1622  ;;  %v1636_v22 = vsel %vm1427_vm3, %v3083_v19, 0.0  ;;  %v1648_v23 = vpack.c.bf16 %v3083_v19, %v3083_v19 }
 0x4ee   : > { %v1627_v24 = vsub.f32 %v1606_v4, %v1623_v21  ;;  %1637 = vadd.xlane.f32.xlu1 %v1636_v22 }
 0x4ef   : > { %2783 = vmatmul.mubr.msk.bf16.vlgmr.msra.gmra.mrb[4].mxu0 %vm1427_vm3, %v1648_v23 }
 0x4f0   : > { %v3085_v26 = vpop.eup %3084  ;;  %v1634_v27 = vmul.f32 1.442695, %v1627_v24  ;;  %2793 = vmatpush3.bf16.msra.mxu0 %v1749_v25  ;;  %2794 = vmatprep.mubr.msk.bf16.mxu0 %vm3725_vm0, %v3724_v0 }
 0x4f1   : > { %v1642_v28 = vsel %vm1427_vm3, %v3085_v26, 0.0  ;;  %2804 = vmatprep.subr.bf16.mxu0 %v3724_v0  ;;  %v1650_v34 = vpack.c.bf16 %v3085_v26, %v3085_v26 }
 0x4f2   : > { %3088 = vpow2.f32 %v1634_v27  ;;  %1643 = vadd.xlane.f32.xlu1 %v1642_v28  ;;  %v3071_v27 = vld [vmem:[#allocation15 + $0x8] sm:$0xff]  }
 0x4f4   : > { %v3087_v29 = vpop.eup %3086 }
 0x4f5   : > { %v1639_v32 = vsel %vm1427_vm3, %v3087_v29, 0.0  ;;  %v1649_v33 = vpack.c.bf16 %v3087_v29, %v3087_v29 }
 0x4f6   : > { %1640 = vadd.xlane.f32.xlu0 %v1639_v32 }
 0x4f7   : > { %2789 = vmatmul.mubr.msk.bf16.vlgmr.msra.gmra.mrb[20].mxu1 %vm1427_vm3, %v1649_v33  ;;  %2795 = vmatmul.mubr.msk.bf16.vlgmr.msra.gmra.mrb[8].mxu0 %vm1427_vm3, %v1650_v34 }
 0x4f8   : > { %2799 = vmatpush3.bf16.msra.mxu1 %v1795_v35  ;;  %2800 = vmatprep.mubr.msk.bf16.mxu1 %vm3725_vm0, %v3724_v0 }
 0x4f9   : > { %2808 = vmatprep.mubr.msk.bf16.mxu0 %vm3725_vm0, %v3724_v0  ;;  %2812 = vmatprep.subr.bf16.mxu1 %v3724_v0 }
 0x4fa   : > { %2805 = vmatpush3.bf16.msra.mxu0 %v3070_v18 }
 0x4fb   : > { %2806 = vmatprep.subr.bf16.mxu0 %v3724_v0 }
 0x4fc   : > { %v3089_v37 = vpop.eup %3088 }
 0x4fd   : > { %v1645_v38 = vsel %vm1427_vm3, %v3089_v37, 0.0  ;;  %v1651_v39 = vpack.c.bf16 %v3089_v37, %v3089_v37 }
 0x4fe   : > { %1646 = vadd.xlane.f32.xlu0 %v1645_v38  ;;  %2807 = vmatpush3.bf16.msra.mxu0 %v3071_v27 }
 0x4ff   : > { %2801 = vmatmul.mubr.msk.bf16.vlgmr.msra.gmra.mrb[24].mxu1 %vm1427_vm3, %v1651_v39  ;;  %2820 = vmatprep.subr.bf16.mxu0 %v3724_v0 }
 0x500   : > { %2816 = vmatprep.mubr.msk.bf16.mxu1 %vm3725_vm0, %v3724_v0 }
 0x57b   : > { %v1638_v40 = vpop.xlane.xlu1 %1637 }
 0x57c   : > { %3090 = vrcp.f32 %v1638_v40 }
 0x57f   : > { %v1644_v41 = vpop.xlane.xlu1 %1643 }
 0x580   : > { %3092 = vrcp.f32 %v1644_v41 }
 0x583   : > { %v1641_v42 = vpop.xlane.xlu0 %1640 }
 0x584   : > { %3094 = vrcp.f32 %v1641_v42 }
 0x586   : > { %v3091_v48 = vpop.eup %3090 }
 0x58a   : > { %v3093_v49 = vpop.eup %3092 }
 0x58b   : > { %v1647_v46 = vpop.xlane.xlu0 %1646 }
 0x58c   : > { %3096 = vrcp.f32 %v1647_v46 }
 0x58e   : > { %v3095_v62 = vpop.eup %3094 }
 0x596   : > { %v3097_v63 = vpop.eup %3096 }
 0x5c2   : > { %v1693_v43 = vpop.f32.mrb[4].mxu0 }
 0x5c3   : > { %v2784_v44 = vpop.f32.mrb[5].mxu0  ;;  %v1841_v52 = vmul.f32 %v3091_v48, %v1693_v43 }
 0x5c4   : > { %v1696_v45 = vpop.f32.mrb[6].mxu0 }
 0x5c5   : > { %v2785_v47 = vpop.f32.mrb[7].mxu0 }
 0x5ca   : > { %v1739_v50 = vpop.f32.mrb[20].mxu1  ;;  %v1785_v51 = vpop.f32.mrb[8].mxu0 }
 0x5cb   : > { %v1843_v53 = vmul.f32 %v3093_v49, %v1785_v51  ;;  %v2790_v54 = vpop.f32.mrb[21].mxu1  ;;  %v2796_v55 = vpop.f32.mrb[9].mxu0  ;;  %v1842_v2 = vmul.f32 %v3095_v62, %v1739_v50  ;;  %v2676_v51 = vld [vmem:[#allocation16] ss:$0 sm:$0xff] }
 0x5cc   : > { %v1742_v56 = vpop.f32.mrb[22].mxu1  ;;  %v1788_v57 = vpop.f32.mrb[10].mxu0 }
 0x5cd   : > { %v1845_v58 = vcombine.low %v1841_v52, %v1843_v53  ;;  %v1846_v59 = vcombine.high %v1841_v52, %v1843_v53  ;;  %v2791_v60 = vpop.f32.mrb[23].mxu1  ;;  %v2797_v61 = vpop.f32.mrb[11].mxu0 }
 0x5cf   : > { %v1853_v10 = vrot.slane %v1845_v58, %v4349_v30  ;;  %v1860_v11 = vrot.slane %v1846_v59, %v4349_v30 }
 0x5d2   : > { %v1831_v1 = vpop.f32.mrb[24].mxu1 }
 0x5d3   : > { %v1844_v3 = vmul.f32 %v3097_v63, %v1831_v1  ;;  %v2802_v4 = vpop.f32.mrb[25].mxu1  ;;  %v3072_v1 = vld [vmem:[#allocation21] sm:$0xff]  }
 0x5d4   : > { %v1834_v5 = vpop.f32.mrb[26].mxu1  ;;  %2813 = vmatpush3.bf16.msra.mxu1 %v3072_v1  ;;  %v3075_v4 = vld [vmem:[#allocation24 + $0x8] sm:$0xff]  }
 0x5d5   : > { %v1861_v7 = vcombine.low %v1842_v2, %v1844_v3  ;;  %v1862_v8 = vcombine.high %v1842_v2, %v1844_v3  ;;  %v2803_v9 = vpop.f32.mrb[27].mxu1  ;;  %v3073_v2 = vld [vmem:[#allocation21 + $0x8] sm:$0xff]   ;;  %2814 = vmatprep.subr.bf16.mxu1 %v3724_v0  ;;  %v3074_v3 = vld [vmem:[#allocation24] sm:$0xff]  }
 0x5d6   : > { %v3077_v5 = vld [vmem:[#allocation24 + $0x18] sm:$0xff]  }
 0x5d7   : > { %v1869_v12 = vrot.slane %v1861_v7, %v4349_v30  ;;  %v1876_v13 = vrot.slane %v1862_v8, %v4349_v30  ;;  %v3078_v7 = vld [vmem:[#allocation24 + $0x20] sm:$0xff]   ;;  %v3079_v8 = vld [vmem:[#allocation24 + $0x28] sm:$0xff]  }
 0x5d8   : > { %2815 = vmatpush3.bf16.msra.mxu1 %v3073_v2 }
 0x5d9   : > { %v1877_v14 = vcombine.low %v1853_v10, %v1869_v12  ;;  %v1878_v15 = vcombine.high %v1853_v10, %v1869_v12  ;;  %v1893_v16 = vcombine.low %v1860_v11, %v1876_v13  ;;  %v1894_v17 = vcombine.high %v1860_v11, %v1876_v13  ;;  %v2680_v13 = vld [vmem:[#allocation18] ss:$0 sm:$0xff] }
 0x5db   : > { %v1885_v19 = vrot.slane %v1877_v14, %v4351_v36  ;;  %v1892_v20 = vrot.slane %v1878_v15, %v4351_v36  ;;  %v1901_v21 = vrot.slane %v1893_v16, %v4351_v36  ;;  %v1908_v22 = vrot.slane %v1894_v17, %v4351_v36  ;;  %v2681_v15 = vld [vmem:[#allocation19] ss:$0 sm:$0xff] }
 0x5dd   : > { %v1913_v23 = vcombine.low %v1885_v19, %v1892_v20  ;;  %v2674_v24 = vcombine.high %v1885_v19, %v1892_v20  ;;  %v1929_v25 = vcombine.low %v1901_v21, %v1908_v22  ;;  %v2675_v26 = vcombine.high %v1901_v21, %v1908_v22  ;;  %v3080_v19 = vld [vmem:[#allocation24 + $0x30] sm:$0xff]   ;;  %v3081_v20 = vld [vmem:[#allocation24 + $0x38] sm:$0xff]  }
 0x5de   : > { %v2682_v21 = vld [vmem:[#allocation22] ss:$0 sm:$0xff] }
 0x5df   : > { %v1920_v28 = vrot.slane %v1913_v23, %v4349_v30  ;;  %v1928_v29 = vrot.slane %v2674_v24, %v4349_v30  ;;  %v1936_v31 = vrot.slane %v1929_v25, %v4349_v30  ;;  %v1944_v32 = vrot.slane %v2675_v26, %v4349_v30 }
 0x5e1   : > { %v1946_v33 = vcombine.high %v1920_v28, %v1928_v29  ;;  %v1962_v34 = vcombine.high %v1936_v31, %v1944_v32  ;;  %v1945_v35 = vcombine.low %v1920_v28, %v1928_v29  ;;  %v1961_v37 = vcombine.low %v1936_v31, %v1944_v32  ;;  %v2686_v29 = vld [vmem:[#allocation25] ss:$0 sm:$0xff] }
 0x5e3   : > { %v1960_v38 = vrot.slane %v1946_v33, %v4351_v36  ;;  %v1976_v39 = vrot.slane %v1962_v34, %v4351_v36  ;;  %v1953_v40 = vrot.slane %v1945_v35, %v4351_v36  ;;  %v1969_v41 = vrot.slane %v1961_v37, %v4351_v36 }
 0x5e5   : > { %v1979_v42 = vcombine.low %v1960_v38, %v1976_v39  ;;  %v1978_v43 = vcombine.high %v1953_v40, %v1969_v41  ;;  %v1980_v44 = vcombine.high %v1960_v38, %v1976_v39  ;;  %v1977_v45 = vcombine.low %v1953_v40, %v1969_v41 }
 0x5e7   : > { %1986 = vrot.lane.b32.xlu0 %v1979_v42, %s3732_s24  ;;  %1982 = vrot.lane.b32.xlu1 %v1978_v43, %s3733_s25  ;;  %s3560_s24 = scalar_lea.vmem %s3559_s17, 256 }
 0x5e8   : > { %p3562_p13 = scmp.lt.s32.totalorder %s3560_s24, %s3554_s1 }
 0x5ea   : > { %p3563_p4 = por %p3562_p13, %p3561_p6 }
 0x5eb   : > { %1990 = vrot.lane.b32.xlu1 %v1980_v44, %s3734_s8 }
 0x5ec   : > { %p3564_p9 = pnand %p3563_p4, %p3557_p11 }
 0x659   : > { %v1983_v30 = vpop.permute.xlu1 %1982  ;;  %v1987_v46 = vpop.permute.xlu0 %1986 }
 0x65a   : > { %v1993_v47 = vsel %vm1427_vm3, %v1977_v45, %v1983_v30 }
 0x65b   : > { %v1995_v49 = vsel %vm1994_vm5, %v1993_v47, %v1987_v46 }
 0x65d   : > { %v1991_v48 = vpop.permute.xlu1 %1990 }
 0x65e   : > { %v1997_v50 = vsel %vm1996_vm6, %v1995_v49, %v1991_v48 }
 0x65f   : > { %v1998_v36 = vpack.c.bf16 %v1997_v50, %v1997_v50 }
 0x661   : > { %2809 = vmatmul.mubr.msk.bf16.vlgmr.msra.gmra.mrb[12].mxu0 %vm846_vm1, %v1998_v36 }
 0x662   : > { %2836 = vmatprep.mubr.msk.bf16.mxu0 %vm3725_vm0, %v3724_v0  ;;  %2821 = vmatpush3.bf16.msra.mxu0 %v3074_v3 }
 0x663   : > { %2822 = vmatprep.subr.bf16.mxu0 %v3724_v0 }
 0x666   : > { %2823 = vmatpush3.bf16.msra.mxu0 %v3075_v4 }
 0x667   : > { %2824 = vmatprep.subr.bf16.mxu0 %v3724_v0 }
 0x734   : > { %v2059_v52 = vpop.f32.mrb[12].mxu0 }
 0x735   : > { %v2060_v53 = vadd.f32 %v2676_v51, %v2059_v52  ;;  %v2810_v54 = vpop.f32.mrb[13].mxu0 }
 0x736   : > { %v2062_v55 = vpop.f32.mrb[14].mxu0 }
 0x737   : > { %v2811_v56 = vpop.f32.mrb[15].mxu0  ;;  %v2065_v57 = vadd.f32 %v2060_v53, %v4337_v6  ;;  %v3076_v6 = vld [vmem:[#allocation24 + $0x10] sm:$0xff]  }
 0x738   : > { %2825 = vmatpush3.bf16.msra.mxu0 %v3076_v6 }
 0x739   : > { %v2068_v58 = vsel %vm846_vm1, %v2065_v57, 0.0  ;;  %2826 = vmatprep.subr.bf16.mxu0 %v3724_v0 }
 0x73a   : > { %2069 = vadd.xlane.f32.xlu1 %v2068_v58 }
 0x73c   : > { %2827 = vmatpush3.bf16.msra.mxu0 %v3077_v5 }
 0x73d   : > { %2828 = vmatprep.subr.bf16.mxu0 %v3724_v0 }
 0x740   : > { %2829 = vmatpush3.bf16.msra.mxu0 %v3078_v7 }
 0x741   : > { %2830 = vmatprep.subr.bf16.mxu0 %v3724_v0 }
 0x744   : > { %2831 = vmatpush3.bf16.msra.mxu0 %v3079_v8 }
 0x745   : > { %2832 = vmatprep.subr.bf16.mxu0 %v3724_v0 }
 0x748   : > { %2833 = vmatpush3.bf16.msra.mxu0 %v3080_v19 }
 0x749   : > { %2834 = vmatprep.subr.bf16.mxu0 %v3724_v0 }
 0x74c   : > { %2835 = vmatpush3.bf16.msra.mxu0 %v3081_v20 }
 0x7c7   : > { %v2070_v59 = vpop.xlane.xlu1 %2069 }
 0x7c8   : > { %v2072_v60 = vmul.f32 0.03125, %v2070_v59 }
 0x7ca   : > { %v2073_v61 = vsub.f32 %v2065_v57, %v2072_v60 }
 0x7cc   : > { %v2074_v62 = vmul.f32 %v2073_v61, %v2073_v61 }
 0x7ce   : > { %v2075_v63 = vsel %vm846_vm1, %v2074_v62, 0.0 }
 0x7cf   : > { %2076 = vadd.xlane.f32.xlu0 %v2075_v63 }
 0x85c   : > { %v2077_v9 = vpop.xlane.xlu0 %2076 }
 0x85d   : > { %v2078_v10 = vmul.f32 0.03125, %v2077_v9 }
 0x85f   : > { %v2079_v11 = vadd.f32 1e-05, %v2078_v10 }
 0x861   : > { %3098 = vrsqrt.f32 %v2079_v11 }
 0x86b   : > { %v3099_v12 = vpop.eup %3098 }
 0x86c   : > { %v2081_v14 = vmul.f32 %v3099_v12, %v2073_v61 }
 0x86e   : > { %v2088_v16 = vmul.f32 %v2680_v13, %v2081_v14 }
 0x870   : > { %v2095_v17 = vadd.f32 %v2681_v15, %v2088_v16 }
 0x872   : > { %v2096_v18 = vpack.c.bf16 %v2095_v17, %v2095_v17 }
 0x874   : > { %2817 = vmatmul.mubr.msk.bf16.vlgmr.msra.gmra.mrb[28].mxu1 %vm846_vm1, %v2096_v18 }
 0x947   : > { %v2157_v22 = vpop.f32.mrb[28].mxu1 }
 0x948   : > { %v2158_v23 = vadd.f32 %v2682_v21, %v2157_v22  ;;  %v2818_v24 = vpop.f32.mrb[29].mxu1 }
 0x949   : > { %v2160_v25 = vpop.f32.mrb[30].mxu1 }
 0x94a   : > { %v2163_v26 = vmax.f32 %v2158_v23, 0.0  ;;  %v2819_v27 = vpop.f32.mrb[31].mxu1 }
 0x94c   : > { %v2164_v28 = vpack.c.bf16 %v2163_v26, %v2163_v26 }
 0x94e   : > { %2837 = vmatmul.mubr.bf16.vlgmr.msra.gmra.mrb[16].mxu0 %v2164_v28 }
 0xa21   : > { %v2270_v31 = vpop.f32.mrb[16].mxu0 }
 0xa22   : > { %v2271_v32 = vadd.f32 %v2686_v29, %v2270_v31  ;;  %v2838_v33 = vpop.f32.mrb[17].mxu0 }
 0xa23   : > { %v2273_v34 = vpop.f32.mrb[18].mxu0 }
 0xa24   : > { %v2839_v0 = vpop.f32.mrb[19].mxu0  ;;  %v2277_v35 = vadd.f32 %v2271_v32, %v2095_v17  ;;  %2276 = vst.msk [vmem:[%s815_s5] sm:$0xff] %vm846_vm1, %v2271_v32 }
 0xa26   : > { %v2280_v37 = vsel %vm846_vm1, %v2277_v35, 0.0 }
 0xa27   : > { %2281 = vadd.xlane.f32.xlu0 %v2280_v37 }
 0xab4   : > { %v2282_v38 = vpop.xlane.xlu0 %2281 }
 0xab5   : > { %v2283_v39 = vmul.f32 0.03125, %v2282_v38 }
 0xab7   : > { %v2284_v40 = vsub.f32 %v2277_v35, %v2283_v39 }
 0xab9   : > { %v2285_v41 = vmul.f32 %v2284_v40, %v2284_v40 }
 0xabb   : > { %v2286_v42 = vsel %vm846_vm1, %v2285_v41, 0.0 }
 0xabc   : > { %2287 = vadd.xlane.f32.xlu1 %v2286_v42 }
 0xabd   : > { %3567 = shalt.err (!%p3564_p9)
}
 0xabe   : > { %s3568_s25 = scalar_lea.hbm %s4501_s27, 128  ;;  %s3572_s4 = scalar_lea.hbm %s4679_s7, 256 }
 0xabf   : > { %p3569_p0 = scmp.ne.s32.totalorder %s4501_s27, %s3568_s25  ;;  %p3573_p2 = scmp.lt.u32.totalorder %s4501_s27, %s4679_s7 }
 0xac0   : > { %p3574_p10 = scmp.lt.u32.totalorder %s3572_s4, %s3568_s25  ;;  %p3576_p5 = scmp.lt.u32.totalorder %s3568_s25, %s4501_s27 }
 0xac1   : > { %p3570_p7 = pnand %p3569_p0, %p4680_p8 }
 0xac2   : > { %p3575_p1 = por %p3574_p10, %p3573_p2 }
 0xac3   : > { %p3571_p12 = pneg %p3570_p7 }
 0xac4   : > { %p3577_p3 = por %p3576_p5, %p3575_p1 }
 0xac6   : > { %p3578_p11 = pnand %p3577_p3, %p3571_p12 }
 0xac8   : > { %3581 = shalt.err (!%p3578_p11)
}
 0xac9   : > { %2901 = dma.vmem_to_hbm [thread:$0]  (%p4680_p8), %s2343_s21, 128, %s4501_s27, %s2314_s28   ;;  %v2695_v46 = vld [vmem:[#allocation27] ss:$0 sm:$0xff]  ;;  %v2696_v48 = vld [vmem:[#allocation28] ss:$0 sm:$0xff] }
 0xaca   : > { %s808_s1 = scalar_lea.vmem [#allocation30], %s4281_s3  ;;  %s4681_s8 = sld [smem:[#allocation61_spill]] }
 0xacb   : > { %s2328_s17 = sshll.u32 %s808_s1, 4  ;;  %s2309_s27 = scalar_lea.sflag [#allocation6], %s4278_s0  ;;  %s4529_s17 = int_to_ptr.vmem [resolvable:$true] %s2328_s17 }
 0xacc   : > { %s3582_s21 = scalar_lea.vmem %s4529_s17, 128  ;;  %s3736_s3 = smov [#allocation30]  }
 0xacd   : > { %p3583_p6 = scmp.ne.s32.totalorder %s4529_s17, %s3582_s21  ;;  %s3586_s2 = sshll.u32 %s3736_s3, 4  ;;  %s3587_s2 = int_to_ptr.vmem [resolvable:$false] %s3586_s2 }
 0xace   : > { %s3588_s28 = scalar_lea.vmem %s3587_s2, 256  ;;  %p3589_p9 = scmp.lt.s32.totalorder %s4529_s17, %s3587_s2 }
 0xacf   : > { %p3584_p13 = pnand %p3583_p6, %p4680_p8  ;;  %p3590_p0 = scmp.lt.s32.totalorder %s3588_s28, %s3582_s21 }
 0xad0   : > { %s4527_s5 = scalar_lea.hbm %s4681_s8, %s2699_s18 }
 0xad1   : > { %p3585_p4 = pneg %p3584_p13  ;;  %p3591_p7 = por %p3590_p0, %p3589_p9 }
 0xad3   : > { %p3592_p12 = pnand %p3591_p7, %p3585_p4 }
 0xb49   : > { %v2288_v43 = vpop.xlane.xlu1 %2287 }
 0xb4a   : > { %v2289_v44 = vmul.f32 0.03125, %v2288_v43 }
 0xb4c   : > { %v2290_v45 = vadd.f32 1e-05, %v2289_v44 }
 0xb4e   : > { %3100 = vrsqrt.f32 %v2290_v45 }
 0xb58   : > { %v3101_v30 = vpop.eup %3100 }
 0xb59   : > { %v2292_v47 = vmul.f32 %v3101_v30, %v2284_v40 }
 0xb5b   : > { %v2299_v49 = vmul.f32 %v2695_v46, %v2292_v47 }
 0xb5d   : > { %v2306_v50 = vadd.f32 %v2696_v48, %v2299_v49 }
 0xb5f   : > { %2307 = vst.msk [vmem:[%s808_s1] sm:$0xff] %vm846_vm1, %v2306_v50 }
 0xb60   : > { %3595 = shalt.err (!%p3592_p12)
}
 0xb61   : > { %s3596_s0 = scalar_lea.hbm %s4527_s5, 128  ;;  %s3600_s6 = scalar_lea.hbm %s4681_s8, 256 }
 0xb62   : > { %p3597_p2 = scmp.ne.s32.totalorder %s4527_s5, %s3596_s0  ;;  %p3601_p5 = scmp.lt.u32.totalorder %s4527_s5, %s4681_s8 }
 0xb63   : > { %p3602_p3 = scmp.lt.u32.totalorder %s3600_s6, %s3596_s0  ;;  %p3604_p6 = scmp.lt.u32.totalorder %s3596_s0, %s4527_s5 }
 0xb64   : > { %p3598_p10 = pnand %p3597_p2, %p4680_p8 }
 0xb65   : > { %p3603_p11 = por %p3602_p3, %p3601_p5 }
 0xb66   : > { %p3599_p1 = pneg %p3598_p10 }
 0xb67   : > { %p3605_p13 = por %p3604_p6, %p3603_p11 }
 0xb69   : > { %p3606_p4 = pnand %p3605_p13, %p3599_p1 }
 0xb6b   : > { %3609 = shalt.err (!%p3606_p4)
}
 0xb6c   : > { %2900 = dma.vmem_to_hbm [thread:$0]  (%p4680_p8), %s4529_s17, 128, %s4527_s5, %s2309_s27  }
 0xb6d PF: > { %s4682_s24 = sld [smem:[#allocation45_spill]]  ;;  %p4683_p9 = scmp.ne.s32.totalorder %s4651_s26, 0 }
 0xb6e   : > { %p4684_p0 = scmp.ge.s32.totalorder %s3704_s29, 2 }
 0xb70   : > { %p2955_p7 = pnand %p4684_p0, %p4683_p9 }
 0xb73   : > { %s2354_s25 = sand.u32 1, %s4682_s24  }
 0xb74   : > { %s2355_s21 = scalar_lea.sflag [#allocation6], %s2354_s25 }
 0xb75   : > { %3675 = dma.done.wait (!%p2955_p7), %s2355_s21, 128  }
 0xb76   : > { %3677 = vsyncadd (!%p2955_p7), %s2355_s21, 4294967168  ;;  %s2364_s3 = scalar_lea.sflag [#allocation32], %s2354_s25 }
 0xb77   : > { %3679 = dma.done.wait (!%p2955_p7), %s2364_s3, 128  }
 0xb78   : > { %3681 = vsyncadd (!%p2955_p7), %s2364_s3, 4294967168  ;;  %s47_s29 = sadd.s32 1, %s3704_s29   ;;  %s4685_s24 = sld [smem:[#allocation46_spill]] }
 0xb79   : > { %p44_p12 = scmp.ge.s32.totalorder %s47_s29, 4   ;;  %s4686_s25 = sld [smem:[#allocation47_spill]] }
 0xb7a   : > { %s4687_s27 = sld [smem:[#allocation49_spill]]  ;;  %s4688_s26 = smov %s4195_s19 }
 0xb7b   : > { %s4689_s28 = smov %s4691_s20  ;;  %46 = sbr.rel (!%p44_p12) target bundleno = 29 (0x1d), region = 219 }
 0xb82   :  { %2369 = vsyncpa [#allocation5], 1 }
 0xb83   :  { %2371 = vsyncpa [#allocation5 + $0x1], 1 }
 0xb84   :  { %2372 = vsyncpa [#allocation8], 1 }
 0xb85   :  { %2374 = vsyncpa [#allocation8 + $0x1], 1 }
 0xb86   :  { %2375 = vsyncpa [#allocation11], 1 }
 0xb87   :  { %2376 = vsyncpa [#allocation14], 1 }
 0xb88   :  { %2377 = vsyncpa [#allocation17], 1 }
 0xb89   :  { %2378 = vsyncpa [#allocation20], 1 }
 0xb8a   :  { %2379 = vsyncpa [#allocation23], 1 }
 0xb8b   :  { %2380 = vsyncpa [#allocation26], 1 }
 0xb8c   :  { %2381 = vsyncpa [#allocation29], 1 }
 0xb8d   :  { %2382 = vsyncpa [#allocation6], 1 }
 0xb8e   :  { %2384 = vsyncpa [#allocation6 + $0x1], 1 }
 0xb8f   :  { %2385 = vsyncpa [#allocation32], 1 }
 0xb90   :  { %2387 = vsyncpa [#allocation32 + $0x1], 1 }

</bundles_post_ra>
